<compile_context>
chip_gen: v7x
topology: tpu7x:2x2x1
jax: 0.10.0
libtpu: 0.0.40
codegen_flags: <defaults>
</compile_context>

<pallas_src>
import functools

import jax
import jax.numpy as jnp
from jax import lax
from jax.experimental import pallas as pl
from jax.experimental.pallas import tpu as pltpu

LANE = 128  # pad the narrow (output_size=4) logits to a lane-dense store


# ----------------------------------------------------------------------------
# Single fused kernel
# ----------------------------------------------------------------------------
def _fused_forward_kernel(
    xin_ref, w_in_ref, mblock_ref,
    enc_wqkv_ref, enc_wo_ref, enc_w1_ref, enc_w2_ref,
    enc_bqkv_ref, enc_dvec_ref, enc_b1_ref,
    lstm_wih1_ref, lstm_whh1_ref, lstm_w2_ref, lstm_b_ref,
    fc1_w_ref, fc1_b_ref, fc2_w_ref, fc2_b_ref,
    logits_ref, hn_ref, cn_ref,
    out_sc,
    *, nlayers, nhead, seq_len, batch, hidden_dim, eps,
):
    D = mblock_ref.shape[0]
    hd = D // nhead
    H = hidden_dim
    B = batch
    S = seq_len
    N = S * B                       # rows per modality; encoder works on 2N rows
    scale = jnp.float32(1.0 / (hd ** 0.5))

    def mm(a, b):
        # bf16 MXU operands, f32 accumulation
        return jnp.dot(a.astype(jnp.bfloat16), b.astype(jnp.bfloat16),
                       preferred_element_type=jnp.float32)

    def layernorm(x, g, b):
        mu = jnp.mean(x, axis=-1, keepdims=True)
        var = jnp.mean((x - mu) ** 2, axis=-1, keepdims=True)
        return (x - mu) * lax.rsqrt(var + eps) * g + b

    mblock = mblock_ref[...]        # (D, D) block-diagonal per-head reduce matrix

    # ---- fused input projection: [fc_audio|fc_text] + biases + ReLU ---------
    x = jnp.maximum(mm(xin_ref[...], w_in_ref[...]), 0.0)       # (2N, D) f32

    # ---- transformer encoder (post-norm, relu); 2-token (audio,text) seq ----
    for l in range(nlayers):
        qkv = mm(x, enc_wqkv_ref[l]) + enc_bqkv_ref[l]           # (2N, 3D)
        q = qkv[:, :D]
        k = qkv[:, D:2 * D]
        v = qkv[:, 2 * D:]
        dk = k[N:] - k[:N]                                       # (N, D)
        dvv = v[N:] - v[:N]
        v0 = v[:N]
        dk2 = jnp.concatenate([dk, dk], axis=0)                  # (2N, D)
        dv2 = jnp.concatenate([dvv, dvv], axis=0)
        v02 = jnp.concatenate([v0, v0], axis=0)
        # 2-key softmax == sigmoid of the per-head score difference (exact only
        # because the attention sequence is the 2 modality tokens); per-head
        # reduce + broadcast done with one block-diagonal matmul on the MXU.
        p = jax.nn.sigmoid(mm(q * dk2, mblock) * scale)          # (2N, D)
        a = v02 + p * dv2

        dvec = enc_dvec_ref[l]                                   # (6, D) f32
        bo, g1, be1, b2, g2, be2 = (dvec[0:1], dvec[1:2], dvec[2:3],
                                    dvec[3:4], dvec[4:5], dvec[5:6])
        attn = mm(a, enc_wo_ref[l]) + bo
        y = layernorm(x + attn, g1, be1)
        f = mm(jnp.maximum(mm(y, enc_w1_ref[l]) + enc_b1_ref[l], 0.0),
               enc_w2_ref[l]) + b2
        x = layernorm(y + f, g2, be2)

    # ---- 2-layer LSTM (PyTorch gate order i, f, g, o) ------------------------
    bgate = lstm_b_ref[...]                                      # (2, 4H) f32
    b1g, b2g = bgate[0:1], bgate[1:2]

    # hoist layer-1 input projection out of the recurrence: one matmul for all S*B
    x01 = jnp.concatenate([x[:N], x[N:]], axis=1)                # (N, 2D) = cat(audio, text)
    gx1 = mm(x01, lstm_wih1_ref[...]) + b1g                      # (N, 4H)

    whh1 = lstm_whh1_ref[...]                                    # (H, 4H)
    w2s = lstm_w2_ref[...]                                       # (2H, 4H) = [w_ih2^T; w_hh2^T]

    h1 = jnp.zeros((B, H), jnp.float32)
    c1 = jnp.zeros((B, H), jnp.float32)
    h2 = jnp.zeros((B, H), jnp.float32)
    c2 = jnp.zeros((B, H), jnp.float32)

    def cell(gates, c_prev):
        sg = jax.nn.sigmoid(gates)      # full-width EUP pass; i, f, o lanes valid
        tg = jnp.tanh(gates)            # g lanes valid
        i = sg[:, 0:H]
        f = sg[:, H:2 * H]
        g = tg[:, 2 * H:3 * H]
        o = sg[:, 3 * H:4 * H]
        c_new = f * c_prev + i * g
        h_new = o * jnp.tanh(c_new)
        return h_new, c_new

    for t in range(S):                  # static unroll; rows are time-major (s, b)
        gates1 = gx1[t * B:(t + 1) * B] + mm(h1, whh1)
        h1, c1 = cell(gates1, c1)
        # TODO(synk): inter-layer LSTM dropout (train-time only) treated as identity.
        gates2 = mm(jnp.concatenate([h1, h2], axis=1), w2s) + b2g
        h2, c2 = cell(gates2, c2)
        out_sc[t * B:(t + 1) * B, :] = h2

    # ---- classifier head: relu -> fc1 -> relu -> fc2 --------------------------
    o_relu = jnp.maximum(out_sc[...], 0.0)
    hfc = jnp.maximum(mm(o_relu, fc1_w_ref[...]) + fc1_b_ref[...], 0.0)
    logits_ref[...] = (mm(hfc, fc2_w_ref[...]) + fc2_b_ref[...]).astype(logits_ref.dtype)

    hn_ref[0] = h1.astype(hn_ref.dtype)
    hn_ref[1] = h2.astype(hn_ref.dtype)
    cn_ref[0] = c1.astype(cn_ref.dtype)
    cn_ref[1] = c2.astype(cn_ref.dtype)


# ----------------------------------------------------------------------------
# Parameter construction (torch layout, deterministic) + one-time packing
# ----------------------------------------------------------------------------
def init_params(key, *, audio_dim, text_dim, D, nhead, nhidden, nLayers,
                output_size, hidden_dim, fc_dim):
    ks = iter(jax.random.split(key, 64))

    def w(shape, s=0.1):
        return jax.random.normal(next(ks), shape, jnp.float32) * s

    params = {
        "fc_audio_w": w((D, audio_dim)), "fc_audio_b": w((D,)),
        "fc_text_w": w((D, text_dim)), "fc_text_b": w((D,)),
        "encoder_layers": [],
        "lstm": {
            "w_ih1": w((4 * hidden_dim, 2 * D)), "w_hh1": w((4 * hidden_dim, hidden_dim)),
            "b_ih1": w((4 * hidden_dim,)), "b_hh1": w((4 * hidden_dim,)),
            "w_ih2": w((4 * hidden_dim, hidden_dim)), "w_hh2": w((4 * hidden_dim, hidden_dim)),
            "b_ih2": w((4 * hidden_dim,)), "b_hh2": w((4 * hidden_dim,)),
        },
        "fc1_w": w((fc_dim, hidden_dim)), "fc1_b": w((fc_dim,)),
        "fc2_w": w((output_size, fc_dim)), "fc2_b": w((output_size,)),
    }
    for _ in range(nLayers):
        params["encoder_layers"].append({
            "wq": w((D, D)), "bq": w((D,)),
            "wk": w((D, D)), "bk": w((D,)),
            "wv": w((D, D)), "bv": w((D,)),
            "wo": w((D, D)), "bo": w((D,)),
            "ln1_g": jnp.ones((D,), jnp.float32), "ln1_b": jnp.zeros((D,), jnp.float32),
            "w1": w((nhidden, D)), "b1": w((nhidden,)),
            "w2": w((D, nhidden)), "b2": w((D,)),
            "ln2_g": jnp.ones((D,), jnp.float32), "ln2_b": jnp.zeros((D,), jnp.float32),
        })
    return params


def pack_params(p, *, D, nhead, output_size):
    """Pre-transpose, stack and bf16-cast weights ONCE (kernel-ready layout)."""
    bf16 = jnp.bfloat16
    layers = p["encoder_layers"]
    L = len(layers)
    F = layers[0]["w1"].shape[0]

    # fused input projection weight: [fc_audio_w^T ; fc_text_w^T ; fc_audio_b ; fc_text_b]
    w_in = jnp.concatenate([
        p["fc_audio_w"].T, p["fc_text_w"].T,
        p["fc_audio_b"].reshape(1, D), p["fc_text_b"].reshape(1, D),
    ], axis=0).astype(bf16)                                                  # (A+T+2, D)

    # block-diagonal per-head "reduce then broadcast" matrix
    hd = D // nhead
    r = jnp.arange(D)[:, None] // hd
    c = jnp.arange(D)[None, :] // hd
    mblock = (r == c).astype(bf16)                                           # (D, D)

    enc_wqkv = jnp.stack([jnp.concatenate([l["wq"].T, l["wk"].T, l["wv"].T], axis=1)
                          for l in layers]).astype(bf16)                     # (L, D, 3D)
    enc_wo = jnp.stack([l["wo"].T for l in layers]).astype(bf16)             # (L, D, D)
    enc_w1 = jnp.stack([l["w1"].T for l in layers]).astype(bf16)             # (L, D, F)
    enc_w2 = jnp.stack([l["w2"].T for l in layers]).astype(bf16)             # (L, F, D)
    enc_bqkv = jnp.stack([jnp.concatenate([l["bq"], l["bk"], l["bv"]])
                          for l in layers]).reshape(L, 1, 3 * D)             # (L, 1, 3D) f32
    enc_dvec = jnp.stack([jnp.stack([l["bo"], l["ln1_g"], l["ln1_b"],
                                     l["b2"], l["ln2_g"], l["ln2_b"]])
                          for l in layers])                                  # (L, 6, D) f32
    enc_b1 = jnp.stack([l["b1"] for l in layers]).reshape(L, 1, F)           # (L, 1, F) f32

    lp = p["lstm"]
    lstm_wih1 = lp["w_ih1"].T.astype(bf16)                                   # (2D, 4H)
    lstm_whh1 = lp["w_hh1"].T.astype(bf16)                                   # (H, 4H)
    lstm_w2 = jnp.concatenate([lp["w_ih2"].T, lp["w_hh2"].T],
                              axis=0).astype(bf16)                           # (2H, 4H)
    lstm_b = jnp.stack([lp["b_ih1"] + lp["b_hh1"],
                        lp["b_ih2"] + lp["b_hh2"]])                          # (2, 4H) f32

    fc_dim = p["fc1_w"].shape[0]
    mpad = max(LANE, output_size)
    fc2_w = jnp.zeros((fc_dim, mpad), jnp.float32).at[:, :output_size].set(
        p["fc2_w"].T).astype(bf16)
    fc2_b = jnp.zeros((1, mpad), jnp.float32).at[:, :output_size].set(p["fc2_b"])

    return dict(
        w_in=w_in, mblock=mblock,
        enc_wqkv=enc_wqkv, enc_wo=enc_wo, enc_w1=enc_w1, enc_w2=enc_w2,
        enc_bqkv=enc_bqkv, enc_dvec=enc_dvec, enc_b1=enc_b1,
        lstm_wih1=lstm_wih1, lstm_whh1=lstm_whh1, lstm_w2=lstm_w2, lstm_b=lstm_b,
        fc1_w=p["fc1_w"].T.astype(bf16), fc1_b=p["fc1_b"].reshape(1, fc_dim),
        fc2_w=fc2_w, fc2_b=fc2_b,
    )


# ----------------------------------------------------------------------------
# Forward wrapper: one fused pallas_call (wrap the whole thing in jax.jit)
# ----------------------------------------------------------------------------
def transformer_lstm_forward(packed, audio, text, *, nlayers, nhead,
                             hidden_dim, output_size):
    B, S, A = audio.shape
    T = text.shape[-1]
    N = S * B
    H = hidden_dim
    mpad = packed["fc2_w"].shape[1]

    # (s, b) row order so LSTM time slices are contiguous; the two modality
    # streams are stacked along rows; two indicator columns let the fused input
    # matmul apply fc_audio_b / fc_text_b in the same pass.
    a_sm = jnp.transpose(audio, (1, 0, 2)).reshape(N, A)
    t_sm = jnp.transpose(text, (1, 0, 2)).reshape(N, T)
    za = jnp.zeros((N, A), audio.dtype)
    zt = jnp.zeros((N, T), audio.dtype)
    one = jnp.ones((N, 1), audio.dtype)
    zero = jnp.zeros((N, 1), audio.dtype)
    xin = jnp.concatenate([
        jnp.concatenate([a_sm, zt, one, zero], axis=1),
        jnp.concatenate([za, t_sm, zero, one], axis=1),
    ], axis=0).astype(jnp.bfloat16)                              # (2N, A+T+2)

    args = (
        xin, packed["w_in"], packed["mblock"],
        packed["enc_wqkv"], packed["enc_wo"], packed["enc_w1"], packed["enc_w2"],
        packed["enc_bqkv"], packed["enc_dvec"], packed["enc_b1"],
        packed["lstm_wih1"], packed["lstm_whh1"], packed["lstm_w2"], packed["lstm_b"],
        packed["fc1_w"], packed["fc1_b"], packed["fc2_w"], packed["fc2_b"],
    )
    vspec = pl.BlockSpec(memory_space=pltpu.MemorySpace.VMEM)

    logits_sm, hn, cn = pl.pallas_call(
        functools.partial(
            _fused_forward_kernel,
            nlayers=nlayers, nhead=nhead, seq_len=S, batch=B,
            hidden_dim=H, eps=1e-5),
        out_shape=(jax.ShapeDtypeStruct((N, mpad), jnp.float32),
                   jax.ShapeDtypeStruct((2, B, H), jnp.float32),
                   jax.ShapeDtypeStruct((2, B, H), jnp.float32)),
        in_specs=[vspec] * len(args),
        out_specs=(vspec, vspec, vspec),
        scratch_shapes=[pltpu.VMEM((N, H), jnp.float32)],
    )(*args)

    # back to PyTorch (b, s) row order and real output width
    logits = jnp.transpose(logits_sm.reshape(S, B, mpad), (1, 0, 2))
    logits = logits.reshape(B * S, mpad)[:, :output_size]
    return logits, (hn, cn)


if __name__ == "__main__":
    # Small shapes consistent with the module's forward.
    B, S = 2, 8
    audio_dim, text_dim = 16, 24
    D = 16               # input_feat_size (d_model)
    nhead = 2
    nhidden = 32         # transformer FFN dim
    nLayers = 2
    output_size = 4
    hidden_dim = 32
    fc_dim = 16

    key = jax.random.PRNGKey(0)
    k_param, k_a, k_t = jax.random.split(key, 3)
    params = init_params(k_param, audio_dim=audio_dim, text_dim=text_dim, D=D,
                         nhead=nhead, nhidden=nhidden, nLayers=nLayers,
                         output_size=output_size, hidden_dim=hidden_dim, fc_dim=fc_dim)
    packed = pack_params(params, D=D, nhead=nhead, output_size=output_size)

    audio = jax.random.normal(k_a, (B, S, audio_dim), jnp.float32)
    text = jax.random.normal(k_t, (B, S, text_dim), jnp.float32)

    fwd = jax.jit(functools.partial(
        transformer_lstm_forward, nlayers=nLayers, nhead=nhead,
        hidden_dim=hidden_dim, output_size=output_size))

    logits, (h_n, c_n) = fwd(packed, audio, text)
    jax.block_until_ready((logits, h_n, c_n))

    assert logits.shape == (B * S, output_size)
    assert h_n.shape == (2, B, hidden_dim) and c_n.shape == (2, B, hidden_dim)
    assert bool(jnp.all(jnp.isfinite(logits)))
    print("KERNEL_OK")
</pallas_src>

<mosaic_0001>
module attributes {stable_mosaic.version = 11 : i64} {
  func.func @_fused_forward_kernel(%arg0: memref<32x42xbf16, #tpu.memory_space<vmem>>, %arg1: memref<42x16xbf16, #tpu.memory_space<vmem>>, %arg2: memref<16x16xbf16, #tpu.memory_space<vmem>>, %arg3: memref<2x16x48xbf16, #tpu.memory_space<vmem>>, %arg4: memref<2x16x16xbf16, #tpu.memory_space<vmem>>, %arg5: memref<2x16x32xbf16, #tpu.memory_space<vmem>>, %arg6: memref<2x32x16xbf16, #tpu.memory_space<vmem>>, %arg7: memref<2x1x48xf32, #tpu.memory_space<vmem>>, %arg8: memref<2x6x16xf32, #tpu.memory_space<vmem>>, %arg9: memref<2x1x32xf32, #tpu.memory_space<vmem>>, %arg10: memref<32x128xbf16, #tpu.memory_space<vmem>>, %arg11: memref<32x128xbf16, #tpu.memory_space<vmem>>, %arg12: memref<64x128xbf16, #tpu.memory_space<vmem>>, %arg13: memref<2x128xf32, #tpu.memory_space<vmem>>, %arg14: memref<32x16xbf16, #tpu.memory_space<vmem>>, %arg15: memref<1x16xf32, #tpu.memory_space<vmem>>, %arg16: memref<16x128xbf16, #tpu.memory_space<vmem>>, %arg17: memref<1x128xf32, #tpu.memory_space<vmem>>, %arg18: memref<16x128xf32, #tpu.memory_space<vmem>>, %arg19: memref<2x2x32xf32, #tpu.memory_space<vmem>>, %arg20: memref<2x2x32xf32, #tpu.memory_space<vmem>>, %arg21: memref<16x32xf32, #tpu.memory_space<vmem>>) attributes {dimension_semantics = [], scalar_prefetch = 0 : i64, scratch_operands = 1 : i64, tpu.core_type = #tpu.core_type<tc>} {
    %c0 = arith.constant 0 : index
    %c0_0 = arith.constant 0 : index
    %0 = vector.load %arg2[%c0, %c0_0] : memref<16x16xbf16, #tpu.memory_space<vmem>>, vector<16x16xbf16>
    %c0_1 = arith.constant 0 : index
    %c0_2 = arith.constant 0 : index
    %1 = vector.load %arg0[%c0_1, %c0_2] : memref<32x42xbf16, #tpu.memory_space<vmem>>, vector<32x42xbf16>
    %c0_3 = arith.constant 0 : index
    %c0_4 = arith.constant 0 : index
    %2 = vector.load %arg1[%c0_3, %c0_4] : memref<42x16xbf16, #tpu.memory_space<vmem>>, vector<42x16xbf16>
    %cst = arith.constant dense<0.000000e+00> : vector<32x16xf32>
    %3 = tpu.matmul %1, %2, %cst {dimension_numbers = #tpu.dot_dimension_numbers<[1], [0], [0], [1], [0, 0, 1, 1], [], []>} : vector<32x42xbf16>, vector<42x16xbf16>, vector<32x16xf32> -> vector<32x16xf32>
    %cst_5 = arith.constant 0.000000e+00 : f32
    %4 = vector.broadcast %cst_5 : f32 to vector<32x16xf32>
    %5 = arith.maximumf %3, %4 : vector<32x16xf32>
    %c0_6 = arith.constant 0 : index
    %c0_7 = arith.constant 0 : index
    %c0_8 = arith.constant 0 : index
    %6 = vector.load %arg3[%c0_6, %c0_7, %c0_8] : memref<2x16x48xbf16, #tpu.memory_space<vmem>>, vector<1x16x48xbf16>
    %7 = vector.shape_cast %6 : vector<1x16x48xbf16> to vector<16x48xbf16>
    %8 = arith.truncf %5 : vector<32x16xf32> to vector<32x16xbf16>
    %cst_9 = arith.constant dense<0.000000e+00> : vector<32x48xf32>
    %9 = tpu.matmul %8, %7, %cst_9 {dimension_numbers = #tpu.dot_dimension_numbers<[1], [0], [0], [1], [0, 0, 1, 1], [], []>} : vector<32x16xbf16>, vector<16x48xbf16>, vector<32x48xf32> -> vector<32x48xf32>
    %c0_10 = arith.constant 0 : index
    %c0_11 = arith.constant 0 : index
    %c0_12 = arith.constant 0 : index
    %10 = vector.load %arg7[%c0_10, %c0_11, %c0_12] : memref<2x1x48xf32, #tpu.memory_space<vmem>>, vector<1x1x48xf32>
    %11 = vector.shape_cast %10 : vector<1x1x48xf32> to vector<1x48xf32>
    %12 = vector.broadcast %11 : vector<1x48xf32> to vector<32x48xf32>
    %13 = arith.addf %9, %12 : vector<32x48xf32>
    %14 = vector.extract_strided_slice %13 {offsets = [0, 0], sizes = [32, 16], strides = [1, 1]} : vector<32x48xf32> to vector<32x16xf32>
    %15 = vector.extract_strided_slice %13 {offsets = [0, 16], sizes = [32, 16], strides = [1, 1]} : vector<32x48xf32> to vector<32x16xf32>
    %16 = vector.extract_strided_slice %13 {offsets = [0, 32], sizes = [32, 16], strides = [1, 1]} : vector<32x48xf32> to vector<32x16xf32>
    %17 = vector.extract_strided_slice %15 {offsets = [16, 0], sizes = [16, 16], strides = [1, 1]} : vector<32x16xf32> to vector<16x16xf32>
    %18 = vector.extract_strided_slice %15 {offsets = [0, 0], sizes = [16, 16], strides = [1, 1]} : vector<32x16xf32> to vector<16x16xf32>
    %19 = arith.subf %17, %18 : vector<16x16xf32>
    %20 = vector.extract_strided_slice %16 {offsets = [16, 0], sizes = [16, 16], strides = [1, 1]} : vector<32x16xf32> to vector<16x16xf32>
    %21 = vector.extract_strided_slice %16 {offsets = [0, 0], sizes = [16, 16], strides = [1, 1]} : vector<32x16xf32> to vector<16x16xf32>
    %22 = arith.subf %20, %21 : vector<16x16xf32>
    %23 = vector.extract_strided_slice %16 {offsets = [0, 0], sizes = [16, 16], strides = [1, 1]} : vector<32x16xf32> to vector<16x16xf32>
    %24 = tpu.concatenate %19, %19 in 0 : vector<16x16xf32>, vector<16x16xf32> -> vector<32x16xf32>
    %25 = tpu.concatenate %22, %22 in 0 : vector<16x16xf32>, vector<16x16xf32> -> vector<32x16xf32>
    %26 = tpu.concatenate %23, %23 in 0 : vector<16x16xf32>, vector<16x16xf32> -> vector<32x16xf32>
    %27 = arith.mulf %14, %24 : vector<32x16xf32>
    %28 = arith.truncf %27 : vector<32x16xf32> to vector<32x16xbf16>
    %cst_13 = arith.constant dense<0.000000e+00> : vector<32x16xf32>
    %29 = tpu.matmul %28, %0, %cst_13 {dimension_numbers = #tpu.dot_dimension_numbers<[1], [0], [0], [1], [0, 0, 1, 1], [], []>} : vector<32x16xbf16>, vector<16x16xbf16>, vector<32x16xf32> -> vector<32x16xf32>
    %cst_14 = arith.constant 0.353553385 : f32
    %30 = vector.broadcast %cst_14 : f32 to vector<32x16xf32>
    %31 = arith.mulf %29, %30 : vector<32x16xf32>
    %32 = arith.negf %31 : vector<32x16xf32>
    %33 = math.exp %32 : vector<32x16xf32>
    %cst_15 = arith.constant 1.000000e+00 : f32
    %34 = vector.broadcast %cst_15 : f32 to vector<32x16xf32>
    %35 = arith.addf %34, %33 : vector<32x16xf32>
    %36 = arith.divf %34, %35 : vector<32x16xf32>
    %37 = arith.mulf %36, %25 : vector<32x16xf32>
    %38 = arith.addf %26, %37 : vector<32x16xf32>
    %c0_16 = arith.constant 0 : index
    %c0_17 = arith.constant 0 : index
    %c0_18 = arith.constant 0 : index
    %39 = vector.load %arg8[%c0_16, %c0_17, %c0_18] : memref<2x6x16xf32, #tpu.memory_space<vmem>>, vector<1x6x16xf32>
    %40 = vector.shape_cast %39 : vector<1x6x16xf32> to vector<6x16xf32>
    %41 = vector.extract_strided_slice %40 {offsets = [0, 0], sizes = [1, 16], strides = [1, 1]} : vector<6x16xf32> to vector<1x16xf32>
    %42 = vector.extract_strided_slice %40 {offsets = [1, 0], sizes = [1, 16], strides = [1, 1]} : vector<6x16xf32> to vector<1x16xf32>
    %43 = vector.extract_strided_slice %40 {offsets = [2, 0], sizes = [1, 16], strides = [1, 1]} : vector<6x16xf32> to vector<1x16xf32>
    %44 = vector.extract_strided_slice %40 {offsets = [3, 0], sizes = [1, 16], strides = [1, 1]} : vector<6x16xf32> to vector<1x16xf32>
    %45 = vector.extract_strided_slice %40 {offsets = [4, 0], sizes = [1, 16], strides = [1, 1]} : vector<6x16xf32> to vector<1x16xf32>
    %46 = vector.extract_strided_slice %40 {offsets = [5, 0], sizes = [1, 16], strides = [1, 1]} : vector<6x16xf32> to vector<1x16xf32>
    %c0_19 = arith.constant 0 : index
    %c0_20 = arith.constant 0 : index
    %c0_21 = arith.constant 0 : index
    %47 = vector.load %arg4[%c0_19, %c0_20, %c0_21] : memref<2x16x16xbf16, #tpu.memory_space<vmem>>, vector<1x16x16xbf16>
    %48 = vector.shape_cast %47 : vector<1x16x16xbf16> to vector<16x16xbf16>
    %49 = arith.truncf %38 : vector<32x16xf32> to vector<32x16xbf16>
    %cst_22 = arith.constant dense<0.000000e+00> : vector<32x16xf32>
    %50 = tpu.matmul %49, %48, %cst_22 {dimension_numbers = #tpu.dot_dimension_numbers<[1], [0], [0], [1], [0, 0, 1, 1], [], []>} : vector<32x16xbf16>, vector<16x16xbf16>, vector<32x16xf32> -> vector<32x16xf32>
    %51 = vector.broadcast %41 : vector<1x16xf32> to vector<32x16xf32>
    %52 = arith.addf %50, %51 : vector<32x16xf32>
    %53 = arith.addf %5, %52 : vector<32x16xf32>
    %cst_23 = arith.constant dense<0.000000e+00> : vector<32xf32>
    %54 = vector.multi_reduction <add>, %53, %cst_23 [1] : vector<32x16xf32> to vector<32xf32>
    %55 = vector.shape_cast %54 : vector<32xf32> to vector<32x1xf32>
    %cst_24 = arith.constant 1.600000e+01 : f32
    %56 = vector.broadcast %cst_24 : f32 to vector<32x1xf32>
    %57 = arith.divf %55, %56 : vector<32x1xf32>
    %58 = vector.broadcast %57 : vector<32x1xf32> to vector<32x16xf32>
    %59 = arith.subf %53, %58 : vector<32x16xf32>
    %60 = arith.mulf %59, %59 : vector<32x16xf32>
    %cst_25 = arith.constant dense<0.000000e+00> : vector<32xf32>
    %61 = vector.multi_reduction <add>, %60, %cst_25 [1] : vector<32x16xf32> to vector<32xf32>
    %62 = vector.shape_cast %61 : vector<32xf32> to vector<32x1xf32>
    %cst_26 = arith.constant 1.600000e+01 : f32
    %63 = vector.broadcast %cst_26 : f32 to vector<32x1xf32>
    %64 = arith.divf %62, %63 : vector<32x1xf32>
    %65 = vector.broadcast %57 : vector<32x1xf32> to vector<32x16xf32>
    %66 = arith.subf %53, %65 : vector<32x16xf32>
    %cst_27 = arith.constant 9.99999974E-6 : f32
    %67 = vector.broadcast %cst_27 : f32 to vector<32x1xf32>
    %68 = arith.addf %64, %67 : vector<32x1xf32>
    %69 = math.rsqrt %68 : vector<32x1xf32>
    %70 = vector.broadcast %69 : vector<32x1xf32> to vector<32x16xf32>
    %71 = arith.mulf %66, %70 : vector<32x16xf32>
    %72 = vector.broadcast %42 : vector<1x16xf32> to vector<32x16xf32>
    %73 = arith.mulf %71, %72 : vector<32x16xf32>
    %74 = vector.broadcast %43 : vector<1x16xf32> to vector<32x16xf32>
    %75 = arith.addf %73, %74 : vector<32x16xf32>
    %c0_28 = arith.constant 0 : index
    %c0_29 = arith.constant 0 : index
    %c0_30 = arith.constant 0 : index
    %76 = vector.load %arg5[%c0_28, %c0_29, %c0_30] : memref<2x16x32xbf16, #tpu.memory_space<vmem>>, vector<1x16x32xbf16>
    %77 = vector.shape_cast %76 : vector<1x16x32xbf16> to vector<16x32xbf16>
    %78 = arith.truncf %75 : vector<32x16xf32> to vector<32x16xbf16>
    %cst_31 = arith.constant dense<0.000000e+00> : vector<32x32xf32>
    %79 = tpu.matmul %78, %77, %cst_31 {dimension_numbers = #tpu.dot_dimension_numbers<[1], [0], [0], [1], [0, 0, 1, 1], [], []>} : vector<32x16xbf16>, vector<16x32xbf16>, vector<32x32xf32> -> vector<32x32xf32>
    %c0_32 = arith.constant 0 : index
    %c0_33 = arith.constant 0 : index
    %c0_34 = arith.constant 0 : index
    %80 = vector.load %arg9[%c0_32, %c0_33, %c0_34] : memref<2x1x32xf32, #tpu.memory_space<vmem>>, vector<1x1x32xf32>
    %81 = vector.shape_cast %80 : vector<1x1x32xf32> to vector<1x32xf32>
    %82 = vector.broadcast %81 : vector<1x32xf32> to vector<32x32xf32>
    %83 = arith.addf %79, %82 : vector<32x32xf32>
    %cst_35 = arith.constant 0.000000e+00 : f32
    %84 = vector.broadcast %cst_35 : f32 to vector<32x32xf32>
    %85 = arith.maximumf %83, %84 : vector<32x32xf32>
    %c0_36 = arith.constant 0 : index
    %c0_37 = arith.constant 0 : index
    %c0_38 = arith.constant 0 : index
    %86 = vector.load %arg6[%c0_36, %c0_37, %c0_38] : memref<2x32x16xbf16, #tpu.memory_space<vmem>>, vector<1x32x16xbf16>
    %87 = vector.shape_cast %86 : vector<1x32x16xbf16> to vector<32x16xbf16>
    %88 = arith.truncf %85 : vector<32x32xf32> to vector<32x32xbf16>
    %cst_39 = arith.constant dense<0.000000e+00> : vector<32x16xf32>
    %89 = tpu.matmul %88, %87, %cst_39 {dimension_numbers = #tpu.dot_dimension_numbers<[1], [0], [0], [1], [0, 0, 1, 1], [], []>} : vector<32x32xbf16>, vector<32x16xbf16>, vector<32x16xf32> -> vector<32x16xf32>
    %90 = vector.broadcast %44 : vector<1x16xf32> to vector<32x16xf32>
    %91 = arith.addf %89, %90 : vector<32x16xf32>
    %92 = arith.addf %75, %91 : vector<32x16xf32>
    %cst_40 = arith.constant dense<0.000000e+00> : vector<32xf32>
    %93 = vector.multi_reduction <add>, %92, %cst_40 [1] : vector<32x16xf32> to vector<32xf32>
    %94 = vector.shape_cast %93 : vector<32xf32> to vector<32x1xf32>
    %cst_41 = arith.constant 1.600000e+01 : f32
    %95 = vector.broadcast %cst_41 : f32 to vector<32x1xf32>
    %96 = arith.divf %94, %95 : vector<32x1xf32>
    %97 = vector.broadcast %96 : vector<32x1xf32> to vector<32x16xf32>
    %98 = arith.subf %92, %97 : vector<32x16xf32>
    %99 = arith.mulf %98, %98 : vector<32x16xf32>
    %cst_42 = arith.constant dense<0.000000e+00> : vector<32xf32>
    %100 = vector.multi_reduction <add>, %99, %cst_42 [1] : vector<32x16xf32> to vector<32xf32>
    %101 = vector.shape_cast %100 : vector<32xf32> to vector<32x1xf32>
    %cst_43 = arith.constant 1.600000e+01 : f32
    %102 = vector.broadcast %cst_43 : f32 to vector<32x1xf32>
    %103 = arith.divf %101, %102 : vector<32x1xf32>
    %104 = vector.broadcast %96 : vector<32x1xf32> to vector<32x16xf32>
    %105 = arith.subf %92, %104 : vector<32x16xf32>
    %cst_44 = arith.constant 9.99999974E-6 : f32
    %106 = vector.broadcast %cst_44 : f32 to vector<32x1xf32>
    %107 = arith.addf %103, %106 : vector<32x1xf32>
    %108 = math.rsqrt %107 : vector<32x1xf32>
    %109 = vector.broadcast %108 : vector<32x1xf32> to vector<32x16xf32>
    %110 = arith.mulf %105, %109 : vector<32x16xf32>
    %111 = vector.broadcast %45 : vector<1x16xf32> to vector<32x16xf32>
    %112 = arith.mulf %110, %111 : vector<32x16xf32>
    %113 = vector.broadcast %46 : vector<1x16xf32> to vector<32x16xf32>
    %114 = arith.addf %112, %113 : vector<32x16xf32>
    %c1 = arith.constant 1 : index
    %c0_45 = arith.constant 0 : index
    %c0_46 = arith.constant 0 : index
    %115 = vector.load %arg3[%c1, %c0_45, %c0_46] : memref<2x16x48xbf16, #tpu.memory_space<vmem>>, vector<1x16x48xbf16>
    %116 = vector.shape_cast %115 : vector<1x16x48xbf16> to vector<16x48xbf16>
    %117 = arith.truncf %114 : vector<32x16xf32> to vector<32x16xbf16>
    %cst_47 = arith.constant dense<0.000000e+00> : vector<32x48xf32>
    %118 = tpu.matmul %117, %116, %cst_47 {dimension_numbers = #tpu.dot_dimension_numbers<[1], [0], [0], [1], [0, 0, 1, 1], [], []>} : vector<32x16xbf16>, vector<16x48xbf16>, vector<32x48xf32> -> vector<32x48xf32>
    %c1_48 = arith.constant 1 : index
    %c0_49 = arith.constant 0 : index
    %c0_50 = arith.constant 0 : index
    %119 = vector.load %arg7[%c1_48, %c0_49, %c0_50] : memref<2x1x48xf32, #tpu.memory_space<vmem>>, vector<1x1x48xf32>
    %120 = vector.shape_cast %119 : vector<1x1x48xf32> to vector<1x48xf32>
    %121 = vector.broadcast %120 : vector<1x48xf32> to vector<32x48xf32>
    %122 = arith.addf %118, %121 : vector<32x48xf32>
    %123 = vector.extract_strided_slice %122 {offsets = [0, 0], sizes = [32, 16], strides = [1, 1]} : vector<32x48xf32> to vector<32x16xf32>
    %124 = vector.extract_strided_slice %122 {offsets = [0, 16], sizes = [32, 16], strides = [1, 1]} : vector<32x48xf32> to vector<32x16xf32>
    %125 = vector.extract_strided_slice %122 {offsets = [0, 32], sizes = [32, 16], strides = [1, 1]} : vector<32x48xf32> to vector<32x16xf32>
    %126 = vector.extract_strided_slice %124 {offsets = [16, 0], sizes = [16, 16], strides = [1, 1]} : vector<32x16xf32> to vector<16x16xf32>
    %127 = vector.extract_strided_slice %124 {offsets = [0, 0], sizes = [16, 16], strides = [1, 1]} : vector<32x16xf32> to vector<16x16xf32>
    %128 = arith.subf %126, %127 : vector<16x16xf32>
    %129 = vector.extract_strided_slice %125 {offsets = [16, 0], sizes = [16, 16], strides = [1, 1]} : vector<32x16xf32> to vector<16x16xf32>
    %130 = vector.extract_strided_slice %125 {offsets = [0, 0], sizes = [16, 16], strides = [1, 1]} : vector<32x16xf32> to vector<16x16xf32>
    %131 = arith.subf %129, %130 : vector<16x16xf32>
    %132 = vector.extract_strided_slice %125 {offsets = [0, 0], sizes = [16, 16], strides = [1, 1]} : vector<32x16xf32> to vector<16x16xf32>
    %133 = tpu.concatenate %128, %128 in 0 : vector<16x16xf32>, vector<16x16xf32> -> vector<32x16xf32>
    %134 = tpu.concatenate %131, %131 in 0 : vector<16x16xf32>, vector<16x16xf32> -> vector<32x16xf32>
    %135 = tpu.concatenate %132, %132 in 0 : vector<16x16xf32>, vector<16x16xf32> -> vector<32x16xf32>
    %136 = arith.mulf %123, %133 : vector<32x16xf32>
    %137 = arith.truncf %136 : vector<32x16xf32> to vector<32x16xbf16>
    %cst_51 = arith.constant dense<0.000000e+00> : vector<32x16xf32>
    %138 = tpu.matmul %137, %0, %cst_51 {dimension_numbers = #tpu.dot_dimension_numbers<[1], [0], [0], [1], [0, 0, 1, 1], [], []>} : vector<32x16xbf16>, vector<16x16xbf16>, vector<32x16xf32> -> vector<32x16xf32>
    %cst_52 = arith.constant 0.353553385 : f32
    %139 = vector.broadcast %cst_52 : f32 to vector<32x16xf32>
    %140 = arith.mulf %138, %139 : vector<32x16xf32>
    %141 = arith.negf %140 : vector<32x16xf32>
    %142 = math.exp %141 : vector<32x16xf32>
    %cst_53 = arith.constant 1.000000e+00 : f32
    %143 = vector.broadcast %cst_53 : f32 to vector<32x16xf32>
    %144 = arith.addf %143, %142 : vector<32x16xf32>
    %145 = arith.divf %143, %144 : vector<32x16xf32>
    %146 = arith.mulf %145, %134 : vector<32x16xf32>
    %147 = arith.addf %135, %146 : vector<32x16xf32>
    %c1_54 = arith.constant 1 : index
    %c0_55 = arith.constant 0 : index
    %c0_56 = arith.constant 0 : index
    %148 = vector.load %arg8[%c1_54, %c0_55, %c0_56] : memref<2x6x16xf32, #tpu.memory_space<vmem>>, vector<1x6x16xf32>
    %149 = vector.shape_cast %148 : vector<1x6x16xf32> to vector<6x16xf32>
    %150 = vector.extract_strided_slice %149 {offsets = [0, 0], sizes = [1, 16], strides = [1, 1]} : vector<6x16xf32> to vector<1x16xf32>
    %151 = vector.extract_strided_slice %149 {offsets = [1, 0], sizes = [1, 16], strides = [1, 1]} : vector<6x16xf32> to vector<1x16xf32>
    %152 = vector.extract_strided_slice %149 {offsets = [2, 0], sizes = [1, 16], strides = [1, 1]} : vector<6x16xf32> to vector<1x16xf32>
    %153 = vector.extract_strided_slice %149 {offsets = [3, 0], sizes = [1, 16], strides = [1, 1]} : vector<6x16xf32> to vector<1x16xf32>
    %154 = vector.extract_strided_slice %149 {offsets = [4, 0], sizes = [1, 16], strides = [1, 1]} : vector<6x16xf32> to vector<1x16xf32>
    %155 = vector.extract_strided_slice %149 {offsets = [5, 0], sizes = [1, 16], strides = [1, 1]} : vector<6x16xf32> to vector<1x16xf32>
    %c1_57 = arith.constant 1 : index
    %c0_58 = arith.constant 0 : index
    %c0_59 = arith.constant 0 : index
    %156 = vector.load %arg4[%c1_57, %c0_58, %c0_59] : memref<2x16x16xbf16, #tpu.memory_space<vmem>>, vector<1x16x16xbf16>
    %157 = vector.shape_cast %156 : vector<1x16x16xbf16> to vector<16x16xbf16>
    %158 = arith.truncf %147 : vector<32x16xf32> to vector<32x16xbf16>
    %cst_60 = arith.constant dense<0.000000e+00> : vector<32x16xf32>
    %159 = tpu.matmul %158, %157, %cst_60 {dimension_numbers = #tpu.dot_dimension_numbers<[1], [0], [0], [1], [0, 0, 1, 1], [], []>} : vector<32x16xbf16>, vector<16x16xbf16>, vector<32x16xf32> -> vector<32x16xf32>
    %160 = vector.broadcast %150 : vector<1x16xf32> to vector<32x16xf32>
    %161 = arith.addf %159, %160 : vector<32x16xf32>
    %162 = arith.addf %114, %161 : vector<32x16xf32>
    %cst_61 = arith.constant dense<0.000000e+00> : vector<32xf32>
    %163 = vector.multi_reduction <add>, %162, %cst_61 [1] : vector<32x16xf32> to vector<32xf32>
    %164 = vector.shape_cast %163 : vector<32xf32> to vector<32x1xf32>
    %cst_62 = arith.constant 1.600000e+01 : f32
    %165 = vector.broadcast %cst_62 : f32 to vector<32x1xf32>
    %166 = arith.divf %164, %165 : vector<32x1xf32>
    %167 = vector.broadcast %166 : vector<32x1xf32> to vector<32x16xf32>
    %168 = arith.subf %162, %167 : vector<32x16xf32>
    %169 = arith.mulf %168, %168 : vector<32x16xf32>
    %cst_63 = arith.constant dense<0.000000e+00> : vector<32xf32>
    %170 = vector.multi_reduction <add>, %169, %cst_63 [1] : vector<32x16xf32> to vector<32xf32>
    %171 = vector.shape_cast %170 : vector<32xf32> to vector<32x1xf32>
    %cst_64 = arith.constant 1.600000e+01 : f32
    %172 = vector.broadcast %cst_64 : f32 to vector<32x1xf32>
    %173 = arith.divf %171, %172 : vector<32x1xf32>
    %174 = vector.broadcast %166 : vector<32x1xf32> to vector<32x16xf32>
    %175 = arith.subf %162, %174 : vector<32x16xf32>
    %cst_65 = arith.constant 9.99999974E-6 : f32
    %176 = vector.broadcast %cst_65 : f32 to vector<32x1xf32>
    %177 = arith.addf %173, %176 : vector<32x1xf32>
    %178 = math.rsqrt %177 : vector<32x1xf32>
    %179 = vector.broadcast %178 : vector<32x1xf32> to vector<32x16xf32>
    %180 = arith.mulf %175, %179 : vector<32x16xf32>
    %181 = vector.broadcast %151 : vector<1x16xf32> to vector<32x16xf32>
    %182 = arith.mulf %180, %181 : vector<32x16xf32>
    %183 = vector.broadcast %152 : vector<1x16xf32> to vector<32x16xf32>
    %184 = arith.addf %182, %183 : vector<32x16xf32>
    %c1_66 = arith.constant 1 : index
    %c0_67 = arith.constant 0 : index
    %c0_68 = arith.constant 0 : index
    %185 = vector.load %arg5[%c1_66, %c0_67, %c0_68] : memref<2x16x32xbf16, #tpu.memory_space<vmem>>, vector<1x16x32xbf16>
    %186 = vector.shape_cast %185 : vector<1x16x32xbf16> to vector<16x32xbf16>
    %187 = arith.truncf %184 : vector<32x16xf32> to vector<32x16xbf16>
    %cst_69 = arith.constant dense<0.000000e+00> : vector<32x32xf32>
    %188 = tpu.matmul %187, %186, %cst_69 {dimension_numbers = #tpu.dot_dimension_numbers<[1], [0], [0], [1], [0, 0, 1, 1], [], []>} : vector<32x16xbf16>, vector<16x32xbf16>, vector<32x32xf32> -> vector<32x32xf32>
    %c1_70 = arith.constant 1 : index
    %c0_71 = arith.constant 0 : index
    %c0_72 = arith.constant 0 : index
    %189 = vector.load %arg9[%c1_70, %c0_71, %c0_72] : memref<2x1x32xf32, #tpu.memory_space<vmem>>, vector<1x1x32xf32>
    %190 = vector.shape_cast %189 : vector<1x1x32xf32> to vector<1x32xf32>
    %191 = vector.broadcast %190 : vector<1x32xf32> to vector<32x32xf32>
    %192 = arith.addf %188, %191 : vector<32x32xf32>
    %cst_73 = arith.constant 0.000000e+00 : f32
    %193 = vector.broadcast %cst_73 : f32 to vector<32x32xf32>
    %194 = arith.maximumf %192, %193 : vector<32x32xf32>
    %c1_74 = arith.constant 1 : index
    %c0_75 = arith.constant 0 : index
    %c0_76 = arith.constant 0 : index
    %195 = vector.load %arg6[%c1_74, %c0_75, %c0_76] : memref<2x32x16xbf16, #tpu.memory_space<vmem>>, vector<1x32x16xbf16>
    %196 = vector.shape_cast %195 : vector<1x32x16xbf16> to vector<32x16xbf16>
    %197 = arith.truncf %194 : vector<32x32xf32> to vector<32x32xbf16>
    %cst_77 = arith.constant dense<0.000000e+00> : vector<32x16xf32>
    %198 = tpu.matmul %197, %196, %cst_77 {dimension_numbers = #tpu.dot_dimension_numbers<[1], [0], [0], [1], [0, 0, 1, 1], [], []>} : vector<32x32xbf16>, vector<32x16xbf16>, vector<32x16xf32> -> vector<32x16xf32>
    %199 = vector.broadcast %153 : vector<1x16xf32> to vector<32x16xf32>
    %200 = arith.addf %198, %199 : vector<32x16xf32>
    %201 = arith.addf %184, %200 : vector<32x16xf32>
    %cst_78 = arith.constant dense<0.000000e+00> : vector<32xf32>
    %202 = vector.multi_reduction <add>, %201, %cst_78 [1] : vector<32x16xf32> to vector<32xf32>
    %203 = vector.shape_cast %202 : vector<32xf32> to vector<32x1xf32>
    %cst_79 = arith.constant 1.600000e+01 : f32
    %204 = vector.broadcast %cst_79 : f32 to vector<32x1xf32>
    %205 = arith.divf %203, %204 : vector<32x1xf32>
    %206 = vector.broadcast %205 : vector<32x1xf32> to vector<32x16xf32>
    %207 = arith.subf %201, %206 : vector<32x16xf32>
    %208 = arith.mulf %207, %207 : vector<32x16xf32>
    %cst_80 = arith.constant dense<0.000000e+00> : vector<32xf32>
    %209 = vector.multi_reduction <add>, %208, %cst_80 [1] : vector<32x16xf32> to vector<32xf32>
    %210 = vector.shape_cast %209 : vector<32xf32> to vector<32x1xf32>
    %cst_81 = arith.constant 1.600000e+01 : f32
    %211 = vector.broadcast %cst_81 : f32 to vector<32x1xf32>
    %212 = arith.divf %210, %211 : vector<32x1xf32>
    %213 = vector.broadcast %205 : vector<32x1xf32> to vector<32x16xf32>
    %214 = arith.subf %201, %213 : vector<32x16xf32>
    %cst_82 = arith.constant 9.99999974E-6 : f32
    %215 = vector.broadcast %cst_82 : f32 to vector<32x1xf32>
    %216 = arith.addf %212, %215 : vector<32x1xf32>
    %217 = math.rsqrt %216 : vector<32x1xf32>
    %218 = vector.broadcast %217 : vector<32x1xf32> to vector<32x16xf32>
    %219 = arith.mulf %214, %218 : vector<32x16xf32>
    %220 = vector.broadcast %154 : vector<1x16xf32> to vector<32x16xf32>
    %221 = arith.mulf %219, %220 : vector<32x16xf32>
    %222 = vector.broadcast %155 : vector<1x16xf32> to vector<32x16xf32>
    %223 = arith.addf %221, %222 : vector<32x16xf32>
    %c0_83 = arith.constant 0 : index
    %c0_84 = arith.constant 0 : index
    %224 = vector.load %arg13[%c0_83, %c0_84] : memref<2x128xf32, #tpu.memory_space<vmem>>, vector<2x128xf32>
    %225 = vector.extract_strided_slice %224 {offsets = [0, 0], sizes = [1, 128], strides = [1, 1]} : vector<2x128xf32> to vector<1x128xf32>
    %226 = vector.extract_strided_slice %224 {offsets = [1, 0], sizes = [1, 128], strides = [1, 1]} : vector<2x128xf32> to vector<1x128xf32>
    %227 = vector.extract_strided_slice %223 {offsets = [0, 0], sizes = [16, 16], strides = [1, 1]} : vector<32x16xf32> to vector<16x16xf32>
    %228 = vector.extract_strided_slice %223 {offsets = [16, 0], sizes = [16, 16], strides = [1, 1]} : vector<32x16xf32> to vector<16x16xf32>
    %229 = tpu.concatenate %227, %228 in 1 : vector<16x16xf32>, vector<16x16xf32> -> vector<16x32xf32>
    %c0_85 = arith.constant 0 : index
    %c0_86 = arith.constant 0 : index
    %230 = vector.load %arg10[%c0_85, %c0_86] : memref<32x128xbf16, #tpu.memory_space<vmem>>, vector<32x128xbf16>
    %231 = arith.truncf %229 : vector<16x32xf32> to vector<16x32xbf16>
    %cst_87 = arith.constant dense<0.000000e+00> : vector<16x128xf32>
    %232 = tpu.matmul %231, %230, %cst_87 {dimension_numbers = #tpu.dot_dimension_numbers<[1], [0], [0], [1], [0, 0, 1, 1], [], []>} : vector<16x32xbf16>, vector<32x128xbf16>, vector<16x128xf32> -> vector<16x128xf32>
    %233 = vector.broadcast %225 : vector<1x128xf32> to vector<16x128xf32>
    %234 = arith.addf %232, %233 : vector<16x128xf32>
    %c0_88 = arith.constant 0 : index
    %c0_89 = arith.constant 0 : index
    %235 = vector.load %arg11[%c0_88, %c0_89] : memref<32x128xbf16, #tpu.memory_space<vmem>>, vector<32x128xbf16>
    %c0_90 = arith.constant 0 : index
    %c0_91 = arith.constant 0 : index
    %236 = vector.load %arg12[%c0_90, %c0_91] : memref<64x128xbf16, #tpu.memory_space<vmem>>, vector<64x128xbf16>
    %cst_92 = arith.constant 0.000000e+00 : f32
    %237 = vector.broadcast %cst_92 : f32 to vector<2x32xf32>
    %cst_93 = arith.constant 0.000000e+00 : f32
    %238 = vector.broadcast %cst_93 : f32 to vector<2x32xf32>
    %cst_94 = arith.constant 0.000000e+00 : f32
    %239 = vector.broadcast %cst_94 : f32 to vector<2x32xf32>
    %cst_95 = arith.constant 0.000000e+00 : f32
    %240 = vector.broadcast %cst_95 : f32 to vector<2x32xf32>
    %241 = vector.extract_strided_slice %234 {offsets = [0, 0], sizes = [2, 128], strides = [1, 1]} : vector<16x128xf32> to vector<2x128xf32>
    %242 = arith.truncf %237 : vector<2x32xf32> to vector<2x32xbf16>
    %cst_96 = arith.constant dense<0.000000e+00> : vector<2x128xf32>
    %243 = tpu.matmul %242, %235, %cst_96 {dimension_numbers = #tpu.dot_dimension_numbers<[1], [0], [0], [1], [0, 0, 1, 1], [], []>} : vector<2x32xbf16>, vector<32x128xbf16>, vector<2x128xf32> -> vector<2x128xf32>
    %244 = arith.addf %241, %243 : vector<2x128xf32>
    %245 = arith.negf %244 : vector<2x128xf32>
    %246 = math.exp %245 : vector<2x128xf32>
    %cst_97 = arith.constant 1.000000e+00 : f32
    %247 = vector.broadcast %cst_97 : f32 to vector<2x128xf32>
    %248 = arith.addf %247, %246 : vector<2x128xf32>
    %249 = arith.divf %247, %248 : vector<2x128xf32>
    %250 = math.tanh %244 : vector<2x128xf32>
    %251 = vector.extract_strided_slice %249 {offsets = [0, 0], sizes = [2, 32], strides = [1, 1]} : vector<2x128xf32> to vector<2x32xf32>
    %252 = vector.extract_strided_slice %249 {offsets = [0, 32], sizes = [2, 32], strides = [1, 1]} : vector<2x128xf32> to vector<2x32xf32>
    %253 = vector.extract_strided_slice %250 {offsets = [0, 64], sizes = [2, 32], strides = [1, 1]} : vector<2x128xf32> to vector<2x32xf32>
    %254 = vector.extract_strided_slice %249 {offsets = [0, 96], sizes = [2, 32], strides = [1, 1]} : vector<2x128xf32> to vector<2x32xf32>
    %255 = arith.mulf %252, %238 : vector<2x32xf32>
    %256 = arith.mulf %251, %253 : vector<2x32xf32>
    %257 = arith.addf %255, %256 : vector<2x32xf32>
    %258 = math.tanh %257 : vector<2x32xf32>
    %259 = arith.mulf %254, %258 : vector<2x32xf32>
    %260 = tpu.concatenate %259, %239 in 1 : vector<2x32xf32>, vector<2x32xf32> -> vector<2x64xf32>
    %261 = arith.truncf %260 : vector<2x64xf32> to vector<2x64xbf16>
    %cst_98 = arith.constant dense<0.000000e+00> : vector<2x128xf32>
    %262 = tpu.matmul %261, %236, %cst_98 {dimension_numbers = #tpu.dot_dimension_numbers<[1], [0], [0], [1], [0, 0, 1, 1], [], []>} : vector<2x64xbf16>, vector<64x128xbf16>, vector<2x128xf32> -> vector<2x128xf32>
    %263 = vector.broadcast %226 : vector<1x128xf32> to vector<2x128xf32>
    %264 = arith.addf %262, %263 : vector<2x128xf32>
    %265 = arith.negf %264 : vector<2x128xf32>
    %266 = math.exp %265 : vector<2x128xf32>
    %cst_99 = arith.constant 1.000000e+00 : f32
    %267 = vector.broadcast %cst_99 : f32 to vector<2x128xf32>
    %268 = arith.addf %267, %266 : vector<2x128xf32>
    %269 = arith.divf %267, %268 : vector<2x128xf32>
    %270 = math.tanh %264 : vector<2x128xf32>
    %271 = vector.extract_strided_slice %269 {offsets = [0, 0], sizes = [2, 32], strides = [1, 1]} : vector<2x128xf32> to vector<2x32xf32>
    %272 = vector.extract_strided_slice %269 {offsets = [0, 32], sizes = [2, 32], strides = [1, 1]} : vector<2x128xf32> to vector<2x32xf32>
    %273 = vector.extract_strided_slice %270 {offsets = [0, 64], sizes = [2, 32], strides = [1, 1]} : vector<2x128xf32> to vector<2x32xf32>
    %274 = vector.extract_strided_slice %269 {offsets = [0, 96], sizes = [2, 32], strides = [1, 1]} : vector<2x128xf32> to vector<2x32xf32>
    %275 = arith.mulf %272, %240 : vector<2x32xf32>
    %276 = arith.mulf %271, %273 : vector<2x32xf32>
    %277 = arith.addf %275, %276 : vector<2x32xf32>
    %278 = math.tanh %277 : vector<2x32xf32>
    %279 = arith.mulf %274, %278 : vector<2x32xf32>
    %c0_100 = arith.constant 0 : index
    %c0_101 = arith.constant 0 : index
    %280 = vector.load %arg21[%c0_100, %c0_101] : memref<16x32xf32, #tpu.memory_space<vmem>>, vector<2x32xf32>
    tpu.vector_store %arg21[%c0_100, %c0_101], %279 {strides = array<i32>} : memref<16x32xf32, #tpu.memory_space<vmem>>, vector<2x32xf32>,
    %281 = vector.extract_strided_slice %234 {offsets = [2, 0], sizes = [2, 128], strides = [1, 1]} : vector<16x128xf32> to vector<2x128xf32>
    %282 = arith.truncf %259 : vector<2x32xf32> to vector<2x32xbf16>
    %cst_102 = arith.constant dense<0.000000e+00> : vector<2x128xf32>
    %283 = tpu.matmul %282, %235, %cst_102 {dimension_numbers = #tpu.dot_dimension_numbers<[1], [0], [0], [1], [0, 0, 1, 1], [], []>} : vector<2x32xbf16>, vector<32x128xbf16>, vector<2x128xf32> -> vector<2x128xf32>
    %284 = arith.addf %281, %283 : vector<2x128xf32>
    %285 = arith.negf %284 : vector<2x128xf32>
    %286 = math.exp %285 : vector<2x128xf32>
    %cst_103 = arith.constant 1.000000e+00 : f32
    %287 = vector.broadcast %cst_103 : f32 to vector<2x128xf32>
    %288 = arith.addf %287, %286 : vector<2x128xf32>
    %289 = arith.divf %287, %288 : vector<2x128xf32>
    %290 = math.tanh %284 : vector<2x128xf32>
    %291 = vector.extract_strided_slice %289 {offsets = [0, 0], sizes = [2, 32], strides = [1, 1]} : vector<2x128xf32> to vector<2x32xf32>
    %292 = vector.extract_strided_slice %289 {offsets = [0, 32], sizes = [2, 32], strides = [1, 1]} : vector<2x128xf32> to vector<2x32xf32>
    %293 = vector.extract_strided_slice %290 {offsets = [0, 64], sizes = [2, 32], strides = [1, 1]} : vector<2x128xf32> to vector<2x32xf32>
    %294 = vector.extract_strided_slice %289 {offsets = [0, 96], sizes = [2, 32], strides = [1, 1]} : vector<2x128xf32> to vector<2x32xf32>
    %295 = arith.mulf %292, %257 : vector<2x32xf32>
    %296 = arith.mulf %291, %293 : vector<2x32xf32>
    %297 = arith.addf %295, %296 : vector<2x32xf32>
    %298 = math.tanh %297 : vector<2x32xf32>
    %299 = arith.mulf %294, %298 : vector<2x32xf32>
    %300 = tpu.concatenate %299, %279 in 1 : vector<2x32xf32>, vector<2x32xf32> -> vector<2x64xf32>
    %301 = arith.truncf %300 : vector<2x64xf32> to vector<2x64xbf16>
    %cst_104 = arith.constant dense<0.000000e+00> : vector<2x128xf32>
    %302 = tpu.matmul %301, %236, %cst_104 {dimension_numbers = #tpu.dot_dimension_numbers<[1], [0], [0], [1], [0, 0, 1, 1], [], []>} : vector<2x64xbf16>, vector<64x128xbf16>, vector<2x128xf32> -> vector<2x128xf32>
    %303 = vector.broadcast %226 : vector<1x128xf32> to vector<2x128xf32>
    %304 = arith.addf %302, %303 : vector<2x128xf32>
    %305 = arith.negf %304 : vector<2x128xf32>
    %306 = math.exp %305 : vector<2x128xf32>
    %cst_105 = arith.constant 1.000000e+00 : f32
    %307 = vector.broadcast %cst_105 : f32 to vector<2x128xf32>
    %308 = arith.addf %307, %306 : vector<2x128xf32>
    %309 = arith.divf %307, %308 : vector<2x128xf32>
    %310 = math.tanh %304 : vector<2x128xf32>
    %311 = vector.extract_strided_slice %309 {offsets = [0, 0], sizes = [2, 32], strides = [1, 1]} : vector<2x128xf32> to vector<2x32xf32>
    %312 = vector.extract_strided_slice %309 {offsets = [0, 32], sizes = [2, 32], strides = [1, 1]} : vector<2x128xf32> to vector<2x32xf32>
    %313 = vector.extract_strided_slice %310 {offsets = [0, 64], sizes = [2, 32], strides = [1, 1]} : vector<2x128xf32> to vector<2x32xf32>
    %314 = vector.extract_strided_slice %309 {offsets = [0, 96], sizes = [2, 32], strides = [1, 1]} : vector<2x128xf32> to vector<2x32xf32>
    %315 = arith.mulf %312, %277 : vector<2x32xf32>
    %316 = arith.mulf %311, %313 : vector<2x32xf32>
    %317 = arith.addf %315, %316 : vector<2x32xf32>
    %318 = math.tanh %317 : vector<2x32xf32>
    %319 = arith.mulf %314, %318 : vector<2x32xf32>
    %c2 = arith.constant 2 : index
    %c0_106 = arith.constant 0 : index
    %320 = vector.load %arg21[%c2, %c0_106] : memref<16x32xf32, #tpu.memory_space<vmem>>, vector<2x32xf32>
    tpu.vector_store %arg21[%c2, %c0_106], %319 {strides = array<i32>} : memref<16x32xf32, #tpu.memory_space<vmem>>, vector<2x32xf32>,
    %321 = vector.extract_strided_slice %234 {offsets = [4, 0], sizes = [2, 128], strides = [1, 1]} : vector<16x128xf32> to vector<2x128xf32>
    %322 = arith.truncf %299 : vector<2x32xf32> to vector<2x32xbf16>
    %cst_107 = arith.constant dense<0.000000e+00> : vector<2x128xf32>
    %323 = tpu.matmul %322, %235, %cst_107 {dimension_numbers = #tpu.dot_dimension_numbers<[1], [0], [0], [1], [0, 0, 1, 1], [], []>} : vector<2x32xbf16>, vector<32x128xbf16>, vector<2x128xf32> -> vector<2x128xf32>
    %324 = arith.addf %321, %323 : vector<2x128xf32>
    %325 = arith.negf %324 : vector<2x128xf32>
    %326 = math.exp %325 : vector<2x128xf32>
    %cst_108 = arith.constant 1.000000e+00 : f32
    %327 = vector.broadcast %cst_108 : f32 to vector<2x128xf32>
    %328 = arith.addf %327, %326 : vector<2x128xf32>
    %329 = arith.divf %327, %328 : vector<2x128xf32>
    %330 = math.tanh %324 : vector<2x128xf32>
    %331 = vector.extract_strided_slice %329 {offsets = [0, 0], sizes = [2, 32], strides = [1, 1]} : vector<2x128xf32> to vector<2x32xf32>
    %332 = vector.extract_strided_slice %329 {offsets = [0, 32], sizes = [2, 32], strides = [1, 1]} : vector<2x128xf32> to vector<2x32xf32>
    %333 = vector.extract_strided_slice %330 {offsets = [0, 64], sizes = [2, 32], strides = [1, 1]} : vector<2x128xf32> to vector<2x32xf32>
    %334 = vector.extract_strided_slice %329 {offsets = [0, 96], sizes = [2, 32], strides = [1, 1]} : vector<2x128xf32> to vector<2x32xf32>
    %335 = arith.mulf %332, %297 : vector<2x32xf32>
    %336 = arith.mulf %331, %333 : vector<2x32xf32>
    %337 = arith.addf %335, %336 : vector<2x32xf32>
    %338 = math.tanh %337 : vector<2x32xf32>
    %339 = arith.mulf %334, %338 : vector<2x32xf32>
    %340 = tpu.concatenate %339, %319 in 1 : vector<2x32xf32>, vector<2x32xf32> -> vector<2x64xf32>
    %341 = arith.truncf %340 : vector<2x64xf32> to vector<2x64xbf16>
    %cst_109 = arith.constant dense<0.000000e+00> : vector<2x128xf32>
    %342 = tpu.matmul %341, %236, %cst_109 {dimension_numbers = #tpu.dot_dimension_numbers<[1], [0], [0], [1], [0, 0, 1, 1], [], []>} : vector<2x64xbf16>, vector<64x128xbf16>, vector<2x128xf32> -> vector<2x128xf32>
    %343 = vector.broadcast %226 : vector<1x128xf32> to vector<2x128xf32>
    %344 = arith.addf %342, %343 : vector<2x128xf32>
    %345 = arith.negf %344 : vector<2x128xf32>
    %346 = math.exp %345 : vector<2x128xf32>
    %cst_110 = arith.constant 1.000000e+00 : f32
    %347 = vector.broadcast %cst_110 : f32 to vector<2x128xf32>
    %348 = arith.addf %347, %346 : vector<2x128xf32>
    %349 = arith.divf %347, %348 : vector<2x128xf32>
    %350 = math.tanh %344 : vector<2x128xf32>
    %351 = vector.extract_strided_slice %349 {offsets = [0, 0], sizes = [2, 32], strides = [1, 1]} : vector<2x128xf32> to vector<2x32xf32>
    %352 = vector.extract_strided_slice %349 {offsets = [0, 32], sizes = [2, 32], strides = [1, 1]} : vector<2x128xf32> to vector<2x32xf32>
    %353 = vector.extract_strided_slice %350 {offsets = [0, 64], sizes = [2, 32], strides = [1, 1]} : vector<2x128xf32> to vector<2x32xf32>
    %354 = vector.extract_strided_slice %349 {offsets = [0, 96], sizes = [2, 32], strides = [1, 1]} : vector<2x128xf32> to vector<2x32xf32>
    %355 = arith.mulf %352, %317 : vector<2x32xf32>
    %356 = arith.mulf %351, %353 : vector<2x32xf32>
    %357 = arith.addf %355, %356 : vector<2x32xf32>
    %358 = math.tanh %357 : vector<2x32xf32>
    %359 = arith.mulf %354, %358 : vector<2x32xf32>
    %c4 = arith.constant 4 : index
    %c0_111 = arith.constant 0 : index
    %360 = vector.load %arg21[%c4, %c0_111] : memref<16x32xf32, #tpu.memory_space<vmem>>, vector<2x32xf32>
    tpu.vector_store %arg21[%c4, %c0_111], %359 {strides = array<i32>} : memref<16x32xf32, #tpu.memory_space<vmem>>, vector<2x32xf32>,
    %361 = vector.extract_strided_slice %234 {offsets = [6, 0], sizes = [2, 128], strides = [1, 1]} : vector<16x128xf32> to vector<2x128xf32>
    %362 = arith.truncf %339 : vector<2x32xf32> to vector<2x32xbf16>
    %cst_112 = arith.constant dense<0.000000e+00> : vector<2x128xf32>
    %363 = tpu.matmul %362, %235, %cst_112 {dimension_numbers = #tpu.dot_dimension_numbers<[1], [0], [0], [1], [0, 0, 1, 1], [], []>} : vector<2x32xbf16>, vector<32x128xbf16>, vector<2x128xf32> -> vector<2x128xf32>
    %364 = arith.addf %361, %363 : vector<2x128xf32>
    %365 = arith.negf %364 : vector<2x128xf32>
    %366 = math.exp %365 : vector<2x128xf32>
    %cst_113 = arith.constant 1.000000e+00 : f32
    %367 = vector.broadcast %cst_113 : f32 to vector<2x128xf32>
    %368 = arith.addf %367, %366 : vector<2x128xf32>
    %369 = arith.divf %367, %368 : vector<2x128xf32>
    %370 = math.tanh %364 : vector<2x128xf32>
    %371 = vector.extract_strided_slice %369 {offsets = [0, 0], sizes = [2, 32], strides = [1, 1]} : vector<2x128xf32> to vector<2x32xf32>
    %372 = vector.extract_strided_slice %369 {offsets = [0, 32], sizes = [2, 32], strides = [1, 1]} : vector<2x128xf32> to vector<2x32xf32>
    %373 = vector.extract_strided_slice %370 {offsets = [0, 64], sizes = [2, 32], strides = [1, 1]} : vector<2x128xf32> to vector<2x32xf32>
    %374 = vector.extract_strided_slice %369 {offsets = [0, 96], sizes = [2, 32], strides = [1, 1]} : vector<2x128xf32> to vector<2x32xf32>
    %375 = arith.mulf %372, %337 : vector<2x32xf32>
    %376 = arith.mulf %371, %373 : vector<2x32xf32>
    %377 = arith.addf %375, %376 : vector<2x32xf32>
    %378 = math.tanh %377 : vector<2x32xf32>
    %379 = arith.mulf %374, %378 : vector<2x32xf32>
    %380 = tpu.concatenate %379, %359 in 1 : vector<2x32xf32>, vector<2x32xf32> -> vector<2x64xf32>
    %381 = arith.truncf %380 : vector<2x64xf32> to vector<2x64xbf16>
    %cst_114 = arith.constant dense<0.000000e+00> : vector<2x128xf32>
    %382 = tpu.matmul %381, %236, %cst_114 {dimension_numbers = #tpu.dot_dimension_numbers<[1], [0], [0], [1], [0, 0, 1, 1], [], []>} : vector<2x64xbf16>, vector<64x128xbf16>, vector<2x128xf32> -> vector<2x128xf32>
    %383 = vector.broadcast %226 : vector<1x128xf32> to vector<2x128xf32>
    %384 = arith.addf %382, %383 : vector<2x128xf32>
    %385 = arith.negf %384 : vector<2x128xf32>
    %386 = math.exp %385 : vector<2x128xf32>
    %cst_115 = arith.constant 1.000000e+00 : f32
    %387 = vector.broadcast %cst_115 : f32 to vector<2x128xf32>
    %388 = arith.addf %387, %386 : vector<2x128xf32>
    %389 = arith.divf %387, %388 : vector<2x128xf32>
    %390 = math.tanh %384 : vector<2x128xf32>
    %391 = vector.extract_strided_slice %389 {offsets = [0, 0], sizes = [2, 32], strides = [1, 1]} : vector<2x128xf32> to vector<2x32xf32>
    %392 = vector.extract_strided_slice %389 {offsets = [0, 32], sizes = [2, 32], strides = [1, 1]} : vector<2x128xf32> to vector<2x32xf32>
    %393 = vector.extract_strided_slice %390 {offsets = [0, 64], sizes = [2, 32], strides = [1, 1]} : vector<2x128xf32> to vector<2x32xf32>
    %394 = vector.extract_strided_slice %389 {offsets = [0, 96], sizes = [2, 32], strides = [1, 1]} : vector<2x128xf32> to vector<2x32xf32>
    %395 = arith.mulf %392, %357 : vector<2x32xf32>
    %396 = arith.mulf %391, %393 : vector<2x32xf32>
    %397 = arith.addf %395, %396 : vector<2x32xf32>
    %398 = math.tanh %397 : vector<2x32xf32>
    %399 = arith.mulf %394, %398 : vector<2x32xf32>
    %c6 = arith.constant 6 : index
    %c0_116 = arith.constant 0 : index
    %400 = vector.load %arg21[%c6, %c0_116] : memref<16x32xf32, #tpu.memory_space<vmem>>, vector<2x32xf32>
    tpu.vector_store %arg21[%c6, %c0_116], %399 {strides = array<i32>} : memref<16x32xf32, #tpu.memory_space<vmem>>, vector<2x32xf32>,
    %401 = vector.extract_strided_slice %234 {offsets = [8, 0], sizes = [2, 128], strides = [1, 1]} : vector<16x128xf32> to vector<2x128xf32>
    %402 = arith.truncf %379 : vector<2x32xf32> to vector<2x32xbf16>
    %cst_117 = arith.constant dense<0.000000e+00> : vector<2x128xf32>
    %403 = tpu.matmul %402, %235, %cst_117 {dimension_numbers = #tpu.dot_dimension_numbers<[1], [0], [0], [1], [0, 0, 1, 1], [], []>} : vector<2x32xbf16>, vector<32x128xbf16>, vector<2x128xf32> -> vector<2x128xf32>
    %404 = arith.addf %401, %403 : vector<2x128xf32>
    %405 = arith.negf %404 : vector<2x128xf32>
    %406 = math.exp %405 : vector<2x128xf32>
    %cst_118 = arith.constant 1.000000e+00 : f32
    %407 = vector.broadcast %cst_118 : f32 to vector<2x128xf32>
    %408 = arith.addf %407, %406 : vector<2x128xf32>
    %409 = arith.divf %407, %408 : vector<2x128xf32>
    %410 = math.tanh %404 : vector<2x128xf32>
    %411 = vector.extract_strided_slice %409 {offsets = [0, 0], sizes = [2, 32], strides = [1, 1]} : vector<2x128xf32> to vector<2x32xf32>
    %412 = vector.extract_strided_slice %409 {offsets = [0, 32], sizes = [2, 32], strides = [1, 1]} : vector<2x128xf32> to vector<2x32xf32>
    %413 = vector.extract_strided_slice %410 {offsets = [0, 64], sizes = [2, 32], strides = [1, 1]} : vector<2x128xf32> to vector<2x32xf32>
    %414 = vector.extract_strided_slice %409 {offsets = [0, 96], sizes = [2, 32], strides = [1, 1]} : vector<2x128xf32> to vector<2x32xf32>
    %415 = arith.mulf %412, %377 : vector<2x32xf32>
    %416 = arith.mulf %411, %413 : vector<2x32xf32>
    %417 = arith.addf %415, %416 : vector<2x32xf32>
    %418 = math.tanh %417 : vector<2x32xf32>
    %419 = arith.mulf %414, %418 : vector<2x32xf32>
    %420 = tpu.concatenate %419, %399 in 1 : vector<2x32xf32>, vector<2x32xf32> -> vector<2x64xf32>
    %421 = arith.truncf %420 : vector<2x64xf32> to vector<2x64xbf16>
    %cst_119 = arith.constant dense<0.000000e+00> : vector<2x128xf32>
    %422 = tpu.matmul %421, %236, %cst_119 {dimension_numbers = #tpu.dot_dimension_numbers<[1], [0], [0], [1], [0, 0, 1, 1], [], []>} : vector<2x64xbf16>, vector<64x128xbf16>, vector<2x128xf32> -> vector<2x128xf32>
    %423 = vector.broadcast %226 : vector<1x128xf32> to vector<2x128xf32>
    %424 = arith.addf %422, %423 : vector<2x128xf32>
    %425 = arith.negf %424 : vector<2x128xf32>
    %426 = math.exp %425 : vector<2x128xf32>
    %cst_120 = arith.constant 1.000000e+00 : f32
    %427 = vector.broadcast %cst_120 : f32 to vector<2x128xf32>
    %428 = arith.addf %427, %426 : vector<2x128xf32>
    %429 = arith.divf %427, %428 : vector<2x128xf32>
    %430 = math.tanh %424 : vector<2x128xf32>
    %431 = vector.extract_strided_slice %429 {offsets = [0, 0], sizes = [2, 32], strides = [1, 1]} : vector<2x128xf32> to vector<2x32xf32>
    %432 = vector.extract_strided_slice %429 {offsets = [0, 32], sizes = [2, 32], strides = [1, 1]} : vector<2x128xf32> to vector<2x32xf32>
    %433 = vector.extract_strided_slice %430 {offsets = [0, 64], sizes = [2, 32], strides = [1, 1]} : vector<2x128xf32> to vector<2x32xf32>
    %434 = vector.extract_strided_slice %429 {offsets = [0, 96], sizes = [2, 32], strides = [1, 1]} : vector<2x128xf32> to vector<2x32xf32>
    %435 = arith.mulf %432, %397 : vector<2x32xf32>
    %436 = arith.mulf %431, %433 : vector<2x32xf32>
    %437 = arith.addf %435, %436 : vector<2x32xf32>
    %438 = math.tanh %437 : vector<2x32xf32>
    %439 = arith.mulf %434, %438 : vector<2x32xf32>
    %c8 = arith.constant 8 : index
    %c0_121 = arith.constant 0 : index
    %440 = vector.load %arg21[%c8, %c0_121] : memref<16x32xf32, #tpu.memory_space<vmem>>, vector<2x32xf32>
    tpu.vector_store %arg21[%c8, %c0_121], %439 {strides = array<i32>} : memref<16x32xf32, #tpu.memory_space<vmem>>, vector<2x32xf32>,
    %441 = vector.extract_strided_slice %234 {offsets = [10, 0], sizes = [2, 128], strides = [1, 1]} : vector<16x128xf32> to vector<2x128xf32>
    %442 = arith.truncf %419 : vector<2x32xf32> to vector<2x32xbf16>
    %cst_122 = arith.constant dense<0.000000e+00> : vector<2x128xf32>
    %443 = tpu.matmul %442, %235, %cst_122 {dimension_numbers = #tpu.dot_dimension_numbers<[1], [0], [0], [1], [0, 0, 1, 1], [], []>} : vector<2x32xbf16>, vector<32x128xbf16>, vector<2x128xf32> -> vector<2x128xf32>
    %444 = arith.addf %441, %443 : vector<2x128xf32>
    %445 = arith.negf %444 : vector<2x128xf32>
    %446 = math.exp %445 : vector<2x128xf32>
    %cst_123 = arith.constant 1.000000e+00 : f32
    %447 = vector.broadcast %cst_123 : f32 to vector<2x128xf32>
    %448 = arith.addf %447, %446 : vector<2x128xf32>
    %449 = arith.divf %447, %448 : vector<2x128xf32>
    %450 = math.tanh %444 : vector<2x128xf32>
    %451 = vector.extract_strided_slice %449 {offsets = [0, 0], sizes = [2, 32], strides = [1, 1]} : vector<2x128xf32> to vector<2x32xf32>
    %452 = vector.extract_strided_slice %449 {offsets = [0, 32], sizes = [2, 32], strides = [1, 1]} : vector<2x128xf32> to vector<2x32xf32>
    %453 = vector.extract_strided_slice %450 {offsets = [0, 64], sizes = [2, 32], strides = [1, 1]} : vector<2x128xf32> to vector<2x32xf32>
    %454 = vector.extract_strided_slice %449 {offsets = [0, 96], sizes = [2, 32], strides = [1, 1]} : vector<2x128xf32> to vector<2x32xf32>
    %455 = arith.mulf %452, %417 : vector<2x32xf32>
    %456 = arith.mulf %451, %453 : vector<2x32xf32>
    %457 = arith.addf %455, %456 : vector<2x32xf32>
    %458 = math.tanh %457 : vector<2x32xf32>
    %459 = arith.mulf %454, %458 : vector<2x32xf32>
    %460 = tpu.concatenate %459, %439 in 1 : vector<2x32xf32>, vector<2x32xf32> -> vector<2x64xf32>
    %461 = arith.truncf %460 : vector<2x64xf32> to vector<2x64xbf16>
    %cst_124 = arith.constant dense<0.000000e+00> : vector<2x128xf32>
    %462 = tpu.matmul %461, %236, %cst_124 {dimension_numbers = #tpu.dot_dimension_numbers<[1], [0], [0], [1], [0, 0, 1, 1], [], []>} : vector<2x64xbf16>, vector<64x128xbf16>, vector<2x128xf32> -> vector<2x128xf32>
    %463 = vector.broadcast %226 : vector<1x128xf32> to vector<2x128xf32>
    %464 = arith.addf %462, %463 : vector<2x128xf32>
    %465 = arith.negf %464 : vector<2x128xf32>
    %466 = math.exp %465 : vector<2x128xf32>
    %cst_125 = arith.constant 1.000000e+00 : f32
    %467 = vector.broadcast %cst_125 : f32 to vector<2x128xf32>
    %468 = arith.addf %467, %466 : vector<2x128xf32>
    %469 = arith.divf %467, %468 : vector<2x128xf32>
    %470 = math.tanh %464 : vector<2x128xf32>
    %471 = vector.extract_strided_slice %469 {offsets = [0, 0], sizes = [2, 32], strides = [1, 1]} : vector<2x128xf32> to vector<2x32xf32>
    %472 = vector.extract_strided_slice %469 {offsets = [0, 32], sizes = [2, 32], strides = [1, 1]} : vector<2x128xf32> to vector<2x32xf32>
    %473 = vector.extract_strided_slice %470 {offsets = [0, 64], sizes = [2, 32], strides = [1, 1]} : vector<2x128xf32> to vector<2x32xf32>
    %474 = vector.extract_strided_slice %469 {offsets = [0, 96], sizes = [2, 32], strides = [1, 1]} : vector<2x128xf32> to vector<2x32xf32>
    %475 = arith.mulf %472, %437 : vector<2x32xf32>
    %476 = arith.mulf %471, %473 : vector<2x32xf32>
    %477 = arith.addf %475, %476 : vector<2x32xf32>
    %478 = math.tanh %477 : vector<2x32xf32>
    %479 = arith.mulf %474, %478 : vector<2x32xf32>
    %c10 = arith.constant 10 : index
    %c0_126 = arith.constant 0 : index
    %480 = vector.load %arg21[%c10, %c0_126] : memref<16x32xf32, #tpu.memory_space<vmem>>, vector<2x32xf32>
    tpu.vector_store %arg21[%c10, %c0_126], %479 {strides = array<i32>} : memref<16x32xf32, #tpu.memory_space<vmem>>, vector<2x32xf32>,
    %481 = vector.extract_strided_slice %234 {offsets = [12, 0], sizes = [2, 128], strides = [1, 1]} : vector<16x128xf32> to vector<2x128xf32>
    %482 = arith.truncf %459 : vector<2x32xf32> to vector<2x32xbf16>
    %cst_127 = arith.constant dense<0.000000e+00> : vector<2x128xf32>
    %483 = tpu.matmul %482, %235, %cst_127 {dimension_numbers = #tpu.dot_dimension_numbers<[1], [0], [0], [1], [0, 0, 1, 1], [], []>} : vector<2x32xbf16>, vector<32x128xbf16>, vector<2x128xf32> -> vector<2x128xf32>
    %484 = arith.addf %481, %483 : vector<2x128xf32>
    %485 = arith.negf %484 : vector<2x128xf32>
    %486 = math.exp %485 : vector<2x128xf32>
    %cst_128 = arith.constant 1.000000e+00 : f32
    %487 = vector.broadcast %cst_128 : f32 to vector<2x128xf32>
    %488 = arith.addf %487, %486 : vector<2x128xf32>
    %489 = arith.divf %487, %488 : vector<2x128xf32>
    %490 = math.tanh %484 : vector<2x128xf32>
    %491 = vector.extract_strided_slice %489 {offsets = [0, 0], sizes = [2, 32], strides = [1, 1]} : vector<2x128xf32> to vector<2x32xf32>
    %492 = vector.extract_strided_slice %489 {offsets = [0, 32], sizes = [2, 32], strides = [1, 1]} : vector<2x128xf32> to vector<2x32xf32>
    %493 = vector.extract_strided_slice %490 {offsets = [0, 64], sizes = [2, 32], strides = [1, 1]} : vector<2x128xf32> to vector<2x32xf32>
    %494 = vector.extract_strided_slice %489 {offsets = [0, 96], sizes = [2, 32], strides = [1, 1]} : vector<2x128xf32> to vector<2x32xf32>
    %495 = arith.mulf %492, %457 : vector<2x32xf32>
    %496 = arith.mulf %491, %493 : vector<2x32xf32>
    %497 = arith.addf %495, %496 : vector<2x32xf32>
    %498 = math.tanh %497 : vector<2x32xf32>
    %499 = arith.mulf %494, %498 : vector<2x32xf32>
    %500 = tpu.concatenate %499, %479 in 1 : vector<2x32xf32>, vector<2x32xf32> -> vector<2x64xf32>
    %501 = arith.truncf %500 : vector<2x64xf32> to vector<2x64xbf16>
    %cst_129 = arith.constant dense<0.000000e+00> : vector<2x128xf32>
    %502 = tpu.matmul %501, %236, %cst_129 {dimension_numbers = #tpu.dot_dimension_numbers<[1], [0], [0], [1], [0, 0, 1, 1], [], []>} : vector<2x64xbf16>, vector<64x128xbf16>, vector<2x128xf32> -> vector<2x128xf32>
    %503 = vector.broadcast %226 : vector<1x128xf32> to vector<2x128xf32>
    %504 = arith.addf %502, %503 : vector<2x128xf32>
    %505 = arith.negf %504 : vector<2x128xf32>
    %506 = math.exp %505 : vector<2x128xf32>
    %cst_130 = arith.constant 1.000000e+00 : f32
    %507 = vector.broadcast %cst_130 : f32 to vector<2x128xf32>
    %508 = arith.addf %507, %506 : vector<2x128xf32>
    %509 = arith.divf %507, %508 : vector<2x128xf32>
    %510 = math.tanh %504 : vector<2x128xf32>
    %511 = vector.extract_strided_slice %509 {offsets = [0, 0], sizes = [2, 32], strides = [1, 1]} : vector<2x128xf32> to vector<2x32xf32>
    %512 = vector.extract_strided_slice %509 {offsets = [0, 32], sizes = [2, 32], strides = [1, 1]} : vector<2x128xf32> to vector<2x32xf32>
    %513 = vector.extract_strided_slice %510 {offsets = [0, 64], sizes = [2, 32], strides = [1, 1]} : vector<2x128xf32> to vector<2x32xf32>
    %514 = vector.extract_strided_slice %509 {offsets = [0, 96], sizes = [2, 32], strides = [1, 1]} : vector<2x128xf32> to vector<2x32xf32>
    %515 = arith.mulf %512, %477 : vector<2x32xf32>
    %516 = arith.mulf %511, %513 : vector<2x32xf32>
    %517 = arith.addf %515, %516 : vector<2x32xf32>
    %518 = math.tanh %517 : vector<2x32xf32>
    %519 = arith.mulf %514, %518 : vector<2x32xf32>
    %c12 = arith.constant 12 : index
    %c0_131 = arith.constant 0 : index
    %520 = vector.load %arg21[%c12, %c0_131] : memref<16x32xf32, #tpu.memory_space<vmem>>, vector<2x32xf32>
    tpu.vector_store %arg21[%c12, %c0_131], %519 {strides = array<i32>} : memref<16x32xf32, #tpu.memory_space<vmem>>, vector<2x32xf32>,
    %521 = vector.extract_strided_slice %234 {offsets = [14, 0], sizes = [2, 128], strides = [1, 1]} : vector<16x128xf32> to vector<2x128xf32>
    %522 = arith.truncf %499 : vector<2x32xf32> to vector<2x32xbf16>
    %cst_132 = arith.constant dense<0.000000e+00> : vector<2x128xf32>
    %523 = tpu.matmul %522, %235, %cst_132 {dimension_numbers = #tpu.dot_dimension_numbers<[1], [0], [0], [1], [0, 0, 1, 1], [], []>} : vector<2x32xbf16>, vector<32x128xbf16>, vector<2x128xf32> -> vector<2x128xf32>
    %524 = arith.addf %521, %523 : vector<2x128xf32>
    %525 = arith.negf %524 : vector<2x128xf32>
    %526 = math.exp %525 : vector<2x128xf32>
    %cst_133 = arith.constant 1.000000e+00 : f32
    %527 = vector.broadcast %cst_133 : f32 to vector<2x128xf32>
    %528 = arith.addf %527, %526 : vector<2x128xf32>
    %529 = arith.divf %527, %528 : vector<2x128xf32>
    %530 = math.tanh %524 : vector<2x128xf32>
    %531 = vector.extract_strided_slice %529 {offsets = [0, 0], sizes = [2, 32], strides = [1, 1]} : vector<2x128xf32> to vector<2x32xf32>
    %532 = vector.extract_strided_slice %529 {offsets = [0, 32], sizes = [2, 32], strides = [1, 1]} : vector<2x128xf32> to vector<2x32xf32>
    %533 = vector.extract_strided_slice %530 {offsets = [0, 64], sizes = [2, 32], strides = [1, 1]} : vector<2x128xf32> to vector<2x32xf32>
    %534 = vector.extract_strided_slice %529 {offsets = [0, 96], sizes = [2, 32], strides = [1, 1]} : vector<2x128xf32> to vector<2x32xf32>
    %535 = arith.mulf %532, %497 : vector<2x32xf32>
    %536 = arith.mulf %531, %533 : vector<2x32xf32>
    %537 = arith.addf %535, %536 : vector<2x32xf32>
    %538 = math.tanh %537 : vector<2x32xf32>
    %539 = arith.mulf %534, %538 : vector<2x32xf32>
    %540 = tpu.concatenate %539, %519 in 1 : vector<2x32xf32>, vector<2x32xf32> -> vector<2x64xf32>
    %541 = arith.truncf %540 : vector<2x64xf32> to vector<2x64xbf16>
    %cst_134 = arith.constant dense<0.000000e+00> : vector<2x128xf32>
    %542 = tpu.matmul %541, %236, %cst_134 {dimension_numbers = #tpu.dot_dimension_numbers<[1], [0], [0], [1], [0, 0, 1, 1], [], []>} : vector<2x64xbf16>, vector<64x128xbf16>, vector<2x128xf32> -> vector<2x128xf32>
    %543 = vector.broadcast %226 : vector<1x128xf32> to vector<2x128xf32>
    %544 = arith.addf %542, %543 : vector<2x128xf32>
    %545 = arith.negf %544 : vector<2x128xf32>
    %546 = math.exp %545 : vector<2x128xf32>
    %cst_135 = arith.constant 1.000000e+00 : f32
    %547 = vector.broadcast %cst_135 : f32 to vector<2x128xf32>
    %548 = arith.addf %547, %546 : vector<2x128xf32>
    %549 = arith.divf %547, %548 : vector<2x128xf32>
    %550 = math.tanh %544 : vector<2x128xf32>
    %551 = vector.extract_strided_slice %549 {offsets = [0, 0], sizes = [2, 32], strides = [1, 1]} : vector<2x128xf32> to vector<2x32xf32>
    %552 = vector.extract_strided_slice %549 {offsets = [0, 32], sizes = [2, 32], strides = [1, 1]} : vector<2x128xf32> to vector<2x32xf32>
    %553 = vector.extract_strided_slice %550 {offsets = [0, 64], sizes = [2, 32], strides = [1, 1]} : vector<2x128xf32> to vector<2x32xf32>
    %554 = vector.extract_strided_slice %549 {offsets = [0, 96], sizes = [2, 32], strides = [1, 1]} : vector<2x128xf32> to vector<2x32xf32>
    %555 = arith.mulf %552, %517 : vector<2x32xf32>
    %556 = arith.mulf %551, %553 : vector<2x32xf32>
    %557 = arith.addf %555, %556 : vector<2x32xf32>
    %558 = math.tanh %557 : vector<2x32xf32>
    %559 = arith.mulf %554, %558 : vector<2x32xf32>
    %c14 = arith.constant 14 : index
    %c0_136 = arith.constant 0 : index
    %560 = vector.load %arg21[%c14, %c0_136] : memref<16x32xf32, #tpu.memory_space<vmem>>, vector<2x32xf32>
    tpu.vector_store %arg21[%c14, %c0_136], %559 {strides = array<i32>} : memref<16x32xf32, #tpu.memory_space<vmem>>, vector<2x32xf32>,
    %c0_137 = arith.constant 0 : index
    %c0_138 = arith.constant 0 : index
    %561 = vector.load %arg21[%c0_137, %c0_138] : memref<16x32xf32, #tpu.memory_space<vmem>>, vector<16x32xf32>
    %cst_139 = arith.constant 0.000000e+00 : f32
    %562 = vector.broadcast %cst_139 : f32 to vector<16x32xf32>
    %563 = arith.maximumf %561, %562 : vector<16x32xf32>
    %c0_140 = arith.constant 0 : index
    %c0_141 = arith.constant 0 : index
    %564 = vector.load %arg14[%c0_140, %c0_141] : memref<32x16xbf16, #tpu.memory_space<vmem>>, vector<32x16xbf16>
    %565 = arith.truncf %563 : vector<16x32xf32> to vector<16x32xbf16>
    %cst_142 = arith.constant dense<0.000000e+00> : vector<16x16xf32>
    %566 = tpu.matmul %565, %564, %cst_142 {dimension_numbers = #tpu.dot_dimension_numbers<[1], [0], [0], [1], [0, 0, 1, 1], [], []>} : vector<16x32xbf16>, vector<32x16xbf16>, vector<16x16xf32> -> vector<16x16xf32>
    %c0_143 = arith.constant 0 : index
    %c0_144 = arith.constant 0 : index
    %567 = vector.load %arg15[%c0_143, %c0_144] : memref<1x16xf32, #tpu.memory_space<vmem>>, vector<1x16xf32>
    %568 = vector.broadcast %567 : vector<1x16xf32> to vector<16x16xf32>
    %569 = arith.addf %566, %568 : vector<16x16xf32>
    %cst_145 = arith.constant 0.000000e+00 : f32
    %570 = vector.broadcast %cst_145 : f32 to vector<16x16xf32>
    %571 = arith.maximumf %569, %570 : vector<16x16xf32>
    %c0_146 = arith.constant 0 : index
    %c0_147 = arith.constant 0 : index
    %572 = vector.load %arg16[%c0_146, %c0_147] : memref<16x128xbf16, #tpu.memory_space<vmem>>, vector<16x128xbf16>
    %573 = arith.truncf %571 : vector<16x16xf32> to vector<16x16xbf16>
    %cst_148 = arith.constant dense<0.000000e+00> : vector<16x128xf32>
    %574 = tpu.matmul %573, %572, %cst_148 {dimension_numbers = #tpu.dot_dimension_numbers<[1], [0], [0], [1], [0, 0, 1, 1], [], []>} : vector<16x16xbf16>, vector<16x128xbf16>, vector<16x128xf32> -> vector<16x128xf32>
    %c0_149 = arith.constant 0 : index
    %c0_150 = arith.constant 0 : index
    %575 = vector.load %arg17[%c0_149, %c0_150] : memref<1x128xf32, #tpu.memory_space<vmem>>, vector<1x128xf32>
    %576 = vector.broadcast %575 : vector<1x128xf32> to vector<16x128xf32>
    %577 = arith.addf %574, %576 : vector<16x128xf32>
    %c0_151 = arith.constant 0 : index
    %c0_152 = arith.constant 0 : index
    %578 = vector.load %arg18[%c0_151, %c0_152] : memref<16x128xf32, #tpu.memory_space<vmem>>, vector<16x128xf32>
    tpu.vector_store %arg18[%c0_151, %c0_152], %577 {strides = array<i32>} : memref<16x128xf32, #tpu.memory_space<vmem>>, vector<16x128xf32>,
    %c0_153 = arith.constant 0 : index
    %c0_154 = arith.constant 0 : index
    %c0_155 = arith.constant 0 : index
    %579 = vector.load %arg19[%c0_153, %c0_154, %c0_155] : memref<2x2x32xf32, #tpu.memory_space<vmem>>, vector<1x2x32xf32>
    %580 = vector.shape_cast %579 : vector<1x2x32xf32> to vector<2x32xf32>
    %581 = vector.shape_cast %539 : vector<2x32xf32> to vector<1x2x32xf32>
    tpu.vector_store %arg19[%c0_153, %c0_154, %c0_155], %581 {strides = array<i32>} : memref<2x2x32xf32, #tpu.memory_space<vmem>>, vector<1x2x32xf32>,
    %c1_156 = arith.constant 1 : index
    %c0_157 = arith.constant 0 : index
    %c0_158 = arith.constant 0 : index
    %582 = vector.load %arg19[%c1_156, %c0_157, %c0_158] : memref<2x2x32xf32, #tpu.memory_space<vmem>>, vector<1x2x32xf32>
    %583 = vector.shape_cast %582 : vector<1x2x32xf32> to vector<2x32xf32>
    %584 = vector.shape_cast %559 : vector<2x32xf32> to vector<1x2x32xf32>
    tpu.vector_store %arg19[%c1_156, %c0_157, %c0_158], %584 {strides = array<i32>} : memref<2x2x32xf32, #tpu.memory_space<vmem>>, vector<1x2x32xf32>,
    %c0_159 = arith.constant 0 : index
    %c0_160 = arith.constant 0 : index
    %c0_161 = arith.constant 0 : index
    %585 = vector.load %arg20[%c0_159, %c0_160, %c0_161] : memref<2x2x32xf32, #tpu.memory_space<vmem>>, vector<1x2x32xf32>
    %586 = vector.shape_cast %585 : vector<1x2x32xf32> to vector<2x32xf32>
    %587 = vector.shape_cast %537 : vector<2x32xf32> to vector<1x2x32xf32>
    tpu.vector_store %arg20[%c0_159, %c0_160, %c0_161], %587 {strides = array<i32>} : memref<2x2x32xf32, #tpu.memory_space<vmem>>, vector<1x2x32xf32>,
    %c1_162 = arith.constant 1 : index
    %c0_163 = arith.constant 0 : index
    %c0_164 = arith.constant 0 : index
    %588 = vector.load %arg20[%c1_162, %c0_163, %c0_164] : memref<2x2x32xf32, #tpu.memory_space<vmem>>, vector<1x2x32xf32>
    %589 = vector.shape_cast %588 : vector<1x2x32xf32> to vector<2x32xf32>
    %590 = vector.shape_cast %557 : vector<2x32xf32> to vector<1x2x32xf32>
    tpu.vector_store %arg20[%c1_162, %c0_163, %c0_164], %590 {strides = array<i32>} : memref<2x2x32xf32, #tpu.memory_space<vmem>>, vector<1x2x32xf32>,
    return
  }
}

</mosaic_0001>

<bundles_post_ra>
// kernel: transformer_lstm_forward.1
= control target key start
LH: loop header
LB: loop body
LE: loop exit
PB: predicated region body
PF: predicated region fallthrough
CT: control target
= control target key end

     0   :  { %s4517_s0 = inlined_call_operand.vmem [shape: bf16[32,42], index: 0, kind: input, shape index: {}]   ;;  %s4518_s1 = inlined_call_operand.vmem [shape: bf16[42,16], index: 1, kind: input, shape index: {}]   ;;  %s4519_s2 = inlined_call_operand.vmem [shape: bf16[16,16], index: 2, kind: input, shape index: {}]   ;;  %s4520_s3 = inlined_call_operand.vmem [shape: bf16[2,16,48], index: 3, kind: input, shape index: {}]   ;;  %s4521_s4 = inlined_call_operand.vmem [shape: bf16[2,16,16], index: 4, kind: input, shape index: {}]   ;;  %s4522_s5 = inlined_call_operand.vmem [shape: bf16[2,16,32], index: 5, kind: input, shape index: {}]   ;;  %s4523_s6 = inlined_call_operand.vmem [shape: bf16[2,32,16], index: 6, kind: input, shape index: {}]   ;;  %s4524_s7 = inlined_call_operand.vmem [shape: f32[2,1,48], index: 7, kind: input, shape index: {}]   ;;  %s4525_s8 = inlined_call_operand.vmem [shape: f32[2,6,16], index: 8, kind: input, shape index: {}]   ;;  %s4526_s9 = inlined_call_operand.vmem [shape: f32[2,1,32], index: 9, kind: input, shape index: {}]   ;;  %s4527_s10 = inlined_call_operand.vmem [shape: bf16[32,128], index: 10, kind: input, shape index: {}]   ;;  %s4528_s11 = inlined_call_operand.vmem [shape: bf16[32,128], index: 11, kind: input, shape index: {}]   ;;  %s4529_s12 = inlined_call_operand.vmem [shape: bf16[64,128], index: 12, kind: input, shape index: {}]   ;;  %s4530_s13 = inlined_call_operand.vmem [shape: f32[2,128], index: 13, kind: input, shape index: {}]   ;;  %s4531_s14 = inlined_call_operand.vmem [shape: bf16[32,16], index: 14, kind: input, shape index: {}]   ;;  %s4532_s15 = inlined_call_operand.vmem [shape: f32[1,16], index: 15, kind: input, shape index: {}]   ;;  %s4533_s16 = inlined_call_operand.vmem [shape: bf16[16,128], index: 16, kind: input, shape index: {}]   ;;  %s4534_s17 = inlined_call_operand.vmem [shape: f32[1,128], index: 17, kind: input, shape index: {}]   ;;  %s4535_s18 = inlined_call_operand.vmem [shape: f32[16,128], index: 18, kind: output, shape index: {0}]   ;;  %s4536_s19 = inlined_call_operand.hbm [shape: f32[2,2,32], index: 19, kind: output, shape index: {1}]   ;;  %s4537_s20 = inlined_call_operand.hbm [shape: f32[2,2,32], index: 20, kind: output, shape index: {2}]  }
   0x1   :  { %4542 = sst [smem:[#allocation9_spill]] %s4517_s0 }
   0x2   :  { %4543 = sst [smem:[#allocation10_spill]] %s4518_s1 }
   0x3   :  { %4544 = sst [smem:[#allocation11_spill]] %s4519_s2 }
   0x4   :  { %4545 = sst [smem:[#allocation12_spill]] %s4520_s3 }
   0x5   :  { %4546 = sst [smem:[#allocation13_spill]] %s4521_s4 }
   0x6   :  { %26 = vsyncpa [#allocation4], 0  ;;  %s4547_s23 = sld [smem:[#allocation10_spill]]  ;;  %vm111_vm0 = vcmask 1044480   ;;  %vm104_vm1 = vcmask 343040   ;;  %s4548_s28 = sld [smem:[#allocation9_spill]] }
   0xc   :  { %v3420_v0 = vld [vmem:[%s4547_s23] sm:$0xff]   ;;  %v3421_v1 = vld [vmem:[%s4547_s23 + $0x8] sm:$0xff]   ;;  %v3422_v2 = vld [vmem:[%s4547_s23 + $0x10] sm:$0x1f]  }
   0xd   :  { %3147 = vmatprep.subr.bf16.mxu0 %v3420_v0  ;;  %v3423_v3 = vld [vmem:[%s4548_s28] sm:$0xff]   ;;  %v113_v4 = vsel %vm111_vm0, %v3422_v2, 0  ;;  %v3424_v5 = vld [vmem:[%s4548_s28 + $0x8] sm:$0xff]  }
   0xe   :  { %3148 = vmatpush3.bf16.msra.mxu0 %v3420_v0  ;;  %3153 = vmatprep.mubr.msk.bf16.mxu0 %vm104_vm1, %v3423_v3 }
   0xf   :  { %3149 = vmatprep.subr.bf16.mxu0 %v3421_v1 }
  0x12   :  { %3150 = vmatpush3.bf16.msra.mxu0 %v3421_v1 }
  0x13   :  { %3403 = vmatprep.subr.msk.bf16.mxu0 %vm111_vm0, %v3422_v2 }
  0x16   :  { %3152 = vmatpush3.bf16.msra.mxu0 %v113_v4 }
  0x19   :  { %3154 = vmatmul.mubr.msk.bf16.vlgmr.msra.gmra.mrb[0].mxu0 %vm104_vm1, %v3424_v5 }
  0x1a   :  { %27 = vsyncpa [#allocation6], 0  ;;  %s4549_s21 = sld [smem:[#allocation12_spill]]  ;;  %vm185_vm2 = vcmask 130048   ;;  %s4550_s23 = sld [smem:[#allocation11_spill]]  ;;  %vm623_vm3 = vcmask 261120  }
  0x1b   :  { %v2935_v18 = vld [vmem:[%s4524_s7] ss:$0 sm:$0xff]  ;;  %s3688_s25 = smov 96   ;;  %s3689_s3 = smov 112   ;;  %vm3692_vm4 = vmmov 0   ;;  %vm1534_vm5 = vcmask 523264  }
  0x1c   :  { %s4551_s28 = sld [smem:[#allocation13_spill]]  ;;  %s3690_s4 = smov 32   ;;  %vm2877_vm6 = vcmask 261126   ;;  %vm1606_vm7 = vcmask 254976  }
  0x20   :  { %v3425_v6 = vld [vmem:[%s4549_s21] sm:$0xff]  }
  0x21   :  { %3157 = vmatprep.subr.bf16.mxu1 %v3425_v6  ;;  %v3847_v17 = vld [vmem:[%s4550_s23] sm:$0xff]  }
  0x22   :  { %3158 = vmatpush3.bf16.msra.mxu1 %v3425_v6  ;;  %v3427_v59 = vld [vmem:[%s4551_s28] sm:$0xff]  }
  0x23   :  { %3163 = vmatprep.subr.bf16.mxu1 %v3847_v17  ;;  %3169 = vmatprep.subr.bf16.mxu0 %v3427_v59 }
  0x24   :  { %3170 = vmatpush3.bf16.msra.mxu0 %v3427_v59 }
  0xec   :  { %v3822_v7 = vpop.f32.mrb[0].mxu0 }
  0xed   :  { %v3824_v8 = vpop.f32.mrb[1].mxu0  ;;  %v166_v14 = vmax.f32 %v3822_v7, 0.0 }
  0xee   :  { %v3826_v9 = vpop.f32.mrb[2].mxu0  ;;  %v164_v12 = vmax.f32 %v3824_v8, 0.0 }
  0xef   :  { %v167_v10 = vmax.f32 %v3826_v9, 0.0  ;;  %v3829_v11 = vpop.f32.mrb[3].mxu0 }
  0xf0   :  { %v165_v13 = vmax.f32 %v3829_v11, 0.0 }
  0xf1   :  { %v171_v16 = vpack.c.bf16 %v167_v10, %v166_v14 }
  0xf2   :  { %v170_v15 = vpack.c.bf16 %v165_v13, %v164_v12 }
  0xf4   :  { %3159 = vmatprep.mubr.msk.bf16.mxu1 %vm185_vm2, %v170_v15 }
  0xf5   :  { %3160 = vmatmul.mubr.msk.bf16.vlgmr.msra.gmra.mrb[0].mxu1 %vm185_vm2, %v171_v16 }
  0xf6   :  { %3164 = vmatpush3.bf16.msra.mxu1 %v3847_v17 }
 0x1c8   :  { %v3161_v19 = vpop.f32.mrb[0].mxu1 }
 0x1c9   :  { %v235_v20 = vadd.f32 %v3161_v19, %v2935_v18  ;;  %v226_v21 = vpop.f32.mrb[1].mxu1 }
 0x1ca   :  { %v3854_v22 = vadd.f32 %v2935_v18, %v226_v21  ;;  %v3162_v23 = vpop.f32.mrb[2].mxu1 }
 0x1cb   :  { %v229_v24 = vpop.f32.mrb[3].mxu1  ;;  %v238_v25 = vadd.f32 %v3162_v23, %v2935_v18 }
 0x1cc   :  { %v3856_v26 = vadd.f32 %v2935_v18, %v229_v24  ;;  %v241_v27 = vsub.f32 %v235_v20, %v3854_v22 }
 0x1ce   :  { %346 = vrot.lane.b32.xlu1 %v241_v27, %s3688_s25  ;;  %245 = vrot.lane.b32.xlu0 %v241_v27, %s3689_s3  ;;  %v242_v28 = vsub.f32 %v238_v25, %v3856_v26  ;;  %v381_v27 = vlaneseq }
 0x1d2   :  { %348 = vrot.lane.b32.xlu1 %v242_v28, %s3688_s25  ;;  %247 = vrot.lane.b32.xlu0 %v242_v28, %s3689_s3  ;;  %v3883_v28 = vshrl.u32 %v381_v27, 7 }
 0x240   :  { %v246_v29 = vpop.permute.xlu0 %245  ;;  %v347_v57 = vpop.permute.xlu1 %346 }
 0x241   :  { %v251_v31 = vmul.f32 %v246_v29, %v3854_v22  ;;  %v253_v32 = vmul.f32 %v246_v29, %v235_v20  ;;  %v3886_v29 = vsub.s32 0, %v3883_v28 }
 0x244   :  { %v248_v30 = vpop.permute.xlu0 %247  ;;  %v349_v63 = vpop.permute.xlu1 %348 }
 0x245   :  { %v252_v33 = vmul.f32 %v248_v30, %v3856_v26  ;;  %v254_v34 = vmul.f32 %v248_v30, %v238_v25 }
 0x247   :  { %v255_v35 = vpack.c.bf16 %v252_v33, %v251_v31  ;;  %v256_v36 = vpack.c.bf16 %v254_v34, %v253_v32 }
 0x249   :  { %3165 = vmatprep.mubr.msk.bf16.mxu1 %vm185_vm2, %v255_v35 }
 0x24a   :  { %3166 = vmatmul.mubr.msk.bf16.vlgmr.msra.gmra.mrb[4].mxu1 %vm185_vm2, %v256_v36 }
 0x31d   :  { %v3167_v37 = vpop.f32.mrb[4].mxu1 }
 0x31e   :  { %v2944_v38 = vmul.f32 -0.35355338, %v3167_v37  ;;  %v303_v39 = vpop.f32.mrb[5].mxu1 }
 0x31f   :  { %v2942_v40 = vmul.f32 -0.35355338, %v303_v39  ;;  %v3168_v41 = vpop.f32.mrb[6].mxu1 }
 0x320   :  { %v330_v42 = vmul.f32 1.442695, %v2944_v38  ;;  %v2945_v43 = vmul.f32 -0.35355338, %v3168_v41  ;;  %v306_v44 = vpop.f32.mrb[7].mxu1 }
 0x321   :  { %v326_v45 = vmul.f32 1.442695, %v2942_v40  ;;  %v2943_v46 = vmul.f32 -0.35355338, %v306_v44 }
 0x322   :  { %3447 = vpow2.f32 %v330_v42  ;;  %v332_v47 = vmul.f32 1.442695, %v2945_v43 }
 0x323   :  { %3449 = vpow2.f32 %v326_v45  ;;  %v328_v48 = vmul.f32 1.442695, %v2943_v46 }
 0x324   :  { %3451 = vpow2.f32 %v332_v47 }
 0x325   :  { %3453 = vpow2.f32 %v328_v48 }
 0x32c   :  { %v3448_v49 = vpop.eup %3447 }
 0x32d   :  { %v3450_v50 = vpop.eup %3449  ;;  %v336_v51 = vadd.f32 1.0, %v3448_v49 }
 0x32e   :  { %v3452_v52 = vpop.eup %3451  ;;  %v334_v53 = vadd.f32 1.0, %v3450_v50 }
 0x32f   :  { %v3454_v54 = vpop.eup %3453  ;;  %v337_v55 = vadd.f32 1.0, %v3452_v52 }
 0x330   :  { %3455 = vrcp.f32 %v334_v53  ;;  %v335_v56 = vadd.f32 1.0, %v3454_v54 }
 0x331   :  { %3457 = vrcp.f32 %v336_v51 }
 0x332   :  { %3459 = vrcp.f32 %v335_v56 }
 0x333   :  { %3461 = vrcp.f32 %v337_v55 }
 0x33a   :  { %v3456_v58 = vpop.eup %3455 }
 0x33b   :  { %v3458_v60 = vpop.eup %3457  ;;  %v352_v61 = vmul.f32 %v3456_v58, %v347_v57  ;;  %v3428_v58 = vld [vmem:[%s4522_s5] sm:$0xff]  }
 0x33c   :  { %v3460_v62 = vpop.eup %3459  ;;  %v354_v2 = vmul.f32 %v3458_v60, %v347_v57  ;;  %3175 = vmatprep.subr.bf16.mxu1 %v3428_v58 }
 0x33d   :  { %360 = vrot.lane.b32.xlu0 %v352_v61, %s3690_s4  ;;  %v353_v0 = vmul.f32 %v3460_v62, %v349_v63  ;;  %v3462_v1 = vpop.eup %3461  ;;  %3176 = vmatpush3.bf16.msra.mxu1 %v3428_v58 }
 0x33e   :  { %v355_v3 = vmul.f32 %v3462_v1, %v349_v63 }
 0x33f   :  { %362 = vrot.lane.b32.xlu1 %v353_v0, %s3690_s4 }
 0x341   :  { %364 = vrot.lane.b32.xlu0 %v354_v2, %s3690_s4 }
 0x343   :  { %366 = vrot.lane.b32.xlu1 %v355_v3, %s3690_s4 }
 0x3af   :  { %v361_v4 = vpop.permute.xlu0 %360 }
 0x3b0   :  { %v372_v6 = vadd.f32 %v361_v4, %v3854_v22 }
 0x3b1   :  { %v363_v5 = vpop.permute.xlu1 %362 }
 0x3b2   :  { %v373_v15 = vadd.f32 %v363_v5, %v3856_v26 }
 0x3b3   :  { %v365_v16 = vpop.permute.xlu0 %364 }
 0x3b4   :  { %v379_v18 = vpack.c.bf16 %v373_v15, %v372_v6  ;;  %v374_v20 = vadd.f32 %v365_v16, %v3854_v22  ;;  %v3891_v22 = vld [vmem:[%s4525_s8] sm:$0x3f]  ;;  %v3915_v6 = vsub.s32 1, %v3883_v28 }
 0x3b5   :  { %v367_v19 = vpop.permute.xlu1 %366 }
 0x3b6   :  { %v375_v21 = vadd.f32 %v367_v19, %v3856_v26  ;;  %387 = vrot.lane.b32.xlu0 %v379_v18, %s3688_s25  ;;  %v384_v26 = vrot.slane %v3891_v22, %v3886_v29  ;;  %v512_v16 = vrot.slane %v3891_v22, %v3915_v6  ;;  %v519_v18 = vsub.s32 2, %v3883_v28 }
 0x3b8   :  { %v380_v23 = vpack.c.bf16 %v375_v21, %v374_v20 }
 0x3ba   :  { %389 = vrot.lane.b32.xlu1 %v380_v23, %s3688_s25 }
 0x428   :  { %v388_v24 = vpop.permute.xlu0 %387 }
 0x429   :  { %3171 = vmatprep.mubr.msk.bf16.mxu0 %vm185_vm2, %v388_v24 }
 0x42c   :  { %v390_v25 = vpop.permute.xlu1 %389 }
 0x42d   :  { %3172 = vmatmul.mubr.msk.bf16.vlgmr.msra.gmra.mrb[4].mxu0 %vm185_vm2, %v390_v25  ;;  %v520_v25 = vrot.slane %v3891_v22, %v519_v18 }
 0x500   :  { %v3173_v30 = vpop.f32.mrb[4].mxu0 }
 0x501   :  { %v437_v31 = vpop.f32.mrb[5].mxu0  ;;  %v446_v32 = vadd.f32 %v3173_v30, %v384_v26 }
 0x502   :  { %v438_v33 = vadd.f32 %v437_v31, %v384_v26  ;;  %v3174_v34 = vpop.f32.mrb[6].mxu0 }
 0x503   :  { %v440_v35 = vpop.f32.mrb[7].mxu0  ;;  %v449_v38 = vadd.f32 %v3174_v34, %v384_v26  ;;  %v454_v41 = vadd.f32 %v446_v32, %v166_v14 }
 0x504   :  { %v441_v36 = vadd.f32 %v440_v35, %v384_v26  ;;  %v452_v37 = vadd.f32 %v438_v33, %v164_v12 }
 0x505   :  { %v462_v43 = vsel %vm185_vm2, %v454_v41, 0.0  ;;  %v455_v44 = vadd.f32 %v449_v38, %v167_v10 }
 0x506   :  { %v456_v39 = vsel %vm185_vm2, %v452_v37, 0.0  ;;  %v453_v40 = vadd.f32 %v441_v36, %v165_v13 }
 0x507   :  { %457 = vadd.xlane.f32.xlu0 %v456_v39  ;;  %v465_v8 = vsel %vm185_vm2, %v455_v44, 0.0 }
 0x508   :  { %v459_v42 = vsel %vm185_vm2, %v453_v40, 0.0 }
 0x509   :  { %460 = vadd.xlane.f32.xlu1 %v459_v42  ;;  %v3430_v42 = vld [vmem:[%s4523_s6 + $0x8] sm:$0xff]  }
 0x50b   :  { %463 = vadd.xlane.f32.xlu0 %v462_v43  ;;  %v2949_v43 = vld [vmem:[%s4526_s9] ss:$0 sm:$0xff] }
 0x50f   :  { %466 = vadd.xlane.f32.xlu0 %v465_v8 }
 0x594   :  { %v458_v12 = vpop.xlane.xlu0 %457 }
 0x595   :  { %v469_v45 = vmul.f32 0.0625, %v458_v12 }
 0x596   :  { %v461_v11 = vpop.xlane.xlu1 %460 }
 0x597   :  { %v473_v13 = vsub.f32 %v452_v37, %v469_v45  ;;  %v470_v46 = vmul.f32 0.0625, %v461_v11 }
 0x598   :  { %v464_v7 = vpop.xlane.xlu0 %463 }
 0x599   :  { %v474_v14 = vsub.f32 %v453_v40, %v470_v46  ;;  %v471_v47 = vmul.f32 0.0625, %v464_v7  ;;  %v477_v48 = vmul.f32 %v473_v13, %v473_v13 }
 0x59b   :  { %v475_v49 = vsub.f32 %v454_v41, %v471_v47  ;;  %v481_v50 = vsel %vm185_vm2, %v477_v48, 0.0  ;;  %v478_v51 = vmul.f32 %v474_v14, %v474_v14  ;;  %v3429_v41 = vld [vmem:[%s4523_s6] sm:$0xff]  }
 0x59c   :  { %482 = vadd.xlane.f32.xlu1 %v481_v50  ;;  %v467_v9 = vpop.xlane.xlu0 %466  ;;  %3181 = vmatprep.subr.bf16.mxu0 %v3429_v41 }
 0x59d   :  { %v472_v10 = vmul.f32 0.0625, %v467_v9  ;;  %v484_v52 = vsel %vm185_vm2, %v478_v51, 0.0  ;;  %v479_v53 = vmul.f32 %v475_v49, %v475_v49  ;;  %3182 = vmatpush3.bf16.msra.mxu0 %v3429_v41  ;;  %v609_v9 = vsub.s32 3, %v3883_v28 }
 0x59e   :  { %485 = vadd.xlane.f32.xlu0 %v484_v52  ;;  %3183 = vmatprep.subr.bf16.mxu0 %v3430_v42 }
 0x59f   :  { %v476_v54 = vsub.f32 %v455_v44, %v472_v10  ;;  %v487_v55 = vsel %vm185_vm2, %v479_v53, 0.0  ;;  %v610_v10 = vrot.slane %v3891_v22, %v609_v9 }
 0x5a0   :  { %488 = vadd.xlane.f32.xlu1 %v487_v55 }
 0x5a1   :  { %v480_v56 = vmul.f32 %v476_v54, %v476_v54  ;;  %3184 = vmatpush3.bf16.msra.mxu0 %v3430_v42 }
 0x5a2   :  { %3195 = vmatprep.subr.bf16.mxu0 %v3847_v17 }
 0x5a3   :  { %v490_v57 = vsel %vm185_vm2, %v480_v56, 0.0 }
 0x5a4   :  { %491 = vadd.xlane.f32.xlu0 %v490_v57 }
 0x629   :  { %v483_v59 = vpop.xlane.xlu1 %482 }
 0x62a   :  { %v493_v60 = vmul.f32 0.0625, %v483_v59 }
 0x62b   :  { %v486_v61 = vpop.xlane.xlu0 %485 }
 0x62c   :  { %v497_v62 = vadd.f32 1e-05, %v493_v60  ;;  %v494_v63 = vmul.f32 0.0625, %v486_v61 }
 0x62d   :  { %v489_v0 = vpop.xlane.xlu1 %488 }
 0x62e   :  { %3463 = vrsqrt.f32 %v497_v62  ;;  %v498_v1 = vadd.f32 1e-05, %v494_v63  ;;  %v495_v2 = vmul.f32 0.0625, %v489_v0 }
 0x630   :  { %3465 = vrsqrt.f32 %v498_v1  ;;  %v499_v3 = vadd.f32 1e-05, %v495_v2 }
 0x631   :  { %v492_v4 = vpop.xlane.xlu0 %491 }
 0x632   :  { %3467 = vrsqrt.f32 %v499_v3  ;;  %v496_v5 = vmul.f32 0.0625, %v492_v4 }
 0x634   :  { %v500_v15 = vadd.f32 1e-05, %v496_v5 }
 0x636   :  { %3469 = vrsqrt.f32 %v500_v15 }
 0x638   :  { %v3464_v19 = vpop.eup %3463 }
 0x639   :  { %v505_v20 = vmul.f32 %v3464_v19, %v473_v13 }
 0x63a   :  { %v3466_v21 = vpop.eup %3465 }
 0x63b   :  { %v506_v23 = vmul.f32 %v3466_v21, %v474_v14  ;;  %v513_v24 = vmul.f32 %v512_v16, %v505_v20 }
 0x63c   :  { %v3468_v27 = vpop.eup %3467 }
 0x63d   :  { %v507_v26 = vmul.f32 %v3468_v27, %v475_v49  ;;  %v514_v30 = vmul.f32 %v512_v16, %v506_v23  ;;  %v521_v31 = vadd.f32 %v520_v25, %v513_v24 }
 0x63f   :  { %v522_v32 = vadd.f32 %v520_v25, %v514_v30  ;;  %v515_v34 = vmul.f32 %v512_v16, %v507_v26 }
 0x640   :  { %v3470_v33 = vpop.eup %3469 }
 0x641   :  { %v508_v35 = vmul.f32 %v3470_v33, %v476_v54  ;;  %v527_v36 = vpack.c.bf16 %v522_v32, %v521_v31  ;;  %v523_v38 = vadd.f32 %v520_v25, %v515_v34 }
 0x643   :  { %v516_v37 = vmul.f32 %v512_v16, %v508_v35  ;;  %3177 = vmatprep.mubr.msk.bf16.mxu1 %vm185_vm2, %v527_v36 }
 0x645   :  { %v524_v39 = vadd.f32 %v520_v25, %v516_v37  ;;  %v3431_v37 = vld [vmem:[%s4549_s21 + $0x8] sm:$0xff]  }
 0x646   :  { %3189 = vmatprep.subr.bf16.mxu1 %v3431_v37 }
 0x647   :  { %v528_v40 = vpack.c.bf16 %v524_v39, %v523_v38 }
 0x649   :  { %3178 = vmatmul.mubr.msk.bf16.vlgmr.msra.gmra.mrb[8].mxu1 %vm185_vm2, %v528_v40 }
 0x64a   :  { %3190 = vmatpush3.bf16.msra.mxu1 %v3431_v37 }
 0x71c   :  { %v3179_v44 = vpop.f32.mrb[8].mxu1 }
 0x71d   :  { %v591_v8 = vadd.f32 %v3179_v44, %v2949_v43  ;;  %v582_v12 = vpop.f32.mrb[9].mxu1 }
 0x71e   :  { %v583_v45 = vadd.f32 %v2949_v43, %v582_v12  ;;  %v3180_v11 = vpop.f32.mrb[10].mxu1 }
 0x71f   :  { %v594_v13 = vadd.f32 %v3180_v11, %v2949_v43  ;;  %v585_v46 = vpop.f32.mrb[11].mxu1  ;;  %v599_v14 = vmax.f32 %v591_v8, 0.0 }
 0x720   :  { %v586_v7 = vadd.f32 %v2949_v43, %v585_v46  ;;  %v597_v48 = vmax.f32 %v583_v45, 0.0  ;;  %v737_v46 = vsub.s32 4, %v3883_v28 }
 0x721   :  { %v600_v47 = vmax.f32 %v594_v13, 0.0 }
 0x722   :  { %v598_v49 = vmax.f32 %v586_v7, 0.0  ;;  %v738_v7 = vrot.slane %v3891_v22, %v737_v46 }
 0x723   :  { %v606_v50 = vpack.c.bf16 %v600_v47, %v599_v14  ;;  %v745_v14 = vsub.s32 5, %v3883_v28 }
 0x724   :  { %v605_v51 = vpack.c.bf16 %v598_v49, %v597_v48 }
 0x726   :  { %3185 = vmatprep.mubr.msk.bf16.mxu0 %vm623_vm3, %v605_v51 }
 0x727   :  { %3186 = vmatmul.mubr.msk.bf16.vlgmr.msra.gmra.mrb[8].mxu0 %vm623_vm3, %v606_v50 }
 0x728   :  { %3196 = vmatpush3.bf16.msra.mxu0 %v3847_v17 }
 0x7fa   :  { %v3187_v52 = vpop.f32.mrb[8].mxu0 }
 0x7fb   :  { %v664_v53 = vpop.f32.mrb[9].mxu0  ;;  %v673_v54 = vadd.f32 %v3187_v52, %v610_v10 }
 0x7fc   :  { %v665_v55 = vadd.f32 %v664_v53, %v610_v10  ;;  %v3188_v56 = vpop.f32.mrb[10].mxu0 }
 0x7fd   :  { %v667_v57 = vpop.f32.mrb[11].mxu0  ;;  %v676_v58 = vadd.f32 %v3188_v56, %v610_v10  ;;  %v681_v63 = vadd.f32 %v673_v54, %v523_v38 }
 0x7fe   :  { %v668_v59 = vadd.f32 %v667_v57, %v610_v10  ;;  %v679_v60 = vadd.f32 %v665_v55, %v521_v31  ;;  %v746_v10 = vrot.slane %v3891_v22, %v745_v14 }
 0x7ff   :  { %v682_v0 = vadd.f32 %v676_v58, %v524_v39  ;;  %v689_v1 = vsel %vm185_vm2, %v681_v63, 0.0 }
 0x800   :  { %v683_v61 = vsel %vm185_vm2, %v679_v60, 0.0  ;;  %v680_v62 = vadd.f32 %v668_v59, %v522_v32 }
 0x801   :  { %684 = vadd.xlane.f32.xlu1 %v683_v61  ;;  %v692_v2 = vsel %vm185_vm2, %v682_v0, 0.0 }
 0x802   :  { %v686_v17 = vsel %vm185_vm2, %v680_v62, 0.0 }
 0x803   :  { %687 = vadd.xlane.f32.xlu0 %v686_v17  ;;  %v2960_v17 = vld [vmem:[%s4524_s7 + $0x1] ss:$0 sm:$0xff]  ;;  %s3696_s7 = smov [#allocation3]  }
 0x805   :  { %690 = vadd.xlane.f32.xlu1 %v689_v1 }
 0x807   :  { %693 = vadd.xlane.f32.xlu0 %v692_v2 }
 0x88e   :  { %v685_v3 = vpop.xlane.xlu1 %684 }
 0x88f   :  { %v695_v4 = vmul.f32 0.0625, %v685_v3 }
 0x890   :  { %v688_v5 = vpop.xlane.xlu0 %687 }
 0x891   :  { %v699_v15 = vsub.f32 %v679_v60, %v695_v4  ;;  %v696_v16 = vmul.f32 0.0625, %v688_v5 }
 0x892   :  { %v691_v19 = vpop.xlane.xlu1 %690 }
 0x893   :  { %v700_v20 = vsub.f32 %v680_v62, %v696_v16  ;;  %v697_v21 = vmul.f32 0.0625, %v691_v19  ;;  %v703_v23 = vmul.f32 %v699_v15, %v699_v15 }
 0x894   :  { %v694_v24 = vpop.xlane.xlu0 %693 }
 0x895   :  { %v701_v25 = vsub.f32 %v681_v63, %v697_v21  ;;  %v698_v27 = vmul.f32 0.0625, %v694_v24  ;;  %v707_v26 = vsel %vm185_vm2, %v703_v23, 0.0  ;;  %v704_v30 = vmul.f32 %v700_v20, %v700_v20 }
 0x896   :  { %708 = vadd.xlane.f32.xlu1 %v707_v26 }
 0x897   :  { %v702_v31 = vsub.f32 %v682_v0, %v698_v27  ;;  %v710_v32 = vsel %vm185_vm2, %v704_v30, 0.0  ;;  %v705_v33 = vmul.f32 %v701_v25, %v701_v25 }
 0x898   :  { %711 = vadd.xlane.f32.xlu0 %v710_v32 }
 0x899   :  { %v713_v34 = vsel %vm185_vm2, %v705_v33, 0.0  ;;  %v706_v35 = vmul.f32 %v702_v31, %v702_v31 }
 0x89a   :  { %714 = vadd.xlane.f32.xlu1 %v713_v34 }
 0x89b   :  { %v716_v36 = vsel %vm185_vm2, %v706_v35, 0.0 }
 0x89c   :  { %717 = vadd.xlane.f32.xlu0 %v716_v36 }
 0x923   :  { %v709_v38 = vpop.xlane.xlu1 %708 }
 0x924   :  { %v719_v39 = vmul.f32 0.0625, %v709_v38 }
 0x925   :  { %v712_v40 = vpop.xlane.xlu0 %711 }
 0x926   :  { %v723_v41 = vadd.f32 1e-05, %v719_v39  ;;  %v720_v42 = vmul.f32 0.0625, %v712_v40 }
 0x927   :  { %v715_v43 = vpop.xlane.xlu1 %714 }
 0x928   :  { %3471 = vrsqrt.f32 %v723_v41  ;;  %v724_v44 = vadd.f32 1e-05, %v720_v42  ;;  %v721_v8 = vmul.f32 0.0625, %v715_v43 }
 0x929   :  { %v718_v12 = vpop.xlane.xlu0 %717 }
 0x92a   :  { %3473 = vrsqrt.f32 %v724_v44  ;;  %v725_v45 = vadd.f32 1e-05, %v721_v8  ;;  %v722_v11 = vmul.f32 0.0625, %v718_v12 }
 0x92c   :  { %3475 = vrsqrt.f32 %v725_v45  ;;  %v726_v13 = vadd.f32 1e-05, %v722_v11 }
 0x92e   :  { %3477 = vrsqrt.f32 %v726_v13 }
 0x932   :  { %v3472_v47 = vpop.eup %3471 }
 0x933   :  { %v731_v48 = vmul.f32 %v3472_v47, %v699_v15 }
 0x934   :  { %v3474_v49 = vpop.eup %3473 }
 0x935   :  { %v732_v50 = vmul.f32 %v3474_v49, %v700_v20  ;;  %v739_v51 = vmul.f32 %v738_v7, %v731_v48 }
 0x936   :  { %v3476_v52 = vpop.eup %3475 }
 0x937   :  { %v733_v53 = vmul.f32 %v3476_v52, %v701_v25  ;;  %v740_v54 = vmul.f32 %v738_v7, %v732_v50  ;;  %v3961_v58 = vadd.f32 %v746_v10, %v739_v51  ;;  %v3432_v50 = vld [vmem:[%s4551_s28 + $0x8] sm:$0xff]  }
 0x938   :  { %v3478_v55 = vpop.eup %3477  ;;  %3201 = vmatprep.subr.bf16.mxu1 %v3432_v50 }
 0x939   :  { %v741_v56 = vmul.f32 %v738_v7, %v733_v53  ;;  %v734_v57 = vmul.f32 %v3478_v55, %v702_v31  ;;  %v3963_v59 = vadd.f32 %v746_v10, %v740_v54 }
 0x93b   :  { %v742_v60 = vmul.f32 %v738_v7, %v734_v57  ;;  %v754_v61 = vpack.c.bf16 %v3963_v59, %v3961_v58  ;;  %v3968_v62 = vadd.f32 %v746_v10, %v741_v56 }
 0x93d   :  { %3191 = vmatprep.mubr.msk.bf16.mxu1 %vm185_vm2, %v754_v61  ;;  %v3970_v63 = vadd.f32 %v746_v10, %v742_v60 }
 0x93f   :  { %v755_v22 = vpack.c.bf16 %v3970_v63, %v3968_v62 }
 0x941   :  { %3192 = vmatmul.mubr.msk.bf16.vlgmr.msra.gmra.mrb[12].mxu1 %vm185_vm2, %v755_v22 }
 0x942   :  { %3202 = vmatpush3.bf16.msra.mxu1 %v3432_v50 }
 0xa14   :  { %v3193_v0 = vpop.f32.mrb[12].mxu1 }
 0xa15   :  { %v819_v1 = vadd.f32 %v3193_v0, %v2960_v17  ;;  %v810_v2 = vpop.f32.mrb[13].mxu1 }
 0xa16   :  { %v3978_v3 = vadd.f32 %v2960_v17, %v810_v2  ;;  %v3194_v4 = vpop.f32.mrb[14].mxu1 }
 0xa17   :  { %v822_v5 = vadd.f32 %v3194_v4, %v2960_v17  ;;  %v813_v15 = vpop.f32.mrb[15].mxu1 }
 0xa18   :  { %v3980_v16 = vadd.f32 %v2960_v17, %v813_v15  ;;  %v825_v19 = vsub.f32 %v819_v1, %v3978_v3 }
 0xa1a   :  { %829 = vrot.lane.b32.xlu1 %v825_v19, %s3689_s3  ;;  %v826_v20 = vsub.f32 %v822_v5, %v3980_v16 }
 0xa1c   :  { %831 = vrot.lane.b32.xlu0 %v826_v20, %s3689_s3  ;;  %s2899_s3 = sshll.u32 %s3696_s7, 4  ;;  %s2900_s3 = int_to_ptr.vmem [resolvable:$true] %s2899_s3 }
 0xa1d   :  { %s3640_s28 = scalar_lea.vmem %s2900_s3, 64  ;;  %p3645_p1 = scmp.lt.s32.totalorder %s2900_s3, %s2900_s3 }
 0xa1e   :  { %924 = vrot.lane.b32.xlu1 %v825_v19, %s3688_s25  ;;  %p3641_p0 = scmp.ne.s32.totalorder %s2900_s3, %s3640_s28  ;;  %p3646_p2 = scmp.lt.s32.totalorder %s3640_s28, %s3640_s28 }
 0xa20   :  { %p3647_p3 = por %p3646_p2, %p3645_p1 }
 0xa22   :  { %926 = vrot.lane.b32.xlu1 %v826_v20, %s3688_s25  ;;  %p3648_p4 = pnand %p3647_p3, %p3641_p0 }
 0xa8c   :  { %v830_v21 = vpop.permute.xlu1 %829 }
 0xa8d   :  { %v835_v24 = vmul.f32 %v830_v21, %v3978_v3  ;;  %v837_v25 = vmul.f32 %v830_v21, %v819_v1  ;;  %v4010_v21 = vld [vmem:[%s4525_s8 + $0x8] sm:$0x3f]  ;;  %s3695_s8 = smov 64  }
 0xa8e   :  { %v832_v23 = vpop.permute.xlu0 %831 }
 0xa8f   :  { %v836_v27 = vmul.f32 %v832_v23, %v3980_v16  ;;  %v838_v26 = vmul.f32 %v832_v23, %v822_v5 }
 0xa90   :  { %v925_v48 = vpop.permute.xlu1 %924 }
 0xa91   :  { %v839_v30 = vpack.c.bf16 %v836_v27, %v835_v24  ;;  %v840_v31 = vpack.c.bf16 %v838_v26, %v837_v25 }
 0xa93   :  { %3197 = vmatprep.mubr.msk.bf16.mxu0 %vm185_vm2, %v839_v30 }
 0xa94   :  { %3198 = vmatmul.mubr.msk.bf16.vlgmr.msra.gmra.mrb[12].mxu0 %vm185_vm2, %v840_v31  ;;  %v927_v53 = vpop.permute.xlu1 %926 }
 0xb67   :  { %v3199_v32 = vpop.f32.mrb[12].mxu0 }
 0xb68   :  { %v2968_v33 = vmul.f32 -0.35355338, %v3199_v32  ;;  %v881_v34 = vpop.f32.mrb[13].mxu0 }
 0xb69   :  { %v2966_v35 = vmul.f32 -0.35355338, %v881_v34  ;;  %v3200_v36 = vpop.f32.mrb[14].mxu0 }
 0xb6a   :  { %v908_v37 = vmul.f32 1.442695, %v2968_v33  ;;  %v2969_v38 = vmul.f32 -0.35355338, %v3200_v36  ;;  %v884_v39 = vpop.f32.mrb[15].mxu0 }
 0xb6b   :  { %v904_v40 = vmul.f32 1.442695, %v2966_v35  ;;  %v2967_v41 = vmul.f32 -0.35355338, %v884_v39 }
 0xb6c   :  { %3479 = vpow2.f32 %v908_v37  ;;  %v910_v42 = vmul.f32 1.442695, %v2969_v38 }
 0xb6d   :  { %3481 = vpow2.f32 %v904_v40  ;;  %v906_v43 = vmul.f32 1.442695, %v2967_v41 }
 0xb6e   :  { %3483 = vpow2.f32 %v910_v42 }
 0xb6f   :  { %3485 = vpow2.f32 %v906_v43 }
 0xb76   :  { %v3480_v44 = vpop.eup %3479 }
 0xb77   :  { %v3482_v8 = vpop.eup %3481  ;;  %v914_v12 = vadd.f32 1.0, %v3480_v44 }
 0xb78   :  { %v3484_v45 = vpop.eup %3483  ;;  %v912_v11 = vadd.f32 1.0, %v3482_v8 }
 0xb79   :  { %v3486_v13 = vpop.eup %3485  ;;  %v915_v7 = vadd.f32 1.0, %v3484_v45 }
 0xb7a   :  { %3487 = vrcp.f32 %v912_v11  ;;  %v913_v47 = vadd.f32 1.0, %v3486_v13 }
 0xb7b   :  { %3489 = vrcp.f32 %v914_v12 }
 0xb7c   :  { %3491 = vrcp.f32 %v913_v47 }
 0xb7d   :  { %3493 = vrcp.f32 %v915_v7 }
 0xb84   :  { %v3488_v49 = vpop.eup %3487 }
 0xb85   :  { %v3490_v51 = vpop.eup %3489  ;;  %v930_v10 = vmul.f32 %v3488_v49, %v925_v48 }
 0xb86   :  { %v3492_v52 = vpop.eup %3491  ;;  %v932_v56 = vmul.f32 %v3490_v51, %v925_v48 }
 0xb87   :  { %938 = vrot.lane.b32.xlu0 %v930_v10, %s3690_s4  ;;  %v931_v54 = vmul.f32 %v3492_v52, %v927_v53  ;;  %v3494_v55 = vpop.eup %3493  ;;  %v3433_v10 = vld [vmem:[%s4522_s5 + $0x8] sm:$0xff]  }
 0xb88   :  { %v933_v57 = vmul.f32 %v3494_v55, %v927_v53  ;;  %3207 = vmatprep.subr.bf16.mxu0 %v3433_v10 }
 0xb89   :  { %940 = vrot.lane.b32.xlu1 %v931_v54, %s3690_s4  ;;  %3208 = vmatpush3.bf16.msra.mxu0 %v3433_v10 }
 0xb8b   :  { %942 = vrot.lane.b32.xlu0 %v932_v56, %s3690_s4 }
 0xb8d   :  { %944 = vrot.lane.b32.xlu1 %v933_v57, %s3690_s4 }
 0xbf9   :  { %v939_v60 = vpop.permute.xlu0 %938 }
 0xbfa   :  { %v950_v22 = vadd.f32 %v939_v60, %v3978_v3 }
 0xbfb   :  { %v941_v61 = vpop.permute.xlu1 %940 }
 0xbfc   :  { %v951_v17 = vadd.f32 %v941_v61, %v3980_v16 }
 0xbfd   :  { %v943_v0 = vpop.permute.xlu0 %942 }
 0xbfe   :  { %v959_v1 = vpack.c.bf16 %v951_v17, %v950_v22  ;;  %v952_v4 = vadd.f32 %v943_v0, %v3978_v3  ;;  %v964_v3 = vrot.slane %v4010_v21, %v3886_v29 }
 0xbff   :  { %v945_v2 = vpop.permute.xlu1 %944 }
 0xc00   :  { %v953_v5 = vadd.f32 %v945_v2, %v3980_v16  ;;  %967 = vrot.lane.b32.xlu0 %v959_v1, %s3688_s25  ;;  %v1091_v2 = vrot.slane %v4010_v21, %v3915_v6 }
 0xc02   :  { %v960_v15 = vpack.c.bf16 %v953_v5, %v952_v4 }
 0xc04   :  { %969 = vrot.lane.b32.xlu1 %v960_v15, %s3688_s25 }
 0xc72   :  { %v968_v19 = vpop.permute.xlu0 %967 }
 0xc73   :  { %3203 = vmatprep.mubr.msk.bf16.mxu1 %vm185_vm2, %v968_v19 }
 0xc76   :  { %v970_v20 = vpop.permute.xlu1 %969 }
 0xc77   :  { %3204 = vmatmul.mubr.msk.bf16.vlgmr.msra.gmra.mrb[16].mxu1 %vm185_vm2, %v970_v20 }
 0xd4a   :  { %v3205_v16 = vpop.f32.mrb[16].mxu1 }
 0xd4b   :  { %v1017_v23 = vpop.f32.mrb[17].mxu1  ;;  %v1026_v24 = vadd.f32 %v3205_v16, %v964_v3 }
 0xd4c   :  { %v1018_v25 = vadd.f32 %v1017_v23, %v964_v3  ;;  %v3206_v27 = vpop.f32.mrb[18].mxu1 }
 0xd4d   :  { %v1020_v26 = vpop.f32.mrb[19].mxu1  ;;  %v1029_v32 = vadd.f32 %v3206_v27, %v964_v3  ;;  %v1034_v35 = vadd.f32 %v1026_v24, %v3968_v62 }
 0xd4e   :  { %v1021_v30 = vadd.f32 %v1020_v26, %v964_v3  ;;  %v1032_v31 = vadd.f32 %v1018_v25, %v3961_v58  ;;  %v1099_v3 = vrot.slane %v4010_v21, %v519_v18  ;;  %v3434_v18 = vld [vmem:[%s4523_s6 + $0x10] sm:$0xff]  }
 0xd4f   :  { %v1042_v37 = vsel %vm185_vm2, %v1034_v35, 0.0  ;;  %v1035_v38 = vadd.f32 %v1029_v32, %v3970_v63  ;;  %3213 = vmatprep.subr.bf16.mxu1 %v3434_v18 }
 0xd50   :  { %v1036_v33 = vsel %vm185_vm2, %v1032_v31, 0.0  ;;  %v1033_v34 = vadd.f32 %v1021_v30, %v3963_v59  ;;  %3214 = vmatpush3.bf16.msra.mxu1 %v3434_v18 }
 0xd51   :  { %1037 = vadd.xlane.f32.xlu0 %v1036_v33  ;;  %v1045_v39 = vsel %vm185_vm2, %v1035_v38, 0.0 }
 0xd52   :  { %v1039_v36 = vsel %vm185_vm2, %v1033_v34, 0.0 }
 0xd53   :  { %1040 = vadd.xlane.f32.xlu1 %v1039_v36 }
 0xd55   :  { %1043 = vadd.xlane.f32.xlu0 %v1042_v37  ;;  %v3435_v37 = vld [vmem:[%s4523_s6 + $0x18] sm:$0xff]  }
 0xd56   :  { %3215 = vmatprep.subr.bf16.mxu1 %v3435_v37 }
 0xd57   :  { %3216 = vmatpush3.bf16.msra.mxu1 %v3435_v37 }
 0xd59   :  { %1046 = vadd.xlane.f32.xlu0 %v1045_v39 }
 0xdde   :  { %v1038_v58 = vpop.xlane.xlu0 %1037 }
 0xddf   :  { %v1048_v40 = vmul.f32 0.0625, %v1038_v58 }
 0xde0   :  { %v1041_v41 = vpop.xlane.xlu1 %1040 }
 0xde1   :  { %v1052_v42 = vsub.f32 %v1032_v31, %v1048_v40  ;;  %v1049_v43 = vmul.f32 0.0625, %v1041_v41 }
 0xde2   :  { %v1044_v59 = vpop.xlane.xlu0 %1043 }
 0xde3   :  { %v1053_v44 = vsub.f32 %v1033_v34, %v1049_v43  ;;  %v1050_v62 = vmul.f32 0.0625, %v1044_v59  ;;  %v1056_v8 = vmul.f32 %v1052_v42, %v1052_v42 }
 0xde5   :  { %v1054_v12 = vsub.f32 %v1034_v35, %v1050_v62  ;;  %v1060_v45 = vsel %vm185_vm2, %v1056_v8, 0.0  ;;  %v1057_v11 = vmul.f32 %v1053_v44, %v1053_v44 }
 0xde6   :  { %1061 = vadd.xlane.f32.xlu1 %v1060_v45  ;;  %v1047_v13 = vpop.xlane.xlu0 %1046 }
 0xde7   :  { %v1051_v63 = vmul.f32 0.0625, %v1047_v13  ;;  %v1063_v7 = vsel %vm185_vm2, %v1057_v11, 0.0  ;;  %v1058_v47 = vmul.f32 %v1054_v12, %v1054_v12 }
 0xde8   :  { %1064 = vadd.xlane.f32.xlu0 %v1063_v7 }
 0xde9   :  { %v1055_v48 = vsub.f32 %v1035_v38, %v1051_v63  ;;  %v1066_v49 = vsel %vm185_vm2, %v1058_v47, 0.0  ;;  %v2979_v38 = vld [vmem:[%s4526_s9 + $0x1] ss:$0 sm:$0xff]  ;;  %v1192_v63 = vrot.slane %v4010_v21, %v609_v9 }
 0xdea   :  { %1067 = vadd.xlane.f32.xlu1 %v1066_v49 }
 0xdeb   :  { %v1059_v50 = vmul.f32 %v1055_v48, %v1055_v48 }
 0xded   :  { %v1069_v51 = vsel %vm185_vm2, %v1059_v50, 0.0 }
 0xdee   :  { %1070 = vadd.xlane.f32.xlu0 %v1069_v51 }
 0xe73   :  { %v1062_v52 = vpop.xlane.xlu1 %1061 }
 0xe74   :  { %v1072_v53 = vmul.f32 0.0625, %v1062_v52 }
 0xe75   :  { %v1065_v54 = vpop.xlane.xlu0 %1064 }
 0xe76   :  { %v1076_v55 = vadd.f32 1e-05, %v1072_v53  ;;  %v1073_v56 = vmul.f32 0.0625, %v1065_v54 }
 0xe77   :  { %v1068_v57 = vpop.xlane.xlu1 %1067 }
 0xe78   :  { %3495 = vrsqrt.f32 %v1076_v55  ;;  %v1077_v60 = vadd.f32 1e-05, %v1073_v56  ;;  %v1074_v61 = vmul.f32 0.0625, %v1068_v57 }
 0xe7a   :  { %3497 = vrsqrt.f32 %v1077_v60  ;;  %v1078_v22 = vadd.f32 1e-05, %v1074_v61 }
 0xe7b   :  { %v1071_v17 = vpop.xlane.xlu0 %1070 }
 0xe7c   :  { %3499 = vrsqrt.f32 %v1078_v22  ;;  %v1075_v0 = vmul.f32 0.0625, %v1071_v17 }
 0xe7e   :  { %v1079_v1 = vadd.f32 1e-05, %v1075_v0 }
 0xe80   :  { %3501 = vrsqrt.f32 %v1079_v1 }
 0xe82   :  { %v3496_v4 = vpop.eup %3495 }
 0xe83   :  { %v1084_v5 = vmul.f32 %v3496_v4, %v1052_v42 }
 0xe84   :  { %v3498_v15 = vpop.eup %3497 }
 0xe85   :  { %v1085_v19 = vmul.f32 %v3498_v15, %v1053_v44  ;;  %v1092_v20 = vmul.f32 %v1091_v2, %v1084_v5 }
 0xe86   :  { %v3500_v16 = vpop.eup %3499 }
 0xe87   :  { %v1086_v23 = vmul.f32 %v3500_v16, %v1054_v12  ;;  %v1093_v24 = vmul.f32 %v1091_v2, %v1085_v19  ;;  %v1100_v25 = vadd.f32 %v1099_v3, %v1092_v20 }
 0xe89   :  { %v1101_v27 = vadd.f32 %v1099_v3, %v1093_v24  ;;  %v1094_v30 = vmul.f32 %v1091_v2, %v1086_v23 }
 0xe8a   :  { %v3502_v26 = vpop.eup %3501 }
 0xe8b   :  { %v1087_v31 = vmul.f32 %v3502_v26, %v1055_v48  ;;  %v1107_v32 = vpack.c.bf16 %v1101_v27, %v1100_v25  ;;  %v1102_v34 = vadd.f32 %v1099_v3, %v1094_v30 }
 0xe8d   :  { %v1095_v33 = vmul.f32 %v1091_v2, %v1087_v31  ;;  %3209 = vmatprep.mubr.msk.bf16.mxu0 %vm185_vm2, %v1107_v32 }
 0xe8f   :  { %v1103_v35 = vadd.f32 %v1099_v3, %v1095_v33  ;;  %v3436_v33 = vld [vmem:[%s4527_s10] sm:$0xff]  }
 0xe91   :  { %v1108_v36 = vpack.c.bf16 %v1103_v35, %v1102_v34 }
 0xe93   :  { %3210 = vmatmul.mubr.msk.bf16.vlgmr.msra.gmra.mrb[16].mxu0 %vm185_vm2, %v1108_v36 }
 0xf66   :  { %v3211_v39 = vpop.f32.mrb[16].mxu0 }
 0xf67   :  { %v1172_v58 = vadd.f32 %v3211_v39, %v2979_v38  ;;  %v1163_v40 = vpop.f32.mrb[17].mxu0 }
 0xf68   :  { %v1164_v41 = vadd.f32 %v2979_v38, %v1163_v40  ;;  %v3212_v42 = vpop.f32.mrb[18].mxu0 }
 0xf69   :  { %v1175_v43 = vadd.f32 %v3212_v42, %v2979_v38  ;;  %v1166_v59 = vpop.f32.mrb[19].mxu0  ;;  %v1180_v62 = vmax.f32 %v1172_v58, 0.0 }
 0xf6a   :  { %v1167_v44 = vadd.f32 %v2979_v38, %v1166_v59  ;;  %v1178_v12 = vmax.f32 %v1164_v41, 0.0 }
 0xf6b   :  { %v1181_v8 = vmax.f32 %v1175_v43, 0.0 }
 0xf6c   :  { %v1179_v45 = vmax.f32 %v1167_v44, 0.0 }
 0xf6d   :  { %v1188_v11 = vpack.c.bf16 %v1181_v8, %v1180_v62  ;;  %v4074_v62 = vld [vmem:[%s4528_s11 + $0x8] sm:$0xff]  }
 0xf6e   :  { %v1187_v13 = vpack.c.bf16 %v1179_v45, %v1178_v12  ;;  %v3438_v8 = vld [vmem:[%s4527_s10 + $0x8] sm:$0xff]   ;;  %v1319_v12 = vrot.slane %v4010_v21, %v737_v46  ;;  %s3694_s10 = smov 16  }
 0xf70   :  { %3217 = vmatprep.mubr.msk.bf16.mxu1 %vm623_vm3, %v1187_v13 }
 0xf71   :  { %3218 = vmatmul.mubr.msk.bf16.vlgmr.msra.gmra.mrb[20].mxu1 %vm623_vm3, %v1188_v11 }
0x1044   :  { %v3219_v7 = vpop.f32.mrb[20].mxu1 }
0x1045   :  { %v1254_v47 = vadd.f32 %v3219_v7, %v1192_v63  ;;  %v1245_v48 = vpop.f32.mrb[21].mxu1 }
0x1046   :  { %v1246_v49 = vadd.f32 %v1245_v48, %v1192_v63  ;;  %v3220_v50 = vpop.f32.mrb[22].mxu1 }
0x1047   :  { %v1257_v51 = vadd.f32 %v3220_v50, %v1192_v63  ;;  %v1248_v10 = vpop.f32.mrb[23].mxu1  ;;  %v1262_v52 = vadd.f32 %v1254_v47, %v1102_v34  ;;  %v4064_v34 = vld [vmem:[%s4528_s11] sm:$0xff]   ;;  %v1327_v47 = vrot.slane %v4010_v21, %v745_v14 }
0x1048   :  { %v1249_v53 = vadd.f32 %v1248_v10, %v1192_v63  ;;  %v1260_v56 = vadd.f32 %v1246_v49, %v1100_v25  ;;  %v3693_v63 = vmov 0  }
0x1049   :  { %v1270_v54 = vsel %vm185_vm2, %v1262_v52, 0.0  ;;  %v1263_v55 = vadd.f32 %v1257_v51, %v1103_v35  ;;  %v3691_v35 = vmov 0.0  }
0x104a   :  { %1271 = vadd.xlane.f32.xlu1 %v1270_v54  ;;  %v1261_v60 = vadd.f32 %v1249_v53, %v1101_v27  ;;  %v1264_v9 = vsel %vm185_vm2, %v1260_v56, 0.0  ;;  %3221 = vmatprep.subr.bf16.mxu0 %v3691_v35 }
0x104b   :  { %v1273_v57 = vsel %vm185_vm2, %v1263_v55, 0.0  ;;  %3229 = vmatprep.subr.bf16.mxu1 %v3691_v35  ;;  %3222 = vmatpush3.bf16.msra.mxu0 %v3436_v33 }
0x104c   :  { %1274 = vadd.xlane.f32.xlu0 %v1273_v57  ;;  %v1267_v61 = vsel %vm185_vm2, %v1261_v60, 0.0  ;;  %3230 = vmatpush3.bf16.msra.mxu1 %v4064_v34 }
0x104d   :  { %3223 = vmatprep.subr.bf16.mxu0 %v3691_v35  ;;  %3231 = vmatprep.subr.bf16.mxu1 %v3691_v35 }
0x104e   :  { %1265 = vadd.xlane.f32.xlu1 %v1264_v9  ;;  %3233 = vmatprep.mubr.msk.bf16.mxu1 %vm3692_vm4, %v3691_v35 }
0x104f   :  { %3224 = vmatpush3.bf16.msra.mxu0 %v3438_v8  ;;  %3225 = vmatprep.mubr.msk.bf16.mxu0 %vm3692_vm4, %v3691_v35 }
0x1050   :  { %1268 = vadd.xlane.f32.xlu0 %v1267_v61  ;;  %3232 = vmatpush3.bf16.msra.mxu1 %v4074_v62 }
0x1051   :  { %3249 = vmatprep.subr.bf16.mxu1 %v3691_v35  ;;  %3237 = vmatprep.subr.bf16.mxu0 %v3691_v35 }
0x1053   :  { %3234 = vmatmul.mubr.bf16.vlgmr.msra.gmra.mrb[24].mxu1 %v3693_v63 }
0x1054   :  { %3250 = vmatpush3.bf16.msra.mxu1 %v4064_v34  ;;  %3253 = vmatprep.mubr.msk.bf16.mxu1 %vm3692_vm4, %v3691_v35 }
0x1055   :  { %3251 = vmatprep.subr.bf16.mxu1 %v3691_v35 }
0x1058   :  { %3252 = vmatpush3.bf16.msra.mxu1 %v4074_v62 }
0x1059   :  { %3257 = vmatprep.subr.bf16.mxu1 %v3691_v35 }
0x10d7   :  { %v1272_v22 = vpop.xlane.xlu1 %1271 }
0x10d8   :  { %v1278_v17 = vmul.f32 0.0625, %v1272_v22 }
0x10d9   :  { %v1275_v0 = vpop.xlane.xlu0 %1274 }
0x10da   :  { %v1282_v1 = vsub.f32 %v1262_v52, %v1278_v17  ;;  %v1279_v2 = vmul.f32 0.0625, %v1275_v0 }
0x10db   :  { %v1266_v4 = vpop.xlane.xlu1 %1265 }
0x10dc   :  { %v1283_v5 = vsub.f32 %v1263_v55, %v1279_v2  ;;  %v1276_v15 = vmul.f32 0.0625, %v1266_v4  ;;  %v1286_v19 = vmul.f32 %v1282_v1, %v1282_v1  ;;  %v4106_v4 = vld [vmem:[%s4530_s13] sm:$0x3] }
0x10dd   :  { %v1269_v20 = vpop.xlane.xlu0 %1268 }
0x10de   :  { %v1280_v3 = vsub.f32 %v1260_v56, %v1276_v15  ;;  %v1277_v16 = vmul.f32 0.0625, %v1269_v20  ;;  %v1294_v23 = vsel %vm185_vm2, %v1286_v19, 0.0  ;;  %v1287_v24 = vmul.f32 %v1283_v5, %v1283_v5 }
0x10df   :  { %1295 = vadd.xlane.f32.xlu1 %v1294_v23 }
0x10e0   :  { %v1281_v25 = vsub.f32 %v1261_v60, %v1277_v16  ;;  %v1297_v27 = vsel %vm185_vm2, %v1287_v24, 0.0  ;;  %v1284_v26 = vmul.f32 %v1280_v3, %v1280_v3 }
0x10e1   :  { %1298 = vadd.xlane.f32.xlu0 %v1297_v27 }
0x10e2   :  { %v1288_v30 = vsel %vm185_vm2, %v1284_v26, 0.0  ;;  %v1285_v31 = vmul.f32 %v1281_v25, %v1281_v25 }
0x10e3   :  { %1289 = vadd.xlane.f32.xlu1 %v1288_v30 }
0x10e4   :  { %v1291_v32 = vsel %vm185_vm2, %v1285_v31, 0.0 }
0x10e5   :  { %1292 = vadd.xlane.f32.xlu0 %v1291_v32 }
0x1126   :  { %v1469_v17 = vpop.f32.mrb[24].mxu1 }
0x1127   :  { %v3235_v0 = vpop.f32.mrb[25].mxu1 }
0x116c   :  { %v1296_v36 = vpop.xlane.xlu1 %1295 }
0x116d   :  { %v1302_v18 = vmul.f32 0.0625, %v1296_v36 }
0x116e   :  { %v1299_v37 = vpop.xlane.xlu0 %1298 }
0x116f   :  { %v1306_v38 = vadd.f32 1e-05, %v1302_v18  ;;  %v1303_v39 = vmul.f32 0.0625, %v1299_v37  ;;  %v4123_v37 = vld [vmem:[%s4529_s12] sm:$0xff]  }
0x1170   :  { %v1290_v58 = vpop.xlane.xlu1 %1289 }
0x1171   :  { %3503 = vrsqrt.f32 %v1306_v38  ;;  %v1307_v40 = vadd.f32 1e-05, %v1303_v39  ;;  %v1300_v41 = vmul.f32 0.0625, %v1290_v58  ;;  %v4129_v38 = vld [vmem:[%s4529_s12 + $0x8] sm:$0xff]   ;;  %v4136_v39 = vld [vmem:[%s4529_s12 + $0x10] sm:$0xff]  }
0x1172   :  { %v1293_v42 = vpop.xlane.xlu0 %1292 }
0x1173   :  { %3505 = vrsqrt.f32 %v1307_v40  ;;  %v1304_v43 = vadd.f32 1e-05, %v1300_v41  ;;  %v1301_v59 = vmul.f32 0.0625, %v1293_v42  ;;  %v4145_v40 = vld [vmem:[%s4529_s12 + $0x18] sm:$0xff]  }
0x1175   :  { %3507 = vrsqrt.f32 %v1304_v43  ;;  %v1305_v44 = vadd.f32 1e-05, %v1301_v59 }
0x1177   :  { %3509 = vrsqrt.f32 %v1305_v44 }
0x117b   :  { %v3504_v45 = vpop.eup %3503 }
0x117c   :  { %v1314_v11 = vmul.f32 %v3504_v45, %v1282_v1  ;;  %v1472_v1 = vpop.f32.mrb[26].mxu1  ;;  %v4172_v45 = vrot.slane %v4106_v4, %v3915_v6 }
0x117d   :  { %v3506_v13 = vpop.eup %3505  ;;  %v3236_v2 = vpop.f32.mrb[27].mxu1 }
0x117e   :  { %v1315_v46 = vmul.f32 %v3506_v13, %v1283_v5  ;;  %v1322_v7 = vmul.f32 %v1319_v12, %v1314_v11  ;;  %v1351_v5 = vrot.slane %v4106_v4, %v3886_v29 }
0x117f   :  { %v3508_v48 = vpop.eup %3507 }
0x1180   :  { %v1312_v49 = vmul.f32 %v3508_v48, %v1280_v3  ;;  %v1323_v50 = vmul.f32 %v1319_v12, %v1315_v46  ;;  %v1330_v52 = vadd.f32 %v1327_v47, %v1322_v7 }
0x1181   :  { %v3510_v51 = vpop.eup %3509 }
0x1182   :  { %v1313_v10 = vmul.f32 %v3510_v51, %v1281_v25  ;;  %v1331_v53 = vadd.f32 %v1327_v47, %v1323_v50  ;;  %v1320_v54 = vmul.f32 %v1319_v12, %v1312_v49 }
0x1184   :  { %v3415_v28 = vpack.i.bf16 %v1331_v53, %v1330_v52  ;;  %v1321_v14 = vmul.f32 %v1319_v12, %v1313_v10  ;;  %v1328_v21 = vadd.f32 %v1327_v47, %v1320_v54 }
0x1186   :  { %3416 = vrot.lane.b32.xlu1 %v3415_v28, %s3694_s10  ;;  %v1329_v55 = vadd.f32 %v1327_v47, %v1321_v14  ;;  %s3697_s10 = smov [#allocation5]  }
0x11f8   :  { %v3417_v56 = vpop.permute.xlu1 %3416 }
0x11f9   :  { %v3419_v57 = vunpack.i.h.bf16 %v3417_v56  ;;  %v3418_v60 = vunpack.i.l.bf16 %v3417_v56 }
0x11fb   :  { %v1342_v9 = vsel %vm185_vm2, %v1329_v55, %v3419_v57  ;;  %v1341_v61 = vsel %vm185_vm2, %v1328_v21, %v3418_v60 }
0x11fc   :  { %v1347_v22 = vpack.c.bf16 %v1342_v9, %v1341_v61 }
0x11fe   :  { %3226 = vmatmul.mubr.msk.bf16.vlgmr.msra.gmra.mrb[20].mxu0 %vm623_vm3, %v1347_v22 }
0x11ff   :  { %3245 = vmatprep.mubr.msk.bf16.mxu0 %vm3692_vm4, %v3691_v35  ;;  %3238 = vmatpush3.bf16.msra.mxu0 %v4123_v37 }
0x1200   :  { %3239 = vmatprep.subr.bf16.mxu0 %v3691_v35 }
0x1203   :  { %3240 = vmatpush3.bf16.msra.mxu0 %v4129_v38 }
0x1204   :  { %3241 = vmatprep.subr.bf16.mxu0 %v3691_v35 }
0x1207   :  { %3242 = vmatpush3.bf16.msra.mxu0 %v4136_v39 }
0x1208   :  { %3243 = vmatprep.subr.bf16.mxu0 %v3691_v35 }
0x120b   :  { %3244 = vmatpush3.bf16.msra.mxu0 %v4145_v40 }
0x120c   :  { %3269 = vmatprep.subr.bf16.mxu0 %v3691_v35 }
0x12d1   :  { %v1401_v15 = vpop.f32.mrb[20].mxu0 }
0x12d2   :  { %v4110_v19 = vadd.f32 %v1401_v15, %v1351_v5  ;;  %v3227_v20 = vpop.f32.mrb[21].mxu0 }
0x12d3   :  { %v1404_v3 = vpop.f32.mrb[22].mxu0 }
0x12d4   :  { %v1475_v16 = vadd.f32 %v1469_v17, %v4110_v19  ;;  %v4113_v23 = vadd.f32 %v1404_v3, %v1351_v5  ;;  %v3228_v24 = vpop.f32.mrb[23].mxu0 }
0x12d6   :  { %3511 = vtanh.f32 %v1475_v16  ;;  %v2996_v27 = vmul.f32 -1.442695, %v1475_v16 }
0x12d8   :  { %3513 = vpow2.f32 %v2996_v27 }
0x12e0   :  { %v3512_v25 = vpop.eup %3511 }
0x12e1   :  { %1485 = vrot.lane.b32.xlu0 %v3512_v25, %s3695_s8 }
0x12e2   :  { %v3514_v26 = vpop.eup %3513 }
0x12e3   :  { %v1479_v30 = vadd.f32 1.0, %v3514_v26 }
0x12e5   :  { %3515 = vrcp.f32 %v1479_v30 }
0x12ef   :  { %v3516_v29 = vpop.eup %3515 }
0x12f0   :  { %v1483_v33 = vmul.f32 0.0, %v3516_v29 }
0x1353   :  { %v1486_v31 = vpop.permute.xlu0 %1485 }
0x1354   :  { %v1488_v32 = vmul.f32 %v3516_v29, %v1486_v31 }
0x1356   :  { %1490 = vrot.lane.b32.xlu1 %v1488_v32, %s3690_s4 }
0x13c8   :  { %v1491_v36 = vpop.permute.xlu1 %1490 }
0x13c9   :  { %v4117_v18 = vadd.f32 %v1491_v36, %v1483_v33 }
0x13cb   :  { %3517 = vtanh.f32 %v4117_v18  ;;  %v1667_v17 = vrot.slane %v4117_v18, 6 }
0x13d5   :  { %v3518_v58 = vpop.eup %3517 }
0x13d6   :  { %1496 = vrot.lane.b32.xlu1 %v3518_v58, %s3695_s8 }
0x1448   :  { %v1497_v41 = vpop.permute.xlu1 %1496 }
0x1449   :  { %v1499_v42 = vmul.f32 %v3516_v29, %v1497_v41 }
0x144b   :  { %v1608_v43 = vpack.c.bf16 %v1499_v42, %v1499_v42  ;;  %1501 = vrot.lane.b32.xlu0 %v1499_v42, %s3690_s4 }
0x144d   :  { %1610 = vrot.lane.b32.xlu1 %v1608_v43, %s3690_s4 }
0x14bd   :  { %v1502_v59 = vpop.permute.xlu0 %1501 }
0x14be   :  { %v1504_v44 = vsel %vm623_vm3, %v1502_v59, 0.0 }
0x14bf   :  { %v1505_v8 = vpack.c.bf16 %v1504_v44, %v1504_v44  ;;  %v1611_v12 = vpop.permute.xlu1 %1610 }
0x14c0   :  { %3254 = vmatmul.mubr.msk.bf16.vlgmr.msra.gmra.mrb[28].mxu1 %vm623_vm3, %v1611_v12 }
0x14c1   :  { %3246 = vmatmul.mubr.msk.bf16.vlgmr.msra.gmra.mrb[24].mxu0 %vm1534_vm5, %v1505_v8  ;;  %3258 = vmatpush3.bf16.msra.mxu1 %v4123_v37 }
0x14c2   :  { %3259 = vmatprep.subr.bf16.mxu1 %v3691_v35  ;;  %3270 = vmatpush3.bf16.msra.mxu0 %v4064_v34 }
0x14c3   :  { %3271 = vmatprep.subr.bf16.mxu0 %v3691_v35  ;;  %3273 = vmatprep.mubr.msk.bf16.mxu0 %vm3692_vm4, %v3691_v35 }
0x14c4   :  { %3265 = vmatprep.mubr.msk.bf16.mxu1 %vm3692_vm4, %v3691_v35 }
0x14c5   :  { %3260 = vmatpush3.bf16.msra.mxu1 %v4129_v38 }
0x14c6   :  { %3261 = vmatprep.subr.bf16.mxu1 %v3691_v35  ;;  %3272 = vmatpush3.bf16.msra.mxu0 %v4074_v62 }
0x14c7   :  { %3277 = vmatprep.subr.bf16.mxu0 %v3691_v35 }
0x14c9   :  { %3262 = vmatpush3.bf16.msra.mxu1 %v4136_v39 }
0x14ca   :  { %3263 = vmatprep.subr.bf16.mxu1 %v3691_v35 }
0x14cd   :  { %3264 = vmatpush3.bf16.msra.mxu1 %v4145_v40 }
0x14ce   :  { %3289 = vmatprep.subr.bf16.mxu1 %v3691_v35 }
0x1593   :  { %v1649_v11 = vpop.f32.mrb[28].mxu1 }
0x1594   :  { %v1656_v13 = vrot.slane %v1649_v11, 6  ;;  %v1572_v63 = vpop.f32.mrb[24].mxu0  ;;  %v3255_v46 = vpop.f32.mrb[29].mxu1 }
0x1595   :  { %v1573_v7 = vadd.f32 %v1572_v63, %v4172_v45  ;;  %v3247_v47 = vpop.f32.mrb[25].mxu0  ;;  %v1652_v48 = vpop.f32.mrb[30].mxu1 }
0x1596   :  { %v1658_v49 = vadd.f32 %v1656_v13, %v4110_v19  ;;  %v1575_v50 = vpop.f32.mrb[26].mxu0  ;;  %v3256_v51 = vpop.f32.mrb[31].mxu1 }
0x1597   :  { %3519 = vtanh.f32 %v1573_v7  ;;  %v3248_v10 = vpop.f32.mrb[27].mxu0  ;;  %v3002_v6 = vmul.f32 -1.442695, %v1573_v7 }
0x1598   :  { %3521 = vtanh.f32 %v1658_v49  ;;  %v3004_v54 = vmul.f32 -1.442695, %v1658_v49 }
0x1599   :  { %3523 = vpow2.f32 %v3002_v6 }
0x159a   :  { %3525 = vpow2.f32 %v3004_v54 }
0x15a1   :  { %v3520_v52 = vpop.eup %3519 }
0x15a2   :  { %v3522_v53 = vpop.eup %3521  ;;  %1587 = vrot.lane.b32.xlu0 %v3520_v52, %s3695_s8 }
0x15a3   :  { %1671 = vrot.lane.b32.xlu1 %v3522_v53, %s3695_s8  ;;  %v3524_v28 = vpop.eup %3523 }
0x15a4   :  { %v3526_v14 = vpop.eup %3525  ;;  %v1581_v21 = vadd.f32 1.0, %v3524_v28 }
0x15a5   :  { %v1662_v55 = vadd.f32 1.0, %v3526_v14 }
0x15a6   :  { %3527 = vrcp.f32 %v1581_v21 }
0x15a7   :  { %3529 = vrcp.f32 %v1662_v55 }
0x15b0   :  { %v3528_v56 = vpop.eup %3527 }
0x15b1   :  { %v3530_v60 = vpop.eup %3529  ;;  %v1585_v0 = vmul.f32 0.0, %v3528_v56 }
0x15b2   :  { %v1669_v2 = vmul.f32 %v3530_v60, %v1667_v17 }
0x1614   :  { %v1588_v57 = vpop.permute.xlu0 %1587 }
0x1615   :  { %v1590_v9 = vmul.f32 %v3528_v56, %v1588_v57  ;;  %v1672_v61 = vpop.permute.xlu1 %1671 }
0x1616   :  { %v1674_v22 = vmul.f32 %v3530_v60, %v1672_v61 }
0x1617   :  { %1592 = vrot.lane.b32.xlu0 %v1590_v9, %s3690_s4 }
0x1618   :  { %1676 = vrot.lane.b32.xlu1 %v1674_v22, %s3690_s4 }
0x1689   :  { %v1593_v1 = vpop.permute.xlu0 %1592 }
0x168a   :  { %v4181_v4 = vadd.f32 %v1593_v1, %v1585_v0  ;;  %v1677_v5 = vpop.permute.xlu1 %1676 }
0x168b   :  { %v4183_v15 = vadd.f32 %v1677_v5, %v1669_v2 }
0x168c   :  { %3531 = vtanh.f32 %v4181_v4 }
0x168d   :  { %3533 = vtanh.f32 %v4183_v15  ;;  %v1830_v55 = vrot.slane %v4183_v15, 6 }
0x1696   :  { %v3532_v20 = vpop.eup %3531 }
0x1697   :  { %v3534_v3 = vpop.eup %3533  ;;  %1598 = vrot.lane.b32.xlu0 %v3532_v20, %s3695_s8 }
0x1698   :  { %1682 = vrot.lane.b32.xlu1 %v3534_v3, %s3695_s8 }
0x1709   :  { %v1599_v16 = vpop.permute.xlu0 %1598 }
0x170a   :  { %v4189_v24 = vmul.f32 %v3528_v56, %v1599_v16  ;;  %v1683_v25 = vpop.permute.xlu1 %1682 }
0x170b   :  { %v1685_v27 = vmul.f32 %v3530_v60, %v1683_v25 }
0x170c   :  { %v1690_v26 = vrot.slane %v4189_v24, 6 }
0x170d   :  { %v1770_v30 = vpack.c.bf16 %v1685_v27, %v1685_v27  ;;  %1687 = vrot.lane.b32.xlu0 %v1685_v27, %s3690_s4 }
0x170e   :  { %1691 = vrot.lane.b32.xlu1 %v1690_v26, %s3695_s8 }
0x170f   :  { %v1772_v29 = vrot.slane %v1770_v30, 1 }
0x1711   :  { %1773 = vrot.lane.b32.xlu0 %v1772_v29, %s3690_s4 }
0x177f   :  { %v1688_v31 = vpop.permute.xlu0 %1687 }
0x1780   :  { %v1692_v32 = vpop.permute.xlu1 %1691 }
0x1781   :  { %v1694_v33 = vsel %vm623_vm3, %v1688_v31, %v1692_v32 }
0x1782   :  { %v1695_v36 = vpack.c.bf16 %v1694_v33, %v1694_v33 }
0x1783   :  { %v1774_v18 = vpop.permute.xlu0 %1773 }
0x1784   :  { %v1697_v58 = vrot.slane %v1695_v36, 1  ;;  %3274 = vmatmul.mubr.msk.bf16.vlgmr.msra.gmra.mrb[28].mxu0 %vm623_vm3, %v1774_v18 }
0x1785   :  { %3278 = vmatpush3.bf16.msra.mxu0 %v4123_v37  ;;  %3285 = vmatprep.mubr.msk.bf16.mxu0 %vm3692_vm4, %v3691_v35 }
0x1786   :  { %3266 = vmatmul.mubr.msk.bf16.vlgmr.msra.gmra.mrb[32].mxu1 %vm1534_vm5, %v1697_v58  ;;  %3279 = vmatprep.subr.bf16.mxu0 %v3691_v35 }
0x1787   :  { %3290 = vmatpush3.bf16.msra.mxu1 %v4064_v34  ;;  %3293 = vmatprep.mubr.msk.bf16.mxu1 %vm3692_vm4, %v3691_v35 }
0x1788   :  { %3291 = vmatprep.subr.bf16.mxu1 %v3691_v35 }
0x1789   :  { %3280 = vmatpush3.bf16.msra.mxu0 %v4129_v38 }
0x178a   :  { %3281 = vmatprep.subr.bf16.mxu0 %v3691_v35 }
0x178b   :  { %3292 = vmatpush3.bf16.msra.mxu1 %v4074_v62 }
0x178c   :  { %3297 = vmatprep.subr.bf16.mxu1 %v3691_v35 }
0x178d   :  { %3282 = vmatpush3.bf16.msra.mxu0 %v4136_v39 }
0x178e   :  { %3283 = vmatprep.subr.bf16.mxu0 %v3691_v35 }
0x1791   :  { %3284 = vmatpush3.bf16.msra.mxu0 %v4145_v40 }
0x1792   :  { %3309 = vmatprep.subr.bf16.mxu0 %v3691_v35 }
0x1857   :  { %v1812_v41 = vpop.f32.mrb[28].mxu0 }
0x1858   :  { %v1819_v42 = vrot.slane %v1812_v41, 4  ;;  %v3275_v43 = vpop.f32.mrb[29].mxu0 }
0x1859   :  { %v1735_v59 = vpop.f32.mrb[32].mxu1  ;;  %v1815_v44 = vpop.f32.mrb[30].mxu0 }
0x185a   :  { %v1821_v8 = vadd.f32 %v1819_v42, %v4110_v19  ;;  %v1736_v12 = vadd.f32 %v1735_v59, %v4172_v45  ;;  %v3267_v11 = vpop.f32.mrb[33].mxu1  ;;  %v3276_v13 = vpop.f32.mrb[31].mxu0 }
0x185b   :  { %v1738_v63 = vpop.f32.mrb[34].mxu1 }
0x185c   :  { %3535 = vtanh.f32 %v1821_v8  ;;  %v3268_v46 = vpop.f32.mrb[35].mxu1  ;;  %v3008_v48 = vmul.f32 -1.442695, %v1821_v8  ;;  %v3006_v49 = vmul.f32 -1.442695, %v1736_v12 }
0x185d   :  { %3537 = vtanh.f32 %v1736_v12 }
0x185e   :  { %3539 = vpow2.f32 %v3008_v48 }
0x185f   :  { %3541 = vpow2.f32 %v3006_v49 }
0x1866   :  { %v3536_v7 = vpop.eup %3535 }
0x1867   :  { %v3538_v47 = vpop.eup %3537  ;;  %1834 = vrot.lane.b32.xlu0 %v3536_v7, %s3695_s8 }
0x1868   :  { %1750 = vrot.lane.b32.xlu1 %v3538_v47, %s3695_s8  ;;  %v3540_v50 = vpop.eup %3539 }
0x1869   :  { %v3542_v51 = vpop.eup %3541  ;;  %v1825_v10 = vadd.f32 1.0, %v3540_v50 }
0x186a   :  { %v1744_v52 = vadd.f32 1.0, %v3542_v51 }
0x186b   :  { %3543 = vrcp.f32 %v1825_v10 }
0x186c   :  { %3545 = vrcp.f32 %v1744_v52 }
0x1875   :  { %v3544_v53 = vpop.eup %3543 }
0x1876   :  { %v3546_v54 = vpop.eup %3545  ;;  %v1832_v56 = vmul.f32 %v3544_v53, %v1830_v55 }
0x1877   :  { %v1748_v57 = vmul.f32 %v3546_v54, %v4181_v4 }
0x18d9   :  { %v1835_v6 = vpop.permute.xlu0 %1834 }
0x18da   :  { %v1751_v28 = vpop.permute.xlu1 %1750  ;;  %v1837_v14 = vmul.f32 %v3544_v53, %v1835_v6 }
0x18db   :  { %v1753_v21 = vmul.f32 %v3546_v54, %v1751_v28 }
0x18dc   :  { %1839 = vrot.lane.b32.xlu0 %v1837_v14, %s3690_s4 }
0x18dd   :  { %1755 = vrot.lane.b32.xlu1 %v1753_v21, %s3690_s4 }
0x194e   :  { %v1840_v60 = vpop.permute.xlu0 %1839 }
0x194f   :  { %v1756_v9 = vpop.permute.xlu1 %1755  ;;  %v4222_v61 = vadd.f32 %v1840_v60, %v1832_v56 }
0x1950   :  { %v4224_v22 = vadd.f32 %v1756_v9, %v1748_v57 }
0x1951   :  { %3547 = vtanh.f32 %v4222_v61  ;;  %v1993_v52 = vrot.slane %v4222_v61, 6 }
0x1952   :  { %3549 = vtanh.f32 %v4224_v22 }
0x195b   :  { %v3548_v17 = vpop.eup %3547 }
0x195c   :  { %v3550_v0 = vpop.eup %3549  ;;  %1845 = vrot.lane.b32.xlu0 %v3548_v17, %s3695_s8 }
0x195d   :  { %1761 = vrot.lane.b32.xlu1 %v3550_v0, %s3695_s8 }
0x19ce   :  { %v1846_v1 = vpop.permute.xlu0 %1845 }
0x19cf   :  { %v1762_v2 = vpop.permute.xlu1 %1761  ;;  %v1848_v5 = vmul.f32 %v3544_v53, %v1846_v1 }
0x19d0   :  { %v4230_v4 = vmul.f32 %v3546_v54, %v1762_v2 }
0x19d1   :  { %v1933_v15 = vpack.c.bf16 %v1848_v5, %v1848_v5  ;;  %1850 = vrot.lane.b32.xlu1 %v1848_v5, %s3690_s4 }
0x19d2   :  { %v1853_v20 = vrot.slane %v4230_v4, 4 }
0x19d3   :  { %v1935_v3 = vrot.slane %v1933_v15, 2 }
0x19d4   :  { %1854 = vrot.lane.b32.xlu0 %v1853_v20, %s3695_s8 }
0x19d5   :  { %1936 = vrot.lane.b32.xlu1 %v1935_v3, %s3690_s4 }
0x1a43   :  { %v1851_v16 = vpop.permute.xlu1 %1850 }
0x1a46   :  { %v1855_v25 = vpop.permute.xlu0 %1854 }
0x1a47   :  { %v1857_v27 = vsel %vm623_vm3, %v1851_v16, %v1855_v25  ;;  %v1937_v26 = vpop.permute.xlu1 %1936 }
0x1a48   :  { %v1858_v30 = vpack.c.bf16 %v1857_v27, %v1857_v27  ;;  %3294 = vmatmul.mubr.msk.bf16.vlgmr.msra.gmra.mrb[36].mxu1 %vm623_vm3, %v1937_v26 }
0x1a49   :  { %3298 = vmatpush3.bf16.msra.mxu1 %v4123_v37  ;;  %3305 = vmatprep.mubr.msk.bf16.mxu1 %vm3692_vm4, %v3691_v35 }
0x1a4a   :  { %v1860_v29 = vrot.slane %v1858_v30, 2  ;;  %3299 = vmatprep.subr.bf16.mxu1 %v3691_v35 }
0x1a4c   :  { %3286 = vmatmul.mubr.msk.bf16.vlgmr.msra.gmra.mrb[32].mxu0 %vm1534_vm5, %v1860_v29 }
0x1a4d   :  { %3300 = vmatpush3.bf16.msra.mxu1 %v4129_v38  ;;  %3310 = vmatpush3.bf16.msra.mxu0 %v4064_v34 }
0x1a4e   :  { %3301 = vmatprep.subr.bf16.mxu1 %v3691_v35  ;;  %3311 = vmatprep.subr.bf16.mxu0 %v3691_v35 }
0x1a4f   :  { %3313 = vmatprep.mubr.msk.bf16.mxu0 %vm3692_vm4, %v3691_v35 }
0x1a51   :  { %3302 = vmatpush3.bf16.msra.mxu1 %v4136_v39  ;;  %3312 = vmatpush3.bf16.msra.mxu0 %v4074_v62 }
0x1a52   :  { %3303 = vmatprep.subr.bf16.mxu1 %v3691_v35  ;;  %3317 = vmatprep.subr.bf16.mxu0 %v3691_v35 }
0x1a55   :  { %3304 = vmatpush3.bf16.msra.mxu1 %v4145_v40 }
0x1a56   :  { %3329 = vmatprep.subr.bf16.mxu1 %v3691_v35 }
0x1b1b   :  { %v1975_v31 = vpop.f32.mrb[36].mxu1 }
0x1b1c   :  { %v1982_v32 = vrot.slane %v1975_v31, 2  ;;  %v3295_v33 = vpop.f32.mrb[37].mxu1 }
0x1b1d   :  { %v1978_v36 = vpop.f32.mrb[38].mxu1 }
0x1b1e   :  { %v1984_v18 = vadd.f32 %v1982_v32, %v4110_v19  ;;  %v3296_v58 = vpop.f32.mrb[39].mxu1 }
0x1b1f   :  { %v1898_v41 = vpop.f32.mrb[32].mxu0 }
0x1b20   :  { %3551 = vtanh.f32 %v1984_v18  ;;  %v1899_v42 = vadd.f32 %v1898_v41, %v4172_v45  ;;  %v3287_v43 = vpop.f32.mrb[33].mxu0  ;;  %v3012_v11 = vmul.f32 -1.442695, %v1984_v18 }
0x1b21   :  { %v1901_v59 = vpop.f32.mrb[34].mxu0 }
0x1b22   :  { %v3288_v44 = vpop.f32.mrb[35].mxu0  ;;  %3553 = vtanh.f32 %v1899_v42  ;;  %v3010_v13 = vmul.f32 -1.442695, %v1899_v42 }
0x1b23   :  { %3555 = vpow2.f32 %v3012_v11 }
0x1b24   :  { %3557 = vpow2.f32 %v3010_v13 }
0x1b2a   :  { %v3552_v8 = vpop.eup %3551 }
0x1b2b   :  { %1997 = vrot.lane.b32.xlu1 %v3552_v8, %s3695_s8 }
0x1b2c   :  { %v3554_v12 = vpop.eup %3553 }
0x1b2d   :  { %1913 = vrot.lane.b32.xlu0 %v3554_v12, %s3695_s8  ;;  %v3556_v19 = vpop.eup %3555 }
0x1b2e   :  { %v3558_v63 = vpop.eup %3557  ;;  %v1988_v46 = vadd.f32 1.0, %v3556_v19 }
0x1b2f   :  { %v1907_v7 = vadd.f32 1.0, %v3558_v63 }
0x1b30   :  { %3559 = vrcp.f32 %v1988_v46 }
0x1b31   :  { %3561 = vrcp.f32 %v1907_v7 }
0x1b3a   :  { %v3560_v47 = vpop.eup %3559 }
0x1b3b   :  { %v3562_v50 = vpop.eup %3561  ;;  %v1995_v53 = vmul.f32 %v3560_v47, %v1993_v52 }
0x1b3c   :  { %v1911_v28 = vmul.f32 %v3562_v50, %v4224_v22 }
0x1b9d   :  { %v1998_v48 = vpop.permute.xlu1 %1997 }
0x1b9e   :  { %v2000_v49 = vmul.f32 %v3560_v47, %v1998_v48 }
0x1b9f   :  { %v1914_v51 = vpop.permute.xlu0 %1913 }
0x1ba0   :  { %2002 = vrot.lane.b32.xlu1 %v2000_v49, %s3690_s4  ;;  %v1916_v10 = vmul.f32 %v3562_v50, %v1914_v51 }
0x1ba2   :  { %1918 = vrot.lane.b32.xlu0 %v1916_v10, %s3690_s4 }
0x1c12   :  { %v2003_v6 = vpop.permute.xlu1 %2002 }
0x1c13   :  { %v4262_v54 = vadd.f32 %v2003_v6, %v1995_v53 }
0x1c14   :  { %v1919_v14 = vpop.permute.xlu0 %1918 }
0x1c15   :  { %3563 = vtanh.f32 %v4262_v54  ;;  %v4266_v21 = vadd.f32 %v1919_v14, %v1911_v28  ;;  %v2153_v7 = vrot.slane %v4262_v54, 6 }
0x1c17   :  { %3565 = vtanh.f32 %v4266_v21 }
0x1c1f   :  { %v3564_v55 = vpop.eup %3563 }
0x1c20   :  { %2008 = vrot.lane.b32.xlu1 %v3564_v55, %s3695_s8 }
0x1c21   :  { %v3566_v56 = vpop.eup %3565 }
0x1c22   :  { %1924 = vrot.lane.b32.xlu0 %v3566_v56, %s3695_s8 }
0x1c92   :  { %v2009_v57 = vpop.permute.xlu1 %2008 }
0x1c93   :  { %v2011_v60 = vmul.f32 %v3560_v47, %v2009_v57 }
0x1c94   :  { %v1925_v61 = vpop.permute.xlu0 %1924 }
0x1c95   :  { %v2096_v9 = vpack.c.bf16 %v2011_v60, %v2011_v60  ;;  %2013 = vrot.lane.b32.xlu0 %v2011_v60, %s3690_s4  ;;  %v4272_v22 = vmul.f32 %v3562_v50, %v1925_v61 }
0x1c97   :  { %v2098_v17 = vrot.slane %v2096_v9, 3  ;;  %v2016_v0 = vrot.slane %v4272_v22, 2 }
0x1c99   :  { %2099 = vrot.lane.b32.xlu0 %v2098_v17, %s3690_s4  ;;  %2017 = vrot.lane.b32.xlu1 %v2016_v0, %s3695_s8 }
0x1d07   :  { %v2014_v1 = vpop.permute.xlu0 %2013 }
0x1d0b   :  { %v2100_v2 = vpop.permute.xlu0 %2099  ;;  %v2018_v5 = vpop.permute.xlu1 %2017 }
0x1d0c   :  { %3314 = vmatmul.mubr.msk.bf16.vlgmr.msra.gmra.mrb[36].mxu0 %vm623_vm3, %v2100_v2  ;;  %v2020_v15 = vsel %vm623_vm3, %v2014_v1, %v2018_v5 }
0x1d0d   :  { %3318 = vmatpush3.bf16.msra.mxu0 %v4123_v37  ;;  %3325 = vmatprep.mubr.msk.bf16.mxu0 %vm3692_vm4, %v3691_v35  ;;  %v2021_v20 = vpack.c.bf16 %v2020_v15, %v2020_v15 }
0x1d0e   :  { %3319 = vmatprep.subr.bf16.mxu0 %v3691_v35 }
0x1d0f   :  { %v2023_v3 = vrot.slane %v2021_v20, 3 }
0x1d11   :  { %3320 = vmatpush3.bf16.msra.mxu0 %v4129_v38  ;;  %3306 = vmatmul.mubr.msk.bf16.vlgmr.msra.gmra.mrb[40].mxu1 %vm1534_vm5, %v2023_v3 }
0x1d12   :  { %3321 = vmatprep.subr.bf16.mxu0 %v3691_v35  ;;  %3330 = vmatpush3.bf16.msra.mxu1 %v4064_v34 }
0x1d13   :  { %3333 = vmatprep.mubr.msk.bf16.mxu1 %vm3692_vm4, %v3691_v35  ;;  %3331 = vmatprep.subr.bf16.mxu1 %v3691_v35 }
0x1d15   :  { %3322 = vmatpush3.bf16.msra.mxu0 %v4136_v39 }
0x1d16   :  { %3323 = vmatprep.subr.bf16.mxu0 %v3691_v35  ;;  %3332 = vmatpush3.bf16.msra.mxu1 %v4074_v62 }
0x1d17   :  { %3337 = vmatprep.subr.bf16.mxu1 %v3691_v35 }
0x1d19   :  { %3324 = vmatpush3.bf16.msra.mxu0 %v4145_v40 }
0x1d1a   :  { %3349 = vmatprep.subr.bf16.mxu0 %v3691_v35 }
0x1ddf   :  { %v2138_v16 = vpop.f32.mrb[36].mxu0 }
0x1de0   :  { %v2144_v25 = vadd.f32 %v2138_v16, %v4113_v23  ;;  %v3315_v27 = vpop.f32.mrb[37].mxu0 }
0x1de1   :  { %v2141_v26 = vpop.f32.mrb[38].mxu0 }
0x1de2   :  { %3567 = vtanh.f32 %v2144_v25  ;;  %v3316_v30 = vpop.f32.mrb[39].mxu0  ;;  %v3016_v41 = vmul.f32 -1.442695, %v2144_v25 }
0x1de4   :  { %v2061_v29 = vpop.f32.mrb[40].mxu1 }
0x1de5   :  { %v2062_v31 = vadd.f32 %v2061_v29, %v4172_v45  ;;  %v3307_v32 = vpop.f32.mrb[41].mxu1 }
0x1de6   :  { %v2064_v33 = vpop.f32.mrb[42].mxu1 }
0x1de7   :  { %3569 = vtanh.f32 %v2062_v31  ;;  %v3308_v36 = vpop.f32.mrb[43].mxu1  ;;  %v3014_v42 = vmul.f32 -1.442695, %v2062_v31 }
0x1de8   :  { %3571 = vpow2.f32 %v3016_v41 }
0x1de9   :  { %3573 = vpow2.f32 %v3014_v42 }
0x1dec   :  { %v3568_v18 = vpop.eup %3567 }
0x1ded   :  { %2157 = vrot.lane.b32.xlu0 %v3568_v18, %s3695_s8 }
0x1df1   :  { %v3570_v58 = vpop.eup %3569 }
0x1df2   :  { %2076 = vrot.lane.b32.xlu1 %v3570_v58, %s3695_s8  ;;  %v3572_v43 = vpop.eup %3571 }
0x1df3   :  { %v2148_v59 = vadd.f32 1.0, %v3572_v43  ;;  %v3574_v44 = vpop.eup %3573 }
0x1df4   :  { %v2070_v8 = vadd.f32 1.0, %v3574_v44 }
0x1df5   :  { %3575 = vrcp.f32 %v2148_v59 }
0x1df6   :  { %3577 = vrcp.f32 %v2070_v8 }
0x1dff   :  { %v3576_v12 = vpop.eup %3575 }
0x1e00   :  { %v3578_v19 = vpop.eup %3577  ;;  %v2155_v47 = vmul.f32 %v3576_v12, %v2153_v7 }
0x1e01   :  { %v2074_v50 = vmul.f32 %v3578_v19, %v4266_v21 }
0x1e5f   :  { %v2158_v11 = vpop.permute.xlu0 %2157 }
0x1e60   :  { %v2160_v13 = vmul.f32 %v3576_v12, %v2158_v11 }
0x1e62   :  { %2162 = vrot.lane.b32.xlu0 %v2160_v13, %s3690_s4 }
0x1e64   :  { %v2077_v63 = vpop.permute.xlu1 %2076 }
0x1e65   :  { %v2079_v46 = vmul.f32 %v3578_v19, %v2077_v63 }
0x1e67   :  { %2081 = vrot.lane.b32.xlu1 %v2079_v46, %s3690_s4 }
0x1ed4   :  { %v2163_v48 = vpop.permute.xlu0 %2162 }
0x1ed5   :  { %v4303_v49 = vadd.f32 %v2163_v48, %v2155_v47 }
0x1ed7   :  { %3579 = vtanh.f32 %v4303_v49  ;;  %v2312_v59 = vrot.slane %v4303_v49, 6 }
0x1ed9   :  { %v2082_v51 = vpop.permute.xlu1 %2081 }
0x1eda   :  { %v4307_v10 = vadd.f32 %v2082_v51, %v2074_v50 }
0x1edc   :  { %3581 = vtanh.f32 %v4307_v10 }
0x1ee1   :  { %v3580_v52 = vpop.eup %3579 }
0x1ee2   :  { %2168 = vrot.lane.b32.xlu0 %v3580_v52, %s3695_s8 }
0x1ee6   :  { %v3582_v53 = vpop.eup %3581 }
0x1ee7   :  { %2087 = vrot.lane.b32.xlu1 %v3582_v53, %s3695_s8 }
0x1f54   :  { %v2169_v6 = vpop.permute.xlu0 %2168 }
0x1f55   :  { %v2171_v54 = vmul.f32 %v3576_v12, %v2169_v6 }
0x1f57   :  { %2173 = vrot.lane.b32.xlu1 %v2171_v54, %s3690_s4  ;;  %v2253_v28 = vpack.c.bf16 %v2171_v54, %v2171_v54 }
0x1f59   :  { %v2088_v14 = vpop.permute.xlu1 %2087 }
0x1f5a   :  { %v4313_v55 = vmul.f32 %v3578_v19, %v2088_v14 }
0x1f5b   :  { %2255 = vrot.lane.b32.xlu1 %v2253_v28, %s3690_s4 }
0x1f5c   :  { %2176 = vrot.lane.b32.xlu0 %v4313_v55, %s3695_s8 }
0x1fc9   :  { %v2174_v21 = vpop.permute.xlu1 %2173 }
0x1fcd   :  { %v2256_v56 = vpop.permute.xlu1 %2255 }
0x1fce   :  { %3334 = vmatmul.mubr.msk.bf16.vlgmr.msra.gmra.mrb[44].mxu1 %vm623_vm3, %v2256_v56  ;;  %v2177_v57 = vpop.permute.xlu0 %2176 }
0x1fcf   :  { %3338 = vmatpush3.bf16.msra.mxu1 %v4123_v37  ;;  %3345 = vmatprep.mubr.msk.bf16.mxu1 %vm3692_vm4, %v3691_v35  ;;  %v2179_v60 = vsel %vm623_vm3, %v2174_v21, %v2177_v57  ;;  %v3639_v21 = vld [vmem:[%s4528_s11] sm:$0xff]  }
0x1fd0   :  { %3339 = vmatprep.subr.bf16.mxu1 %v3691_v35  ;;  %v2180_v9 = vpack.c.bf16 %v2179_v60, %v2179_v60 }
0x1fd2   :  { %3326 = vmatmul.mubr.msk.bf16.vlgmr.msra.gmra.mrb[40].mxu0 %vm1534_vm5, %v2180_v9 }
0x1fd3   :  { %3340 = vmatpush3.bf16.msra.mxu1 %v4129_v38  ;;  %3350 = vmatpush3.bf16.msra.mxu0 %v4064_v34 }
0x1fd4   :  { %3341 = vmatprep.subr.bf16.mxu1 %v3691_v35  ;;  %3351 = vmatprep.subr.bf16.mxu0 %v3691_v35 }
0x1fd5   :  { %3353 = vmatprep.mubr.msk.bf16.mxu0 %vm3692_vm4, %v3691_v35 }
0x1fd7   :  { %3342 = vmatpush3.bf16.msra.mxu1 %v4136_v39  ;;  %3352 = vmatpush3.bf16.msra.mxu0 %v4074_v62 }
0x1fd8   :  { %3343 = vmatprep.subr.bf16.mxu1 %v3691_v35  ;;  %3357 = vmatprep.subr.bf16.mxu0 %v3691_v35 }
0x1fdb   :  { %3344 = vmatpush3.bf16.msra.mxu1 %v4145_v40 }
0x1fdc   :  { %3369 = vmatprep.subr.bf16.mxu1 %v3691_v35 }
0x20a1   :  { %v2294_v34 = vpop.f32.mrb[44].mxu1 }
0x20a2   :  { %v2301_v61 = vrot.slane %v2294_v34, 6  ;;  %v3335_v17 = vpop.f32.mrb[45].mxu1 }
0x20a3   :  { %v2297_v0 = vpop.f32.mrb[46].mxu1 }
0x20a4   :  { %v2303_v1 = vadd.f32 %v2301_v61, %v4113_v23  ;;  %v3336_v2 = vpop.f32.mrb[47].mxu1 }
0x20a5   :  { %v2218_v5 = vpop.f32.mrb[40].mxu0 }
0x20a6   :  { %3583 = vtanh.f32 %v2303_v1  ;;  %v2219_v15 = vadd.f32 %v2218_v5, %v4172_v45  ;;  %v3327_v20 = vpop.f32.mrb[41].mxu0  ;;  %v3020_v26 = vmul.f32 -1.442695, %v2303_v1 }
0x20a7   :  { %v2221_v3 = vpop.f32.mrb[42].mxu0 }
0x20a8   :  { %3585 = vtanh.f32 %v2219_v15  ;;  %v3328_v16 = vpop.f32.mrb[43].mxu0  ;;  %v3018_v30 = vmul.f32 -1.442695, %v2219_v15 }
0x20a9   :  { %3587 = vpow2.f32 %v3020_v26 }
0x20aa   :  { %3589 = vpow2.f32 %v3018_v30 }
0x20b0   :  { %v3584_v25 = vpop.eup %3583 }
0x20b1   :  { %2316 = vrot.lane.b32.xlu1 %v3584_v25, %s3695_s8 }
0x20b2   :  { %v3586_v27 = vpop.eup %3585 }
0x20b3   :  { %2233 = vrot.lane.b32.xlu0 %v3586_v27, %s3695_s8  ;;  %v3588_v29 = vpop.eup %3587 }
0x20b4   :  { %v3590_v31 = vpop.eup %3589  ;;  %v2307_v32 = vadd.f32 1.0, %v3588_v29 }
0x20b5   :  { %v2227_v33 = vadd.f32 1.0, %v3590_v31 }
0x20b6   :  { %3591 = vrcp.f32 %v2307_v32 }
0x20b7   :  { %3593 = vrcp.f32 %v2227_v33 }
0x20c0   :  { %v3592_v36 = vpop.eup %3591 }
0x20c1   :  { %v3594_v41 = vpop.eup %3593  ;;  %v2314_v44 = vmul.f32 %v3592_v36, %v2312_v59 }
0x20c2   :  { %v2231_v11 = vmul.f32 %v3594_v41, %v4307_v10 }
0x2123   :  { %v2317_v18 = vpop.permute.xlu1 %2316 }
0x2124   :  { %v2319_v58 = vmul.f32 %v3592_v36, %v2317_v18 }
0x2125   :  { %v2234_v42 = vpop.permute.xlu0 %2233 }
0x2126   :  { %2321 = vrot.lane.b32.xlu1 %v2319_v58, %s3690_s4  ;;  %v2236_v43 = vmul.f32 %v3594_v41, %v2234_v42 }
0x2128   :  { %2238 = vrot.lane.b32.xlu0 %v2236_v43, %s3690_s4 }
0x2198   :  { %v2322_v8 = vpop.permute.xlu1 %2321 }
0x2199   :  { %v4344_v12 = vadd.f32 %v2322_v8, %v2314_v44 }
0x219a   :  { %v2239_v13 = vpop.permute.xlu0 %2238 }
0x219b   :  { %3595 = vtanh.f32 %v4344_v12  ;;  %v4348_v19 = vadd.f32 %v2239_v13, %v2231_v11  ;;  %v2475_v18 = vrot.slane %v4344_v12, 6 }
0x219d   :  { %3597 = vtanh.f32 %v4348_v19 }
0x21a5   :  { %v3596_v63 = vpop.eup %3595 }
0x21a6   :  { %2327 = vrot.lane.b32.xlu1 %v3596_v63, %s3695_s8 }
0x21a7   :  { %v3598_v46 = vpop.eup %3597 }
0x21a8   :  { %2244 = vrot.lane.b32.xlu0 %v3598_v46, %s3695_s8 }
0x2218   :  { %v2328_v7 = vpop.permute.xlu1 %2327 }
0x2219   :  { %v2330_v47 = vmul.f32 %v3592_v36, %v2328_v7 }
0x221a   :  { %v2245_v49 = vpop.permute.xlu0 %2244 }
0x221b   :  { %v2415_v48 = vpack.c.bf16 %v2330_v47, %v2330_v47  ;;  %2332 = vrot.lane.b32.xlu0 %v2330_v47, %s3690_s4  ;;  %v4354_v50 = vmul.f32 %v3594_v41, %v2245_v49 }
0x221d   :  { %v2417_v51 = vrot.slane %v2415_v48, 1  ;;  %v2335_v10 = vrot.slane %v4354_v50, 6 }
0x221f   :  { %2418 = vrot.lane.b32.xlu0 %v2417_v51, %s3690_s4  ;;  %2336 = vrot.lane.b32.xlu1 %v2335_v10, %s3695_s8 }
0x228d   :  { %v2333_v52 = vpop.permute.xlu0 %2332 }
0x2291   :  { %v2419_v53 = vpop.permute.xlu0 %2418  ;;  %v2337_v6 = vpop.permute.xlu1 %2336 }
0x2292   :  { %3354 = vmatmul.mubr.msk.bf16.vlgmr.msra.gmra.mrb[44].mxu0 %vm623_vm3, %v2419_v53  ;;  %v2339_v54 = vsel %vm623_vm3, %v2333_v52, %v2337_v6 }
0x2293   :  { %3358 = vmatpush3.bf16.msra.mxu0 %v4123_v37  ;;  %3365 = vmatprep.mubr.msk.bf16.mxu0 %vm3692_vm4, %v3691_v35  ;;  %v2340_v28 = vpack.c.bf16 %v2339_v54, %v2339_v54 }
0x2294   :  { %3359 = vmatprep.subr.bf16.mxu0 %v3691_v35 }
0x2295   :  { %v2342_v14 = vrot.slane %v2340_v28, 1 }
0x2297   :  { %3360 = vmatpush3.bf16.msra.mxu0 %v4129_v38  ;;  %3346 = vmatmul.mubr.msk.bf16.vlgmr.msra.gmra.mrb[48].mxu1 %vm1534_vm5, %v2342_v14 }
0x2298   :  { %3361 = vmatprep.subr.bf16.mxu0 %v3691_v35  ;;  %3370 = vmatpush3.bf16.msra.mxu1 %v3639_v21 }
0x2299   :  { %3373 = vmatprep.mubr.msk.bf16.mxu1 %vm3692_vm4, %v3691_v35  ;;  %3371 = vmatprep.subr.bf16.mxu1 %v3691_v35 }
0x229b   :  { %3362 = vmatpush3.bf16.msra.mxu0 %v4136_v39 }
0x229c   :  { %3363 = vmatprep.subr.bf16.mxu0 %v3691_v35  ;;  %3372 = vmatpush3.bf16.msra.mxu1 %v4074_v62 }
0x229d   :  { %3377 = vmatprep.subr.bf16.mxu1 %v3691_v35 }
0x229f   :  { %3364 = vmatpush3.bf16.msra.mxu0 %v4145_v40 }
0x22a0   :  { %3389 = vmatprep.subr.bf16.mxu0 %v3691_v35 }
0x2365   :  { %v2457_v56 = vpop.f32.mrb[44].mxu0 }
0x2366   :  { %v2464_v57 = vrot.slane %v2457_v56, 4  ;;  %v3355_v60 = vpop.f32.mrb[45].mxu0 }
0x2367   :  { %v2460_v9 = vpop.f32.mrb[46].mxu0 }
0x2368   :  { %v2466_v34 = vadd.f32 %v2464_v57, %v4113_v23  ;;  %v3356_v61 = vpop.f32.mrb[47].mxu0 }
0x236a   :  { %3599 = vtanh.f32 %v2466_v34  ;;  %v2380_v17 = vpop.f32.mrb[48].mxu1  ;;  %v3024_v20 = vmul.f32 -1.442695, %v2466_v34 }
0x236b   :  { %v2381_v0 = vadd.f32 %v2380_v17, %v4172_v45  ;;  %v3347_v1 = vpop.f32.mrb[49].mxu1 }
0x236c   :  { %v2383_v2 = vpop.f32.mrb[50].mxu1 }
0x236d   :  { %3601 = vtanh.f32 %v2381_v0  ;;  %v3348_v62 = vpop.f32.mrb[51].mxu1  ;;  %v3022_v3 = vmul.f32 -1.442695, %v2381_v0 }
0x236e   :  { %3603 = vpow2.f32 %v3024_v20 }
0x236f   :  { %3605 = vpow2.f32 %v3022_v3 }
0x2374   :  { %v3600_v5 = vpop.eup %3599 }
0x2375   :  { %2479 = vrot.lane.b32.xlu0 %v3600_v5, %s3695_s8 }
0x2377   :  { %v3602_v15 = vpop.eup %3601 }
0x2378   :  { %2395 = vrot.lane.b32.xlu1 %v3602_v15, %s3695_s8  ;;  %v3604_v16 = vpop.eup %3603 }
0x2379   :  { %v2470_v25 = vadd.f32 1.0, %v3604_v16  ;;  %v3606_v27 = vpop.eup %3605 }
0x237a   :  { %v2389_v26 = vadd.f32 1.0, %v3606_v27 }
0x237b   :  { %3607 = vrcp.f32 %v2470_v25 }
0x237c   :  { %3609 = vrcp.f32 %v2389_v26 }
0x2385   :  { %v3608_v30 = vpop.eup %3607 }
0x2386   :  { %v3610_v32 = vpop.eup %3609  ;;  %v2477_v58 = vmul.f32 %v3608_v30, %v2475_v18 }
0x2387   :  { %v2393_v43 = vmul.f32 %v3610_v32, %v4348_v19 }
0x23e7   :  { %v2480_v29 = vpop.permute.xlu0 %2479 }
0x23e8   :  { %v2482_v31 = vmul.f32 %v3608_v30, %v2480_v29 }
0x23ea   :  { %2484 = vrot.lane.b32.xlu0 %v2482_v31, %s3690_s4  ;;  %v2396_v33 = vpop.permute.xlu1 %2395 }
0x23eb   :  { %v2398_v36 = vmul.f32 %v3610_v32, %v2396_v33 }
0x23ed   :  { %2400 = vrot.lane.b32.xlu1 %v2398_v36, %s3690_s4 }
0x245c   :  { %v2485_v41 = vpop.permute.xlu0 %2484 }
0x245d   :  { %v4387_v42 = vadd.f32 %v2485_v41, %v2477_v58 }
0x245f   :  { %3611 = vtanh.f32 %v4387_v42  ;;  %v2401_v59 = vpop.permute.xlu1 %2400  ;;  %v2638_v16 = vrot.slane %v4387_v42, 6 }
0x2460   :  { %v4391_v44 = vadd.f32 %v2401_v59, %v2393_v43 }
0x2462   :  { %3613 = vtanh.f32 %v4391_v44 }
0x2469   :  { %v3612_v8 = vpop.eup %3611 }
0x246a   :  { %2490 = vrot.lane.b32.xlu0 %v3612_v8, %s3695_s8 }
0x246c   :  { %v3614_v11 = vpop.eup %3613 }
0x246d   :  { %2406 = vrot.lane.b32.xlu1 %v3614_v11, %s3695_s8 }
0x24dc   :  { %v2491_v12 = vpop.permute.xlu0 %2490 }
0x24dd   :  { %v2493_v13 = vmul.f32 %v3608_v30, %v2491_v12 }
0x24df   :  { %v2578_v63 = vpack.c.bf16 %v2493_v13, %v2493_v13  ;;  %2495 = vrot.lane.b32.xlu1 %v2493_v13, %s3690_s4  ;;  %v2407_v46 = vpop.permute.xlu1 %2406 }
0x24e0   :  { %v4397_v47 = vmul.f32 %v3610_v32, %v2407_v46 }
0x24e1   :  { %v2580_v7 = vrot.slane %v2578_v63, 2 }
0x24e2   :  { %v2498_v19 = vrot.slane %v4397_v47, 4 }
0x24e3   :  { %2581 = vrot.lane.b32.xlu1 %v2580_v7, %s3690_s4 }
0x24e4   :  { %2499 = vrot.lane.b32.xlu0 %v2498_v19, %s3695_s8 }
0x2551   :  { %v2496_v48 = vpop.permute.xlu1 %2495 }
0x2555   :  { %v2582_v49 = vpop.permute.xlu1 %2581 }
0x2556   :  { %3374 = vmatmul.mubr.msk.bf16.vlgmr.msra.gmra.mrb[52].mxu1 %vm623_vm3, %v2582_v49  ;;  %v2500_v51 = vpop.permute.xlu0 %2499 }
0x2557   :  { %3378 = vmatpush3.bf16.msra.mxu1 %v4123_v37  ;;  %3385 = vmatprep.mubr.msk.bf16.mxu1 %vm3692_vm4, %v3691_v35  ;;  %v2502_v10 = vsel %vm623_vm3, %v2496_v48, %v2500_v51 }
0x2558   :  { %3379 = vmatprep.subr.bf16.mxu1 %v3691_v35  ;;  %v2503_v52 = vpack.c.bf16 %v2502_v10, %v2502_v10 }
0x255a   :  { %v2505_v53 = vrot.slane %v2503_v52, 2 }
0x255b   :  { %3380 = vmatpush3.bf16.msra.mxu1 %v4129_v38 }
0x255c   :  { %3381 = vmatprep.subr.bf16.mxu1 %v3691_v35  ;;  %3366 = vmatmul.mubr.msk.bf16.vlgmr.msra.gmra.mrb[48].mxu0 %vm1534_vm5, %v2505_v53 }
0x255d   :  { %3393 = vmatprep.mubr.msk.bf16.mxu0 %vm3692_vm4, %v3691_v35 }
0x255f   :  { %3382 = vmatpush3.bf16.msra.mxu1 %v4136_v39 }
0x2560   :  { %3383 = vmatprep.subr.bf16.mxu1 %v3691_v35 }
0x2563   :  { %3384 = vmatpush3.bf16.msra.mxu1 %v4145_v40 }
0x2629   :  { %v2620_v37 = vpop.f32.mrb[52].mxu1 }
0x262a   :  { %v2627_v6 = vrot.slane %v2620_v37, 2  ;;  %v3375_v54 = vpop.f32.mrb[53].mxu1 }
0x262b   :  { %v2623_v28 = vpop.f32.mrb[54].mxu1 }
0x262c   :  { %v2629_v14 = vadd.f32 %v2627_v6, %v4113_v23  ;;  %v3376_v38 = vpop.f32.mrb[55].mxu1 }
0x262d   :  { %v3444_v38 = vld [vmem:[%s4531_s14] sm:$0xff]  }
0x262e   :  { %3615 = vtanh.f32 %v2629_v14  ;;  %v3028_v40 = vmul.f32 -1.442695, %v2629_v14  ;;  %3390 = vmatpush3.bf16.msra.mxu0 %v3444_v38 }
0x262f   :  { %v2543_v21 = vpop.f32.mrb[48].mxu0  ;;  %3391 = vmatprep.subr.bf16.mxu0 %v3691_v35 }
0x2630   :  { %v2544_v56 = vadd.f32 %v2543_v21, %v4172_v45  ;;  %v3367_v57 = vpop.f32.mrb[49].mxu0  ;;  %v3445_v21 = vld [vmem:[%s4531_s14 + $0x8] sm:$0xff]  }
0x2631   :  { %v2546_v60 = vpop.f32.mrb[50].mxu0 }
0x2632   :  { %3617 = vtanh.f32 %v2544_v56  ;;  %v3368_v9 = vpop.f32.mrb[51].mxu0  ;;  %v3026_v61 = vmul.f32 -1.442695, %v2544_v56  ;;  %3392 = vmatpush3.bf16.msra.mxu0 %v3445_v21 }
0x2633   :  { %3619 = vpow2.f32 %v3028_v40  ;;  %3397 = vmatprep.subr.bf16.mxu0 %v3691_v35 }
0x2634   :  { %3621 = vpow2.f32 %v3026_v61 }
0x2638   :  { %v3616_v39 = vpop.eup %3615 }
0x2639   :  { %2642 = vrot.lane.b32.xlu1 %v3616_v39, %s3695_s8 }
0x263c   :  { %v3618_v34 = vpop.eup %3617 }
0x263d   :  { %2558 = vrot.lane.b32.xlu0 %v3618_v34, %s3695_s8  ;;  %v3620_v23 = vpop.eup %3619 }
0x263e   :  { %v2633_v17 = vadd.f32 1.0, %v3620_v23  ;;  %v3622_v0 = vpop.eup %3621 }
0x263f   :  { %v2552_v1 = vadd.f32 1.0, %v3622_v0  ;;  %v3031_v0 = vld [vmem:[%s4532_s15] ss:$0 sm:$0xff] }
0x2640   :  { %3623 = vrcp.f32 %v2633_v17  ;;  %v3446_v17 = vld [vmem:[%s4533_s16] sm:$0xff]   ;;  %s2911_s16 = sshll.u32 %s3697_s10, 4  ;;  %s2912_s16 = int_to_ptr.vmem [resolvable:$true] %s2911_s16 }
0x2641   :  { %3625 = vrcp.f32 %v2552_v1 }
0x264a   :  { %v3624_v2 = vpop.eup %3623 }
0x264b   :  { %v3626_v15 = vpop.eup %3625  ;;  %v2640_v25 = vmul.f32 %v3624_v2, %v2638_v16 }
0x264c   :  { %v2556_v30 = vmul.f32 %v3626_v15, %v4391_v44 }
0x26ab   :  { %v2643_v62 = vpop.permute.xlu1 %2642 }
0x26ac   :  { %v2645_v5 = vmul.f32 %v3624_v2, %v2643_v62 }
0x26ae   :  { %2647 = vrot.lane.b32.xlu1 %v2645_v5, %s3690_s4 }
0x26af   :  { %v2559_v20 = vpop.permute.xlu0 %2558 }
0x26b0   :  { %v2561_v3 = vmul.f32 %v3626_v15, %v2559_v20 }
0x26b2   :  { %2563 = vrot.lane.b32.xlu0 %v2561_v3, %s3690_s4 }
0x2720   :  { %v2648_v27 = vpop.permute.xlu1 %2647 }
0x2721   :  { %v2650_v26 = vadd.f32 %v2648_v27, %v2640_v25 }
0x2723   :  { %3627 = vtanh.f32 %v2650_v26 }
0x2724   :  { %v2564_v29 = vpop.permute.xlu0 %2563 }
0x2725   :  { %v2566_v31 = vadd.f32 %v2564_v29, %v2556_v30 }
0x2727   :  { %3629 = vtanh.f32 %v2566_v31 }
0x272d   :  { %v3628_v32 = vpop.eup %3627 }
0x272e   :  { %2653 = vrot.lane.b32.xlu1 %v3628_v32, %s3695_s8 }
0x2731   :  { %v3630_v33 = vpop.eup %3629 }
0x2732   :  { %2569 = vrot.lane.b32.xlu0 %v3630_v33, %s3695_s8 }
0x27a0   :  { %v2654_v36 = vpop.permute.xlu1 %2653 }
0x27a1   :  { %v2656_v18 = vmul.f32 %v3624_v2, %v2654_v36 }
0x27a3   :  { %2658 = vrot.lane.b32.xlu0 %v2656_v18, %s3690_s4 }
0x27a4   :  { %v2570_v58 = vpop.permute.xlu0 %2569 }
0x27a5   :  { %v2572_v41 = vmul.f32 %v3626_v15, %v2570_v58 }
0x27a7   :  { %v2661_v42 = vrot.slane %v2572_v41, 2 }
0x27a9   :  { %2662 = vrot.lane.b32.xlu1 %v2661_v42, %s3695_s8 }
0x2815   :  { %v2659_v43 = vpop.permute.xlu0 %2658 }
0x2816   :  { %2878 = vst.msk [vmem:[#allocation3 - $0x6] sm:$0xc0] %vm2877_vm6, %v2659_v43 }
0x281b   :  { %v2663_v59 = vpop.permute.xlu1 %2662 }
0x281c   :  { %v2665_v44 = vsel %vm623_vm3, %v2659_v43, %v2663_v59 }
0x281d   :  { %v2666_v8 = vpack.c.bf16 %v2665_v44, %v2665_v44 }
0x281f   :  { %v2668_v11 = vrot.slane %v2666_v8, 3 }
0x2821   :  { %3386 = vmatmul.mubr.msk.bf16.vlgmr.msra.gmra.mrb[56].mxu1 %vm1534_vm5, %v2668_v11 }
0x28f4   :  { %v2706_v12 = vpop.f32.mrb[56].mxu1 }
0x28f5   :  { %v2707_v13 = vadd.f32 %v2706_v12, %v4172_v45  ;;  %v3387_v63 = vpop.f32.mrb[57].mxu1 }
0x28f6   :  { %v2709_v46 = vpop.f32.mrb[58].mxu1 }
0x28f7   :  { %3631 = vtanh.f32 %v2707_v13  ;;  %v3388_v7 = vpop.f32.mrb[59].mxu1  ;;  %v3030_v48 = vmul.f32 -1.442695, %v2707_v13 }
0x28f9   :  { %3633 = vpow2.f32 %v3030_v48 }
0x2901   :  { %v3632_v19 = vpop.eup %3631 }
0x2902   :  { %2721 = vrot.lane.b32.xlu0 %v3632_v19, %s3695_s8 }
0x2903   :  { %v3634_v49 = vpop.eup %3633 }
0x2904   :  { %v2715_v51 = vadd.f32 1.0, %v3634_v49 }
0x2906   :  { %3635 = vrcp.f32 %v2715_v51 }
0x2910   :  { %v3636_v10 = vpop.eup %3635 }
0x2911   :  { %v2719_v45 = vmul.f32 %v3636_v10, %v2566_v31 }
0x2974   :  { %v2722_v52 = vpop.permute.xlu0 %2721 }
0x2975   :  { %v2724_v53 = vmul.f32 %v3636_v10, %v2722_v52 }
0x2977   :  { %2726 = vrot.lane.b32.xlu1 %v2724_v53, %s3690_s4 }
0x297b   :  { %1603 = vrot.lane.b32.xlu1 %v4189_v24, %s3690_s4 }
0x297f   :  { %1929 = vrot.lane.b32.xlu1 %v4272_v22, %s3690_s4 }
0x2983   :  { %2249 = vrot.lane.b32.xlu1 %v4354_v50, %s3690_s4 }
0x2987   :  { %2574 = vrot.lane.b32.xlu1 %v2572_v41, %s3690_s4 }
0x298b   :  { %2882 = vrot.lane.b32.xlu1 %v2650_v26, %s3688_s25 }
0x29e9   :  { %v2727_v37 = vpop.permute.xlu1 %2726 }
0x29ea   :  { %v2729_v6 = vadd.f32 %v2727_v37, %v2719_v45 }
0x29ec   :  { %3637 = vtanh.f32 %v2729_v6 }
0x29ed   :  { %v1604_v54 = vpop.permute.xlu1 %1603 }
0x29ee   :  { %1607 = vst.msk [vmem:[#allocation2] sm:$0x3] %vm1606_vm7, %v1604_v54 }
0x29f1   :  { %v1930_v28 = vpop.permute.xlu1 %1929 }
0x29f2   :  { %1932 = vst.msk [vmem:[#allocation2 + $0x4] sm:$0x3] %vm1606_vm7, %v1930_v28 }
0x29f5   :  { %v2250_v24 = vpop.permute.xlu1 %2249 }
0x29f6   :  { %v3638_v22 = vpop.eup %3637  ;;  %2252 = vst.msk [vmem:[#allocation2 + $0x8] sm:$0x3] %vm1606_vm7, %v2250_v24 }
0x29f7   :  { %2732 = vrot.lane.b32.xlu0 %v3638_v22, %s3695_s8 }
0x29f9   :  { %v2575_v50 = vpop.permute.xlu1 %2574 }
0x29fa   :  { %2577 = vst.msk [vmem:[#allocation2 + $0xc] sm:$0x3] %vm1606_vm7, %v2575_v50 }
0x29fb   :  { %1766 = vrot.lane.b32.xlu0 %v4230_v4, %s3690_s4 }
0x29fd   :  { %v2883_v14 = vpop.permute.xlu1 %2882 }
0x29fe   :  { %2885 = vst.msk [vmem:[#allocation5 - $0x6] sm:$0xc0] %vm2877_vm6, %v2883_v14 }
0x29ff   :  { %2092 = vrot.lane.b32.xlu0 %v4313_v55, %s3690_s4 }
0x2a03   :  { %2411 = vrot.lane.b32.xlu0 %v4397_v47, %s3690_s4 }
0x2a69   :  { %v2733_v4 = vpop.permute.xlu0 %2732 }
0x2a6a   :  { %v2735_v56 = vmul.f32 %v3636_v10, %v2733_v4 }
0x2a6c   :  { %2737 = vrot.lane.b32.xlu0 %v2735_v56, %s3690_s4 }
0x2a6d   :  { %v1767_v55 = vpop.permute.xlu0 %1766 }
0x2a6e   :  { %1769 = vst.msk [vmem:[#allocation2 + $0x2] sm:$0x3] %vm1606_vm7, %v1767_v55 }
0x2a70   :  { %2887 = vrot.lane.b32.xlu0 %v2729_v6, %s3688_s25 }
0x2a71   :  { %v2093_v47 = vpop.permute.xlu0 %2092 }
0x2a72   :  { %2095 = vst.msk [vmem:[#allocation2 + $0x6] sm:$0x3] %vm1606_vm7, %v2093_v47 }
0x2a75   :  { %v2412_v57 = vpop.permute.xlu0 %2411 }
0x2a76   :  { %2414 = vst.msk [vmem:[#allocation2 + $0xa] sm:$0x3] %vm1606_vm7, %v2412_v57 }
0x2a79   :  { %v2741_v39 = vld [vmem:[#allocation2] sm:$0xff] }
0x2a7a   :  { %v2743_v40 = vmax.f32 %v2741_v39, 0.0 }
0x2ade   :  { %v2738_v60 = vpop.permute.xlu0 %2737 }
0x2adf   :  { %2740 = vst.msk [vmem:[#allocation2 + $0xe] sm:$0x3] %vm1606_vm7, %v2738_v60  ;;  %2880 = vst.msk [vmem:[#allocation3 + $0x2] sm:$0x3] %vm1606_vm7, %v2738_v60 }
0x2ae2   :  { %v2888_v9 = vpop.permute.xlu0 %2887 }
0x2ae3   :  { %2891 = vst.msk [vmem:[#allocation5 + $0x2] sm:$0x3] %vm1606_vm7, %v2888_v9 }
0x2ae6   :  { %v2742_v34 = vld [vmem:[#allocation2 + $0x8] sm:$0xff] }
0x2ae7   :  { %v2744_v61 = vmax.f32 %v2742_v34, 0.0 }
0x2ae9   :  { %v2749_v23 = vpack.c.bf16 %v2744_v61, %v2743_v40 }
0x2aeb   :  { %3394 = vmatmul.mubr.msk.bf16.vlgmr.msra.gmra.mrb[52].mxu0 %vm623_vm3, %v2749_v23 }
0x2aec   :  { %3399 = vmatprep.mubr.msk.bf16.mxu0 %vm3692_vm4, %v3691_v35  ;;  %3398 = vmatpush3.bf16.msra.mxu0 %v3446_v17 }
0x2bbe   :  { %v2806_v1 = vpop.f32.mrb[52].mxu0 }
0x2bbf   :  { %v2807_v2 = vadd.f32 %v3031_v0, %v2806_v1  ;;  %v3395_v62 = vpop.f32.mrb[53].mxu0 }
0x2bc0   :  { %v2809_v5 = vpop.f32.mrb[54].mxu0 }
0x2bc1   :  { %v2810_v15 = vadd.f32 %v3031_v0, %v2809_v5  ;;  %v3396_v20 = vpop.f32.mrb[55].mxu0  ;;  %v2813_v3 = vmax.f32 %v2807_v2, 0.0 }
0x2bc3   :  { %v2814_v16 = vmax.f32 %v2810_v15, 0.0 }
0x2bc5   :  { %v2817_v25 = vpack.c.bf16 %v2814_v16, %v2813_v3 }
0x2bc7   :  { %3400 = vmatmul.mubr.msk.bf16.vlgmr.msra.gmra.mrb[56].mxu0 %vm185_vm2, %v2817_v25 }
0x2bc8   :  { %3651 = shalt.err (!%p3648_p4)
}
0x2bc9   :  { %s3652_s8 = scalar_lea.hbm %s4536_s19, 64 }
0x2bca   :  { %p3653_p5 = scmp.ne.s32.totalorder %s4536_s19, %s3652_s8  ;;  %p3656_p6 = scmp.lt.u32.totalorder %s3652_s8, %s4536_s19 }
0x2bcc   :  { %p3658_p7 = pnand %p3656_p6, %p3653_p5 }
0x2bce   :  { %3661 = shalt.err (!%p3658_p7)
}
0x2bcf   :  { %s3698_s24 = smov 2   ;;  %s3662_s27 = scalar_lea.vmem %s2912_s16, 64 }
0x2bd0   :  { %2905 = dma.vmem_to_hbm [thread:$0]  %s2900_s3, 64, %s4536_s19, [#allocation4], %s3690_s4, %s3690_s4, %s3698_s24  }
0x2bd1   :  { %p3663_p8 = scmp.ne.s32.totalorder %s2912_s16, %s3662_s27  ;;  %p3667_p9 = scmp.lt.s32.totalorder %s2912_s16, %s2912_s16 }
0x2bd2   :  { %p3668_p10 = scmp.lt.s32.totalorder %s3662_s27, %s3662_s27 }
0x2bd4   :  { %p3669_p11 = por %p3668_p10, %p3667_p9 }
0x2bd6   :  { %p3670_p12 = pnand %p3669_p11, %p3663_p8 }
0x2bd8   :  { %3673 = shalt.err (!%p3670_p12)
}
0x2bd9   :  { %s3674_s11 = scalar_lea.hbm %s4537_s20, 64 }
0x2bda   :  { %p3675_p13 = scmp.ne.s32.totalorder %s4537_s20, %s3674_s11  ;;  %p3678_p0 = scmp.lt.u32.totalorder %s3674_s11, %s4537_s20 }
0x2bdc   :  { %p3680_p1 = pnand %p3678_p0, %p3675_p13 }
0x2bde   :  { %3683 = shalt.err (!%p3680_p1)
}
0x2bdf   :  { %2917 = dma.vmem_to_hbm [thread:$0]  %s2912_s16, 64, %s4537_s20, [#allocation6], %s3690_s4, %s3690_s4, %s3698_s24  }
0x2be0   :  { %v3035_v35 = vld [vmem:[%s4534_s17] ss:$0 sm:$0xff] }
0x2c9a   :  { %v2868_v27 = vpop.f32.mrb[56].mxu0 }
0x2c9b   :  { %v2869_v26 = vadd.f32 %v3035_v35, %v2868_v27  ;;  %v3401_v30 = vpop.f32.mrb[57].mxu0 }
0x2c9c   :  { %v2871_v29 = vpop.f32.mrb[58].mxu0 }
0x2c9d   :  { %2875 = vst [vmem:[%s4535_s18] sm:$0xff] %v2869_v26  ;;  %v2872_v31 = vadd.f32 %v3035_v35, %v2871_v29  ;;  %v3402_v32 = vpop.f32.mrb[59].mxu0 }
0x2c9f   :  { %2876 = vst [vmem:[%s4535_s18 + $0x8] sm:$0xff] %v2872_v31 }
0x2ca0   :  { %3684 = dma.done.wait [#allocation4], 64  }
0x2ca1   :  { %3685 = vsyncadd [#allocation4], 4294967232 }
0x2ca2   :  { %3686 = dma.done.wait [#allocation6], 64  }
0x2ca3   :  { %3687 = vsyncadd [#allocation6], 4294967232 }
0x2ca4   :  { %2926 = vsyncpa [#allocation4], 1 }
0x2ca5   :  { %2927 = vsyncpa [#allocation6], 1 }

</bundles_post_ra>
